<compile_context>
chip_gen: v7x
topology: tpu7x:2x2x1
jax: 0.10.0
libtpu: 0.0.40
codegen_flags: <defaults>
</compile_context>

<pallas_src>
import functools

import jax
import jax.numpy as jnp
from jax.experimental import pallas as pl
from jax.experimental.pallas import tpu as pltpu

LEAKY_SLOPE = 0.2
KSIZE = 4
PAD = 2  # ceil((4 - 1) / 2)

TM_CAP = 256   # M-tile cap (keeps VMEM modest on v7x, enables megacore M axis)
TK_CAP = 512   # K-tile cap (reduction axis, 'arbitrary')
TN_WIDE = 256  # use 256-wide Cout tiles when Cout allows (v6e/v7x MXU is 256x256)


def _round_up(x, m):
    return (x + m - 1) // m * m


def _pick_mtile(m):
    mp0 = _round_up(m, 16)          # bf16 sublane packing -> multiple of 16
    tm = min(TM_CAP, mp0)
    return tm, _round_up(mp0, tm)


def _pick_ktile(k):
    kp0 = _round_up(k, 128)
    tk = min(TK_CAP, kp0)
    return tk, _round_up(kp0, tk)


def _pick_ntile(cout):
    cp = _round_up(cout, 128)
    tn = TN_WIDE if cp % TN_WIDE == 0 else 128
    return tn, cp


# ----------------------------- Pallas kernel ------------------------------- #
def _fused_conv_kernel(x_ref, w_ref, bias_ref, o_ref, acc_ref, *, apply_act):
    # x_ref:    (tm, tk)  bf16 im2col patch tile
    # w_ref:    (tk, tn)  bf16 weight tile (BN scale pre-folded)
    # bias_ref: (1,  tn)  f32 folded conv-bias + BN shift
    # o_ref:    (tm, tn)  f32 output tile
    # acc_ref:  (tm, tn)  f32 accumulator scratch (resident across K axis)
    k = pl.program_id(2)

    @pl.when(k == 0)
    def _init():
        acc_ref[...] = jnp.zeros_like(acc_ref)

    acc_ref[...] += jnp.dot(x_ref[...], w_ref[...],
                            preferred_element_type=jnp.float32)

    @pl.when(k == pl.num_programs(2) - 1)
    def _finalize():
        y = acc_ref[...] + bias_ref[...]
        if apply_act:
            y = jnp.where(y >= 0.0, y, LEAKY_SLOPE * y)  # LeakyReLU(0.2)
        o_ref[...] = y.astype(o_ref.dtype)


def fused_conv_matmul(patches, w_pad, bias_pad, cout, apply_act, tk, tn):
    """patches: (M, K) bf16, w_pad: (Kp, Cp) bf16, bias_pad: (1, Cp) f32 -> (M, cout) f32."""
    m, k = patches.shape
    kp, cp = w_pad.shape
    tm, mp = _pick_mtile(m)

    xp = patches
    if (mp - m) or (kp - k):
        xp = jnp.pad(xp, ((0, mp - m), (0, kp - k)))

    grid = (mp // tm, cp // tn, kp // tk)
    flops = 2 * mp * kp * cp
    bytes_accessed = xp.size * 2 + w_pad.size * 2 + bias_pad.size * 4 + mp * cp * 4

    out = pl.pallas_call(
        functools.partial(_fused_conv_kernel, apply_act=apply_act),
        out_shape=jax.ShapeDtypeStruct((mp, cp), jnp.float32),
        grid_spec=pltpu.PrefetchScalarGridSpec(
            num_scalar_prefetch=0,
            grid=grid,
            in_specs=[
                pl.BlockSpec((tm, tk), lambda i, j, kk: (i, kk)),   # patches
                pl.BlockSpec((tk, tn), lambda i, j, kk: (kk, j)),   # weights
                pl.BlockSpec((1, tn), lambda i, j, kk: (0, j)),     # bias
            ],
            out_specs=pl.BlockSpec((tm, tn), lambda i, j, kk: (i, j)),
            scratch_shapes=[pltpu.VMEM((tm, tn), jnp.float32)],
        ),
        compiler_params=pltpu.CompilerParams(
            dimension_semantics=("parallel", "parallel", "arbitrary")),
        cost_estimate=pl.CostEstimate(
            flops=flops, transcendentals=0, bytes_accessed=bytes_accessed),
    )(xp, w_pad, bias_pad)
    return out[:m, :cout]


# ------------------------------- JAX glue ----------------------------------- #
def im2col(x_nhwc, stride):
    """x: (N, H, W, C) -> (N*OH*OW, 16*C) patch matrix (same dtype as x)."""
    n, h, w, c = x_nhwc.shape
    xp = jnp.pad(x_nhwc, ((0, 0), (PAD, PAD), (PAD, PAD), (0, 0)))
    oh = (h + 2 * PAD - KSIZE) // stride + 1
    ow = (w + 2 * PAD - KSIZE) // stride + 1
    cols = []
    for kh in range(KSIZE):
        for kw in range(KSIZE):
            cols.append(
                xp[:, kh:kh + stride * (oh - 1) + 1:stride,
                      kw:kw + stride * (ow - 1) + 1:stride, :])  # (N, OH, OW, C)
    patches = jnp.stack(cols, axis=3)  # (N, OH, OW, 16, C) -> K order (kh,kw,cin)
    return patches.reshape(n * oh * ow, KSIZE * KSIZE * c), (n, oh, ow)


def conv_block(x_nhwc, p):
    patches, (n, oh, ow) = im2col(x_nhwc.astype(jnp.bfloat16), p["stride"])
    y = fused_conv_matmul(patches, p["w"], p["bias"], p["cout"], p["act"],
                          p["tk"], p["tn"])
    return y.reshape(n, oh, ow, p["cout"])


def avg_pool_3x3_s2(x_nhwc):
    """AvgPool2d(3, stride=2, padding=1, count_include_pad=False), NHWC."""
    pad = ((0, 0), (1, 1), (1, 1), (0, 0))
    sums = jax.lax.reduce_window(x_nhwc, 0.0, jax.lax.add,
                                 window_dimensions=(1, 3, 3, 1),
                                 window_strides=(1, 2, 2, 1), padding=pad)
    ones = jnp.ones(x_nhwc.shape[:3] + (1,), x_nhwc.dtype)
    counts = jax.lax.reduce_window(ones, 0.0, jax.lax.add,
                                   window_dimensions=(1, 3, 3, 1),
                                   window_strides=(1, 2, 2, 1), padding=pad)
    return sums / counts


# ----------------------------- parameter init ------------------------------- #
def init_nlayer_params(key, n_input_classes, n_filters=64, n_layers=3):
    # (cin, cout, stride, has_bn, has_leaky)
    cfg = [(n_input_classes, n_filters, 2, False, True)]
    nf = n_filters
    for _ in range(1, n_layers):
        nf_prev, nf = nf, min(nf * 2, 512)
        cfg.append((nf_prev, nf, 2, True, True))
    nf_prev, nf = nf, min(nf * 2, 512)
    cfg.append((nf_prev, nf, 1, True, True))
    cfg.append((nf, 1, 1, False, False))

    params = []
    for (ci, co, stride, has_bn, act) in cfg:
        key, k1, k2, k3, k4, k5, k6 = jax.random.split(key, 7)
        w = jax.random.normal(k1, (co, ci, KSIZE, KSIZE), jnp.float32) * 0.02
        b = jax.random.normal(k2, (co,), jnp.float32) * 0.01
        if has_bn:
            gamma = 1.0 + 0.1 * jax.random.normal(k3, (co,), jnp.float32)
            beta = 0.1 * jax.random.normal(k4, (co,), jnp.float32)
            r_mean = 0.05 * jax.random.normal(k5, (co,), jnp.float32)
            r_var = 0.9 + 0.1 * jnp.abs(jax.random.normal(k6, (co,), jnp.float32))
            eps = 1e-5
            scale = gamma / jnp.sqrt(r_var + eps)
            bias = (b - r_mean) * scale + beta
        else:
            scale = jnp.ones((co,), jnp.float32)
            bias = b

        kdim = KSIZE * KSIZE * ci
        # (Cout, Cin, KH, KW) -> (KH, KW, Cin, Cout) -> (16*Cin, Cout); matches
        # im2col K ordering (kh*KW + kw)*Cin + cin.  Fold BN scale into W.
        w_mat = jnp.transpose(w, (2, 3, 1, 0)).reshape(kdim, co) * scale[None, :]

        tk, kp = _pick_ktile(kdim)
        tn, cp = _pick_ntile(co)
        w_pad = jnp.pad(w_mat, ((0, kp - kdim), (0, cp - co))).astype(jnp.bfloat16)
        bias_pad = jnp.pad(bias, (0, cp - co)).reshape(1, cp).astype(jnp.float32)

        params.append(dict(w=w_pad, bias=bias_pad, cout=co, stride=stride,
                           act=act, tk=tk, tn=tn))
    return params


def init_multiscale_params(key, n_input_classes, n_filters=64, n_layers=3,
                           num_scales=3):
    keys = jax.random.split(key, num_scales)
    return [init_nlayer_params(keys[s], n_input_classes, n_filters, n_layers)
            for s in range(num_scales)]


# -------------------------------- forward ----------------------------------- #
def nlayer_forward_nhwc(x_nhwc, params):
    for p in params:
        x_nhwc = conv_block(x_nhwc, p)
    return x_nhwc


def multiscale_discriminator_forward(x_nchw, ms_params, downscale=False):
    x = jnp.transpose(x_nchw, (0, 2, 3, 1))  # NCHW -> NHWC
    num_d = len(ms_params)
    results = []
    x_down = avg_pool_3x3_s2(x) if downscale else x
    for i in range(num_d):
        params = ms_params[num_d - 1 - i]        # layer{num_D-1-i}
        y = nlayer_forward_nhwc(x_down, params)
        results.append(jnp.transpose(y, (0, 3, 1, 2)))  # NHWC -> NCHW
        if i != num_d - 1:
            x_down = avg_pool_3x3_s2(x_down)
    return results


# --------------------------------- main ------------------------------------- #
if __name__ == "__main__":
    key = jax.random.PRNGKey(0)
    k_x, k_p = jax.random.split(key)

    N, C, H, W = 2, 4, 16, 16
    x = jax.random.normal(k_x, (N, C, H, W), jnp.float32)

    ms_params = init_multiscale_params(k_p, n_input_classes=C, n_filters=64,
                                       n_layers=3, num_scales=3)

    fwd = jax.jit(lambda inp: multiscale_discriminator_forward(inp, ms_params))
    outs = fwd(x)
    outs = jax.block_until_ready(outs)

    # Scale 0 (full res 16x16): 16 -> 9 -> 5 -> 3 -> 4 -> 5; scales 1/2: 4x4.
    expected = [(N, 1, 5, 5), (N, 1, 4, 4), (N, 1, 4, 4)]
    got = [tuple(o.shape) for o in outs]
    assert got == expected, got
    assert all(bool(jnp.all(jnp.isfinite(o))) for o in outs)
    print("KERNEL_OK")
</pallas_src>

<mosaic_0001>
module attributes {stable_mosaic.version = 11 : i64} {
  func.func @_fused_conv_kernel(%arg0: i32, %arg1: i32, %arg2: i32, %arg3: memref<32x128xbf16, #tpu.memory_space<vmem>>, %arg4: memref<128x128xbf16, #tpu.memory_space<vmem>>, %arg5: memref<1x128xf32, #tpu.memory_space<vmem>>, %arg6: memref<32x128xf32, #tpu.memory_space<vmem>>, %arg7: memref<32x128xf32, #tpu.memory_space<vmem>>) attributes {dimension_semantics = [#tpu.dimension_semantics<parallel>, #tpu.dimension_semantics<parallel>, #tpu.dimension_semantics<arbitrary>], iteration_bounds = array<i64: 1, 1, 1>, scalar_prefetch = 0 : i64, scratch_operands = 1 : i64, tpu.core_type = #tpu.core_type<tc>, window_params = [{transform_indices = @transform_0, window_bounds = array<i64: 32, 128>}, {transform_indices = @transform_1, window_bounds = array<i64: 128, 128>}, {transform_indices = @transform_2, window_bounds = array<i64: 1, 128>}, {transform_indices = @transform_3, window_bounds = array<i64: 32, 128>}]} {
    %c0_i32 = arith.constant 0 : i32
    %0 = arith.cmpi eq, %arg2, %c0_i32 : i32
    %1 = arith.extui %0 : i1 to i32
    %c0_i32_0 = arith.constant 0 : i32
    %2 = arith.cmpi ne, %1, %c0_i32_0 : i32
    scf.if %2 {
      %cst_10 = arith.constant 0.000000e+00 : f32
      %12 = vector.broadcast %cst_10 : f32 to vector<32x128xf32>
      %c0_11 = arith.constant 0 : index
      %c0_12 = arith.constant 0 : index
      %13 = vector.load %arg7[%c0_11, %c0_12] : memref<32x128xf32, #tpu.memory_space<vmem>>, vector<32x128xf32>
      tpu.vector_store %arg7[%c0_11, %c0_12], %12 {strides = array<i32>} : memref<32x128xf32, #tpu.memory_space<vmem>>, vector<32x128xf32>,
    } else {
    }
    %c0 = arith.constant 0 : index
    %c0_1 = arith.constant 0 : index
    %3 = vector.load %arg7[%c0, %c0_1] : memref<32x128xf32, #tpu.memory_space<vmem>>, vector<32x128xf32>
    %c0_2 = arith.constant 0 : index
    %c0_3 = arith.constant 0 : index
    %4 = vector.load %arg3[%c0_2, %c0_3] : memref<32x128xbf16, #tpu.memory_space<vmem>>, vector<32x128xbf16>
    %c0_4 = arith.constant 0 : index
    %c0_5 = arith.constant 0 : index
    %5 = vector.load %arg4[%c0_4, %c0_5] : memref<128x128xbf16, #tpu.memory_space<vmem>>, vector<128x128xbf16>
    %cst = arith.constant dense<0.000000e+00> : vector<32x128xf32>
    %6 = tpu.matmul %4, %5, %cst {dimension_numbers = #tpu.dot_dimension_numbers<[1], [0], [0], [1], [0, 0, 1, 1], [], []>} : vector<32x128xbf16>, vector<128x128xbf16>, vector<32x128xf32> -> vector<32x128xf32>
    %7 = arith.addf %3, %6 : vector<32x128xf32>
    %c0_6 = arith.constant 0 : index
    %c0_7 = arith.constant 0 : index
    %8 = vector.load %arg7[%c0_6, %c0_7] : memref<32x128xf32, #tpu.memory_space<vmem>>, vector<32x128xf32>
    tpu.vector_store %arg7[%c0_6, %c0_7], %7 {strides = array<i32>} : memref<32x128xf32, #tpu.memory_space<vmem>>, vector<32x128xf32>,
    %c0_i32_8 = arith.constant 0 : i32
    %9 = arith.cmpi eq, %arg2, %c0_i32_8 : i32
    %10 = arith.extui %9 : i1 to i32
    %c0_i32_9 = arith.constant 0 : i32
    %11 = arith.cmpi ne, %10, %c0_i32_9 : i32
    scf.if %11 {
      %c0_10 = arith.constant 0 : index
      %c0_11 = arith.constant 0 : index
      %12 = vector.load %arg7[%c0_10, %c0_11] : memref<32x128xf32, #tpu.memory_space<vmem>>, vector<32x128xf32>
      %c0_12 = arith.constant 0 : index
      %c0_13 = arith.constant 0 : index
      %13 = vector.load %arg5[%c0_12, %c0_13] : memref<1x128xf32, #tpu.memory_space<vmem>>, vector<1x128xf32>
      %14 = vector.broadcast %13 : vector<1x128xf32> to vector<32x128xf32>
      %15 = arith.addf %12, %14 : vector<32x128xf32>
      %cst_14 = arith.constant 0.000000e+00 : f32
      %16 = vector.broadcast %cst_14 : f32 to vector<32x128xf32>
      %17 = arith.cmpf oge, %15, %16 : vector<32x128xf32>
      %cst_15 = arith.constant 2.000000e-01 : f32
      %18 = vector.broadcast %cst_15 : f32 to vector<32x128xf32>
      %19 = arith.mulf %18, %15 : vector<32x128xf32>
      %20 = arith.select %17, %15, %19 : vector<32x128xi1>, vector<32x128xf32>
      %c0_16 = arith.constant 0 : index
      %c0_17 = arith.constant 0 : index
      %21 = vector.load %arg6[%c0_16, %c0_17] : memref<32x128xf32, #tpu.memory_space<vmem>>, vector<32x128xf32>
      tpu.vector_store %arg6[%c0_16, %c0_17], %20 {strides = array<i32>} : memref<32x128xf32, #tpu.memory_space<vmem>>, vector<32x128xf32>,
    } else {
    }
    return
  }
  func.func @transform_0(%arg0: i32, %arg1: i32, %arg2: i32) -> (i32, i32) {
    %c0_i32 = arith.constant 0 : i32
    return %arg0, %arg2 : i32, i32
  }
  func.func @transform_1(%arg0: i32, %arg1: i32, %arg2: i32) -> (i32, i32) {
    %c0_i32 = arith.constant 0 : i32
    return %arg2, %arg1 : i32, i32
  }
  func.func @transform_2(%arg0: i32, %arg1: i32, %arg2: i32) -> (i32, i32) {
    %c0_i32 = arith.constant 0 : i32
    %c0_i32_0 = arith.constant 0 : i32
    return %c0_i32, %arg1 : i32, i32
  }
  func.func @transform_3(%arg0: i32, %arg1: i32, %arg2: i32) -> (i32, i32) {
    %c0_i32 = arith.constant 0 : i32
    return %arg0, %arg1 : i32, i32
  }
}

module attributes {stable_mosaic.version = 11 : i64} {
  func.func @_fused_conv_kernel(%arg0: i32, %arg1: i32, %arg2: i32, %arg3: memref<16x512xbf16, #tpu.memory_space<vmem>>, %arg4: memref<512x128xbf16, #tpu.memory_space<vmem>>, %arg5: memref<1x128xf32, #tpu.memory_space<vmem>>, %arg6: memref<16x128xf32, #tpu.memory_space<vmem>>, %arg7: memref<16x128xf32, #tpu.memory_space<vmem>>) attributes {dimension_semantics = [#tpu.dimension_semantics<parallel>, #tpu.dimension_semantics<parallel>, #tpu.dimension_semantics<arbitrary>], iteration_bounds = array<i64: 1, 1, 2>, scalar_prefetch = 0 : i64, scratch_operands = 1 : i64, tpu.core_type = #tpu.core_type<tc>, window_params = [{transform_indices = @transform_0, window_bounds = array<i64: 16, 512>}, {transform_indices = @transform_1, window_bounds = array<i64: 512, 128>}, {transform_indices = @transform_2, window_bounds = array<i64: 1, 128>}, {transform_indices = @transform_3, window_bounds = array<i64: 16, 128>}]} {
    %c0_i32 = arith.constant 0 : i32
    %0 = arith.cmpi eq, %arg2, %c0_i32 : i32
    %1 = arith.extui %0 : i1 to i32
    %c0_i32_0 = arith.constant 0 : i32
    %2 = arith.cmpi ne, %1, %c0_i32_0 : i32
    scf.if %2 {
      %cst_9 = arith.constant 0.000000e+00 : f32
      %12 = vector.broadcast %cst_9 : f32 to vector<16x128xf32>
      %c0_10 = arith.constant 0 : index
      %c0_11 = arith.constant 0 : index
      %13 = vector.load %arg7[%c0_10, %c0_11] : memref<16x128xf32, #tpu.memory_space<vmem>>, vector<16x128xf32>
      tpu.vector_store %arg7[%c0_10, %c0_11], %12 {strides = array<i32>} : memref<16x128xf32, #tpu.memory_space<vmem>>, vector<16x128xf32>,
    } else {
    }
    %c0 = arith.constant 0 : index
    %c0_1 = arith.constant 0 : index
    %3 = vector.load %arg7[%c0, %c0_1] : memref<16x128xf32, #tpu.memory_space<vmem>>, vector<16x128xf32>
    %c0_2 = arith.constant 0 : index
    %c0_3 = arith.constant 0 : index
    %4 = vector.load %arg3[%c0_2, %c0_3] : memref<16x512xbf16, #tpu.memory_space<vmem>>, vector<16x512xbf16>
    %c0_4 = arith.constant 0 : index
    %c0_5 = arith.constant 0 : index
    %5 = vector.load %arg4[%c0_4, %c0_5] : memref<512x128xbf16, #tpu.memory_space<vmem>>, vector<512x128xbf16>
    %cst = arith.constant dense<0.000000e+00> : vector<16x128xf32>
    %6 = tpu.matmul %4, %5, %cst {dimension_numbers = #tpu.dot_dimension_numbers<[1], [0], [0], [1], [0, 0, 1, 1], [], []>} : vector<16x512xbf16>, vector<512x128xbf16>, vector<16x128xf32> -> vector<16x128xf32>
    %7 = arith.addf %3, %6 : vector<16x128xf32>
    %c0_6 = arith.constant 0 : index
    %c0_7 = arith.constant 0 : index
    %8 = vector.load %arg7[%c0_6, %c0_7] : memref<16x128xf32, #tpu.memory_space<vmem>>, vector<16x128xf32>
    tpu.vector_store %arg7[%c0_6, %c0_7], %7 {strides = array<i32>} : memref<16x128xf32, #tpu.memory_space<vmem>>, vector<16x128xf32>,
    %c1_i32 = arith.constant 1 : i32
    %9 = arith.cmpi eq, %arg2, %c1_i32 : i32
    %10 = arith.extui %9 : i1 to i32
    %c0_i32_8 = arith.constant 0 : i32
    %11 = arith.cmpi ne, %10, %c0_i32_8 : i32
    scf.if %11 {
      %c0_9 = arith.constant 0 : index
      %c0_10 = arith.constant 0 : index
      %12 = vector.load %arg7[%c0_9, %c0_10] : memref<16x128xf32, #tpu.memory_space<vmem>>, vector<16x128xf32>
      %c0_11 = arith.constant 0 : index
      %c0_12 = arith.constant 0 : index
      %13 = vector.load %arg5[%c0_11, %c0_12] : memref<1x128xf32, #tpu.memory_space<vmem>>, vector<1x128xf32>
      %14 = vector.broadcast %13 : vector<1x128xf32> to vector<16x128xf32>
      %15 = arith.addf %12, %14 : vector<16x128xf32>
      %cst_13 = arith.constant 0.000000e+00 : f32
      %16 = vector.broadcast %cst_13 : f32 to vector<16x128xf32>
      %17 = arith.cmpf oge, %15, %16 : vector<16x128xf32>
      %cst_14 = arith.constant 2.000000e-01 : f32
      %18 = vector.broadcast %cst_14 : f32 to vector<16x128xf32>
      %19 = arith.mulf %18, %15 : vector<16x128xf32>
      %20 = arith.select %17, %15, %19 : vector<16x128xi1>, vector<16x128xf32>
      %c0_15 = arith.constant 0 : index
      %c0_16 = arith.constant 0 : index
      %21 = vector.load %arg6[%c0_15, %c0_16] : memref<16x128xf32, #tpu.memory_space<vmem>>, vector<16x128xf32>
      tpu.vector_store %arg6[%c0_15, %c0_16], %20 {strides = array<i32>} : memref<16x128xf32, #tpu.memory_space<vmem>>, vector<16x128xf32>,
    } else {
    }
    return
  }
  func.func @transform_0(%arg0: i32, %arg1: i32, %arg2: i32) -> (i32, i32) {
    %c0_i32 = arith.constant 0 : i32
    return %arg0, %arg2 : i32, i32
  }
  func.func @transform_1(%arg0: i32, %arg1: i32, %arg2: i32) -> (i32, i32) {
    %c0_i32 = arith.constant 0 : i32
    return %arg2, %arg1 : i32, i32
  }
  func.func @transform_2(%arg0: i32, %arg1: i32, %arg2: i32) -> (i32, i32) {
    %c0_i32 = arith.constant 0 : i32
    %c0_i32_0 = arith.constant 0 : i32
    return %c0_i32, %arg1 : i32, i32
  }
  func.func @transform_3(%arg0: i32, %arg1: i32, %arg2: i32) -> (i32, i32) {
    %c0_i32 = arith.constant 0 : i32
    return %arg0, %arg1 : i32, i32
  }
}

module attributes {stable_mosaic.version = 11 : i64} {
  func.func @_fused_conv_kernel(%arg0: i32, %arg1: i32, %arg2: i32, %arg3: memref<16x512xbf16, #tpu.memory_space<vmem>>, %arg4: memref<512x256xbf16, #tpu.memory_space<vmem>>, %arg5: memref<1x256xf32, #tpu.memory_space<vmem>>, %arg6: memref<16x256xf32, #tpu.memory_space<vmem>>, %arg7: memref<16x256xf32, #tpu.memory_space<vmem>>) attributes {dimension_semantics = [#tpu.dimension_semantics<parallel>, #tpu.dimension_semantics<parallel>, #tpu.dimension_semantics<arbitrary>], iteration_bounds = array<i64: 1, 1, 4>, scalar_prefetch = 0 : i64, scratch_operands = 1 : i64, tpu.core_type = #tpu.core_type<tc>, window_params = [{transform_indices = @transform_0, window_bounds = array<i64: 16, 512>}, {transform_indices = @transform_1, window_bounds = array<i64: 512, 256>}, {transform_indices = @transform_2, window_bounds = array<i64: 1, 256>}, {transform_indices = @transform_3, window_bounds = array<i64: 16, 256>}]} {
    %c0_i32 = arith.constant 0 : i32
    %0 = arith.cmpi eq, %arg2, %c0_i32 : i32
    %1 = arith.extui %0 : i1 to i32
    %c0_i32_0 = arith.constant 0 : i32
    %2 = arith.cmpi ne, %1, %c0_i32_0 : i32
    scf.if %2 {
      %cst_9 = arith.constant 0.000000e+00 : f32
      %12 = vector.broadcast %cst_9 : f32 to vector<16x256xf32>
      %c0_10 = arith.constant 0 : index
      %c0_11 = arith.constant 0 : index
      %13 = vector.load %arg7[%c0_10, %c0_11] : memref<16x256xf32, #tpu.memory_space<vmem>>, vector<16x256xf32>
      tpu.vector_store %arg7[%c0_10, %c0_11], %12 {strides = array<i32>} : memref<16x256xf32, #tpu.memory_space<vmem>>, vector<16x256xf32>,
    } else {
    }
    %c0 = arith.constant 0 : index
    %c0_1 = arith.constant 0 : index
    %3 = vector.load %arg7[%c0, %c0_1] : memref<16x256xf32, #tpu.memory_space<vmem>>, vector<16x256xf32>
    %c0_2 = arith.constant 0 : index
    %c0_3 = arith.constant 0 : index
    %4 = vector.load %arg3[%c0_2, %c0_3] : memref<16x512xbf16, #tpu.memory_space<vmem>>, vector<16x512xbf16>
    %c0_4 = arith.constant 0 : index
    %c0_5 = arith.constant 0 : index
    %5 = vector.load %arg4[%c0_4, %c0_5] : memref<512x256xbf16, #tpu.memory_space<vmem>>, vector<512x256xbf16>
    %cst = arith.constant dense<0.000000e+00> : vector<16x256xf32>
    %6 = tpu.matmul %4, %5, %cst {dimension_numbers = #tpu.dot_dimension_numbers<[1], [0], [0], [1], [0, 0, 1, 1], [], []>} : vector<16x512xbf16>, vector<512x256xbf16>, vector<16x256xf32> -> vector<16x256xf32>
    %7 = arith.addf %3, %6 : vector<16x256xf32>
    %c0_6 = arith.constant 0 : index
    %c0_7 = arith.constant 0 : index
    %8 = vector.load %arg7[%c0_6, %c0_7] : memref<16x256xf32, #tpu.memory_space<vmem>>, vector<16x256xf32>
    tpu.vector_store %arg7[%c0_6, %c0_7], %7 {strides = array<i32>} : memref<16x256xf32, #tpu.memory_space<vmem>>, vector<16x256xf32>,
    %c3_i32 = arith.constant 3 : i32
    %9 = arith.cmpi eq, %arg2, %c3_i32 : i32
    %10 = arith.extui %9 : i1 to i32
    %c0_i32_8 = arith.constant 0 : i32
    %11 = arith.cmpi ne, %10, %c0_i32_8 : i32
    scf.if %11 {
      %c0_9 = arith.constant 0 : index
      %c0_10 = arith.constant 0 : index
      %12 = vector.load %arg7[%c0_9, %c0_10] : memref<16x256xf32, #tpu.memory_space<vmem>>, vector<16x256xf32>
      %c0_11 = arith.constant 0 : index
      %c0_12 = arith.constant 0 : index
      %13 = vector.load %arg5[%c0_11, %c0_12] : memref<1x256xf32, #tpu.memory_space<vmem>>, vector<1x256xf32>
      %14 = vector.broadcast %13 : vector<1x256xf32> to vector<16x256xf32>
      %15 = arith.addf %12, %14 : vector<16x256xf32>
      %cst_13 = arith.constant 0.000000e+00 : f32
      %16 = vector.broadcast %cst_13 : f32 to vector<16x256xf32>
      %17 = arith.cmpf oge, %15, %16 : vector<16x256xf32>
      %cst_14 = arith.constant 2.000000e-01 : f32
      %18 = vector.broadcast %cst_14 : f32 to vector<16x256xf32>
      %19 = arith.mulf %18, %15 : vector<16x256xf32>
      %20 = arith.select %17, %15, %19 : vector<16x256xi1>, vector<16x256xf32>
      %c0_15 = arith.constant 0 : index
      %c0_16 = arith.constant 0 : index
      %21 = vector.load %arg6[%c0_15, %c0_16] : memref<16x256xf32, #tpu.memory_space<vmem>>, vector<16x256xf32>
      tpu.vector_store %arg6[%c0_15, %c0_16], %20 {strides = array<i32>} : memref<16x256xf32, #tpu.memory_space<vmem>>, vector<16x256xf32>,
    } else {
    }
    return
  }
  func.func @transform_0(%arg0: i32, %arg1: i32, %arg2: i32) -> (i32, i32) {
    %c0_i32 = arith.constant 0 : i32
    return %arg0, %arg2 : i32, i32
  }
  func.func @transform_1(%arg0: i32, %arg1: i32, %arg2: i32) -> (i32, i32) {
    %c0_i32 = arith.constant 0 : i32
    return %arg2, %arg1 : i32, i32
  }
  func.func @transform_2(%arg0: i32, %arg1: i32, %arg2: i32) -> (i32, i32) {
    %c0_i32 = arith.constant 0 : i32
    %c0_i32_0 = arith.constant 0 : i32
    return %c0_i32, %arg1 : i32, i32
  }
  func.func @transform_3(%arg0: i32, %arg1: i32, %arg2: i32) -> (i32, i32) {
    %c0_i32 = arith.constant 0 : i32
    return %arg0, %arg1 : i32, i32
  }
}

module attributes {stable_mosaic.version = 11 : i64} {
  func.func @_fused_conv_kernel(%arg0: i32, %arg1: i32, %arg2: i32, %arg3: memref<32x512xbf16, #tpu.memory_space<vmem>>, %arg4: memref<512x256xbf16, #tpu.memory_space<vmem>>, %arg5: memref<1x256xf32, #tpu.memory_space<vmem>>, %arg6: memref<32x256xf32, #tpu.memory_space<vmem>>, %arg7: memref<32x256xf32, #tpu.memory_space<vmem>>) attributes {dimension_semantics = [#tpu.dimension_semantics<parallel>, #tpu.dimension_semantics<parallel>, #tpu.dimension_semantics<arbitrary>], iteration_bounds = array<i64: 1, 2, 8>, scalar_prefetch = 0 : i64, scratch_operands = 1 : i64, tpu.core_type = #tpu.core_type<tc>, window_params = [{transform_indices = @transform_0, window_bounds = array<i64: 32, 512>}, {transform_indices = @transform_1, window_bounds = array<i64: 512, 256>}, {transform_indices = @transform_2, window_bounds = array<i64: 1, 256>}, {transform_indices = @transform_3, window_bounds = array<i64: 32, 256>}]} {
    %c0_i32 = arith.constant 0 : i32
    %0 = arith.cmpi eq, %arg2, %c0_i32 : i32
    %1 = arith.extui %0 : i1 to i32
    %c0_i32_0 = arith.constant 0 : i32
    %2 = arith.cmpi ne, %1, %c0_i32_0 : i32
    scf.if %2 {
      %cst_9 = arith.constant 0.000000e+00 : f32
      %12 = vector.broadcast %cst_9 : f32 to vector<32x256xf32>
      %c0_10 = arith.constant 0 : index
      %c0_11 = arith.constant 0 : index
      %13 = vector.load %arg7[%c0_10, %c0_11] : memref<32x256xf32, #tpu.memory_space<vmem>>, vector<32x256xf32>
      tpu.vector_store %arg7[%c0_10, %c0_11], %12 {strides = array<i32>} : memref<32x256xf32, #tpu.memory_space<vmem>>, vector<32x256xf32>,
    } else {
    }
    %c0 = arith.constant 0 : index
    %c0_1 = arith.constant 0 : index
    %3 = vector.load %arg7[%c0, %c0_1] : memref<32x256xf32, #tpu.memory_space<vmem>>, vector<32x256xf32>
    %c0_2 = arith.constant 0 : index
    %c0_3 = arith.constant 0 : index
    %4 = vector.load %arg3[%c0_2, %c0_3] : memref<32x512xbf16, #tpu.memory_space<vmem>>, vector<32x512xbf16>
    %c0_4 = arith.constant 0 : index
    %c0_5 = arith.constant 0 : index
    %5 = vector.load %arg4[%c0_4, %c0_5] : memref<512x256xbf16, #tpu.memory_space<vmem>>, vector<512x256xbf16>
    %cst = arith.constant dense<0.000000e+00> : vector<32x256xf32>
    %6 = tpu.matmul %4, %5, %cst {dimension_numbers = #tpu.dot_dimension_numbers<[1], [0], [0], [1], [0, 0, 1, 1], [], []>} : vector<32x512xbf16>, vector<512x256xbf16>, vector<32x256xf32> -> vector<32x256xf32>
    %7 = arith.addf %3, %6 : vector<32x256xf32>
    %c0_6 = arith.constant 0 : index
    %c0_7 = arith.constant 0 : index
    %8 = vector.load %arg7[%c0_6, %c0_7] : memref<32x256xf32, #tpu.memory_space<vmem>>, vector<32x256xf32>
    tpu.vector_store %arg7[%c0_6, %c0_7], %7 {strides = array<i32>} : memref<32x256xf32, #tpu.memory_space<vmem>>, vector<32x256xf32>,
    %c7_i32 = arith.constant 7 : i32
    %9 = arith.cmpi eq, %arg2, %c7_i32 : i32
    %10 = arith.extui %9 : i1 to i32
    %c0_i32_8 = arith.constant 0 : i32
    %11 = arith.cmpi ne, %10, %c0_i32_8 : i32
    scf.if %11 {
      %c0_9 = arith.constant 0 : index
      %c0_10 = arith.constant 0 : index
      %12 = vector.load %arg7[%c0_9, %c0_10] : memref<32x256xf32, #tpu.memory_space<vmem>>, vector<32x256xf32>
      %c0_11 = arith.constant 0 : index
      %c0_12 = arith.constant 0 : index
      %13 = vector.load %arg5[%c0_11, %c0_12] : memref<1x256xf32, #tpu.memory_space<vmem>>, vector<1x256xf32>
      %14 = vector.broadcast %13 : vector<1x256xf32> to vector<32x256xf32>
      %15 = arith.addf %12, %14 : vector<32x256xf32>
      %cst_13 = arith.constant 0.000000e+00 : f32
      %16 = vector.broadcast %cst_13 : f32 to vector<32x256xf32>
      %17 = arith.cmpf oge, %15, %16 : vector<32x256xf32>
      %cst_14 = arith.constant 2.000000e-01 : f32
      %18 = vector.broadcast %cst_14 : f32 to vector<32x256xf32>
      %19 = arith.mulf %18, %15 : vector<32x256xf32>
      %20 = arith.select %17, %15, %19 : vector<32x256xi1>, vector<32x256xf32>
      %c0_15 = arith.constant 0 : index
      %c0_16 = arith.constant 0 : index
      %21 = vector.load %arg6[%c0_15, %c0_16] : memref<32x256xf32, #tpu.memory_space<vmem>>, vector<32x256xf32>
      tpu.vector_store %arg6[%c0_15, %c0_16], %20 {strides = array<i32>} : memref<32x256xf32, #tpu.memory_space<vmem>>, vector<32x256xf32>,
    } else {
    }
    return
  }
  func.func @transform_0(%arg0: i32, %arg1: i32, %arg2: i32) -> (i32, i32) {
    %c0_i32 = arith.constant 0 : i32
    return %arg0, %arg2 : i32, i32
  }
  func.func @transform_1(%arg0: i32, %arg1: i32, %arg2: i32) -> (i32, i32) {
    %c0_i32 = arith.constant 0 : i32
    return %arg2, %arg1 : i32, i32
  }
  func.func @transform_2(%arg0: i32, %arg1: i32, %arg2: i32) -> (i32, i32) {
    %c0_i32 = arith.constant 0 : i32
    %c0_i32_0 = arith.constant 0 : i32
    return %c0_i32, %arg1 : i32, i32
  }
  func.func @transform_3(%arg0: i32, %arg1: i32, %arg2: i32) -> (i32, i32) {
    %c0_i32 = arith.constant 0 : i32
    return %arg0, %arg1 : i32, i32
  }
}

module attributes {stable_mosaic.version = 11 : i64} {
  func.func @_fused_conv_kernel(%arg0: i32, %arg1: i32, %arg2: i32, %arg3: memref<32x512xbf16, #tpu.memory_space<vmem>>, %arg4: memref<512x128xbf16, #tpu.memory_space<vmem>>, %arg5: memref<1x128xf32, #tpu.memory_space<vmem>>, %arg6: memref<32x128xf32, #tpu.memory_space<vmem>>, %arg7: memref<32x128xf32, #tpu.memory_space<vmem>>) attributes {dimension_semantics = [#tpu.dimension_semantics<parallel>, #tpu.dimension_semantics<parallel>, #tpu.dimension_semantics<arbitrary>], iteration_bounds = array<i64: 1, 1, 16>, scalar_prefetch = 0 : i64, scratch_operands = 1 : i64, tpu.core_type = #tpu.core_type<tc>, window_params = [{transform_indices = @transform_0, window_bounds = array<i64: 32, 512>}, {transform_indices = @transform_1, window_bounds = array<i64: 512, 128>}, {transform_indices = @transform_2, window_bounds = array<i64: 1, 128>}, {transform_indices = @transform_3, window_bounds = array<i64: 32, 128>}]} {
    %c0_i32 = arith.constant 0 : i32
    %0 = arith.cmpi eq, %arg2, %c0_i32 : i32
    %1 = arith.extui %0 : i1 to i32
    %c0_i32_0 = arith.constant 0 : i32
    %2 = arith.cmpi ne, %1, %c0_i32_0 : i32
    scf.if %2 {
      %cst_9 = arith.constant 0.000000e+00 : f32
      %12 = vector.broadcast %cst_9 : f32 to vector<32x128xf32>
      %c0_10 = arith.constant 0 : index
      %c0_11 = arith.constant 0 : index
      %13 = vector.load %arg7[%c0_10, %c0_11] : memref<32x128xf32, #tpu.memory_space<vmem>>, vector<32x128xf32>
      tpu.vector_store %arg7[%c0_10, %c0_11], %12 {strides = array<i32>} : memref<32x128xf32, #tpu.memory_space<vmem>>, vector<32x128xf32>,
    } else {
    }
    %c0 = arith.constant 0 : index
    %c0_1 = arith.constant 0 : index
    %3 = vector.load %arg7[%c0, %c0_1] : memref<32x128xf32, #tpu.memory_space<vmem>>, vector<32x128xf32>
    %c0_2 = arith.constant 0 : index
    %c0_3 = arith.constant 0 : index
    %4 = vector.load %arg3[%c0_2, %c0_3] : memref<32x512xbf16, #tpu.memory_space<vmem>>, vector<32x512xbf16>
    %c0_4 = arith.constant 0 : index
    %c0_5 = arith.constant 0 : index
    %5 = vector.load %arg4[%c0_4, %c0_5] : memref<512x128xbf16, #tpu.memory_space<vmem>>, vector<512x128xbf16>
    %cst = arith.constant dense<0.000000e+00> : vector<32x128xf32>
    %6 = tpu.matmul %4, %5, %cst {dimension_numbers = #tpu.dot_dimension_numbers<[1], [0], [0], [1], [0, 0, 1, 1], [], []>} : vector<32x512xbf16>, vector<512x128xbf16>, vector<32x128xf32> -> vector<32x128xf32>
    %7 = arith.addf %3, %6 : vector<32x128xf32>
    %c0_6 = arith.constant 0 : index
    %c0_7 = arith.constant 0 : index
    %8 = vector.load %arg7[%c0_6, %c0_7] : memref<32x128xf32, #tpu.memory_space<vmem>>, vector<32x128xf32>
    tpu.vector_store %arg7[%c0_6, %c0_7], %7 {strides = array<i32>} : memref<32x128xf32, #tpu.memory_space<vmem>>, vector<32x128xf32>,
    %c15_i32 = arith.constant 15 : i32
    %9 = arith.cmpi eq, %arg2, %c15_i32 : i32
    %10 = arith.extui %9 : i1 to i32
    %c0_i32_8 = arith.constant 0 : i32
    %11 = arith.cmpi ne, %10, %c0_i32_8 : i32
    scf.if %11 {
      %c0_9 = arith.constant 0 : index
      %c0_10 = arith.constant 0 : index
      %12 = vector.load %arg7[%c0_9, %c0_10] : memref<32x128xf32, #tpu.memory_space<vmem>>, vector<32x128xf32>
      %c0_11 = arith.constant 0 : index
      %c0_12 = arith.constant 0 : index
      %13 = vector.load %arg5[%c0_11, %c0_12] : memref<1x128xf32, #tpu.memory_space<vmem>>, vector<1x128xf32>
      %14 = vector.broadcast %13 : vector<1x128xf32> to vector<32x128xf32>
      %15 = arith.addf %12, %14 : vector<32x128xf32>
      %c0_13 = arith.constant 0 : index
      %c0_14 = arith.constant 0 : index
      %16 = vector.load %arg6[%c0_13, %c0_14] : memref<32x128xf32, #tpu.memory_space<vmem>>, vector<32x128xf32>
      tpu.vector_store %arg6[%c0_13, %c0_14], %15 {strides = array<i32>} : memref<32x128xf32, #tpu.memory_space<vmem>>, vector<32x128xf32>,
    } else {
    }
    return
  }
  func.func @transform_0(%arg0: i32, %arg1: i32, %arg2: i32) -> (i32, i32) {
    %c0_i32 = arith.constant 0 : i32
    return %arg0, %arg2 : i32, i32
  }
  func.func @transform_1(%arg0: i32, %arg1: i32, %arg2: i32) -> (i32, i32) {
    %c0_i32 = arith.constant 0 : i32
    return %arg2, %arg1 : i32, i32
  }
  func.func @transform_2(%arg0: i32, %arg1: i32, %arg2: i32) -> (i32, i32) {
    %c0_i32 = arith.constant 0 : i32
    %c0_i32_0 = arith.constant 0 : i32
    return %c0_i32, %arg1 : i32, i32
  }
  func.func @transform_3(%arg0: i32, %arg1: i32, %arg2: i32) -> (i32, i32) {
    %c0_i32 = arith.constant 0 : i32
    return %arg0, %arg1 : i32, i32
  }
}

module attributes {stable_mosaic.version = 11 : i64} {
  func.func @_fused_conv_kernel(%arg0: i32, %arg1: i32, %arg2: i32, %arg3: memref<64x128xbf16, #tpu.memory_space<vmem>>, %arg4: memref<128x128xbf16, #tpu.memory_space<vmem>>, %arg5: memref<1x128xf32, #tpu.memory_space<vmem>>, %arg6: memref<64x128xf32, #tpu.memory_space<vmem>>, %arg7: memref<64x128xf32, #tpu.memory_space<vmem>>) attributes {dimension_semantics = [#tpu.dimension_semantics<parallel>, #tpu.dimension_semantics<parallel>, #tpu.dimension_semantics<arbitrary>], iteration_bounds = array<i64: 1, 1, 1>, scalar_prefetch = 0 : i64, scratch_operands = 1 : i64, tpu.core_type = #tpu.core_type<tc>, window_params = [{transform_indices = @transform_0, window_bounds = array<i64: 64, 128>}, {transform_indices = @transform_1, window_bounds = array<i64: 128, 128>}, {transform_indices = @transform_2, window_bounds = array<i64: 1, 128>}, {transform_indices = @transform_3, window_bounds = array<i64: 64, 128>}]} {
    %c0_i32 = arith.constant 0 : i32
    %0 = arith.cmpi eq, %arg2, %c0_i32 : i32
    %1 = arith.extui %0 : i1 to i32
    %c0_i32_0 = arith.constant 0 : i32
    %2 = arith.cmpi ne, %1, %c0_i32_0 : i32
    scf.if %2 {
      %cst_10 = arith.constant 0.000000e+00 : f32
      %12 = vector.broadcast %cst_10 : f32 to vector<64x128xf32>
      %c0_11 = arith.constant 0 : index
      %c0_12 = arith.constant 0 : index
      %13 = vector.load %arg7[%c0_11, %c0_12] : memref<64x128xf32, #tpu.memory_space<vmem>>, vector<64x128xf32>
      tpu.vector_store %arg7[%c0_11, %c0_12], %12 {strides = array<i32>} : memref<64x128xf32, #tpu.memory_space<vmem>>, vector<64x128xf32>,
    } else {
    }
    %c0 = arith.constant 0 : index
    %c0_1 = arith.constant 0 : index
    %3 = vector.load %arg7[%c0, %c0_1] : memref<64x128xf32, #tpu.memory_space<vmem>>, vector<64x128xf32>
    %c0_2 = arith.constant 0 : index
    %c0_3 = arith.constant 0 : index
    %4 = vector.load %arg3[%c0_2, %c0_3] : memref<64x128xbf16, #tpu.memory_space<vmem>>, vector<64x128xbf16>
    %c0_4 = arith.constant 0 : index
    %c0_5 = arith.constant 0 : index
    %5 = vector.load %arg4[%c0_4, %c0_5] : memref<128x128xbf16, #tpu.memory_space<vmem>>, vector<128x128xbf16>
    %cst = arith.constant dense<0.000000e+00> : vector<64x128xf32>
    %6 = tpu.matmul %4, %5, %cst {dimension_numbers = #tpu.dot_dimension_numbers<[1], [0], [0], [1], [0, 0, 1, 1], [], []>} : vector<64x128xbf16>, vector<128x128xbf16>, vector<64x128xf32> -> vector<64x128xf32>
    %7 = arith.addf %3, %6 : vector<64x128xf32>
    %c0_6 = arith.constant 0 : index
    %c0_7 = arith.constant 0 : index
    %8 = vector.load %arg7[%c0_6, %c0_7] : memref<64x128xf32, #tpu.memory_space<vmem>>, vector<64x128xf32>
    tpu.vector_store %arg7[%c0_6, %c0_7], %7 {strides = array<i32>} : memref<64x128xf32, #tpu.memory_space<vmem>>, vector<64x128xf32>,
    %c0_i32_8 = arith.constant 0 : i32
    %9 = arith.cmpi eq, %arg2, %c0_i32_8 : i32
    %10 = arith.extui %9 : i1 to i32
    %c0_i32_9 = arith.constant 0 : i32
    %11 = arith.cmpi ne, %10, %c0_i32_9 : i32
    scf.if %11 {
      %c0_10 = arith.constant 0 : index
      %c0_11 = arith.constant 0 : index
      %12 = vector.load %arg7[%c0_10, %c0_11] : memref<64x128xf32, #tpu.memory_space<vmem>>, vector<64x128xf32>
      %c0_12 = arith.constant 0 : index
      %c0_13 = arith.constant 0 : index
      %13 = vector.load %arg5[%c0_12, %c0_13] : memref<1x128xf32, #tpu.memory_space<vmem>>, vector<1x128xf32>
      %14 = vector.broadcast %13 : vector<1x128xf32> to vector<64x128xf32>
      %15 = arith.addf %12, %14 : vector<64x128xf32>
      %cst_14 = arith.constant 0.000000e+00 : f32
      %16 = vector.broadcast %cst_14 : f32 to vector<64x128xf32>
      %17 = arith.cmpf oge, %15, %16 : vector<64x128xf32>
      %cst_15 = arith.constant 2.000000e-01 : f32
      %18 = vector.broadcast %cst_15 : f32 to vector<64x128xf32>
      %19 = arith.mulf %18, %15 : vector<64x128xf32>
      %20 = arith.select %17, %15, %19 : vector<64x128xi1>, vector<64x128xf32>
      %c0_16 = arith.constant 0 : index
      %c0_17 = arith.constant 0 : index
      %21 = vector.load %arg6[%c0_16, %c0_17] : memref<64x128xf32, #tpu.memory_space<vmem>>, vector<64x128xf32>
      tpu.vector_store %arg6[%c0_16, %c0_17], %20 {strides = array<i32>} : memref<64x128xf32, #tpu.memory_space<vmem>>, vector<64x128xf32>,
    } else {
    }
    return
  }
  func.func @transform_0(%arg0: i32, %arg1: i32, %arg2: i32) -> (i32, i32) {
    %c0_i32 = arith.constant 0 : i32
    return %arg0, %arg2 : i32, i32
  }
  func.func @transform_1(%arg0: i32, %arg1: i32, %arg2: i32) -> (i32, i32) {
    %c0_i32 = arith.constant 0 : i32
    return %arg2, %arg1 : i32, i32
  }
  func.func @transform_2(%arg0: i32, %arg1: i32, %arg2: i32) -> (i32, i32) {
    %c0_i32 = arith.constant 0 : i32
    %c0_i32_0 = arith.constant 0 : i32
    return %c0_i32, %arg1 : i32, i32
  }
  func.func @transform_3(%arg0: i32, %arg1: i32, %arg2: i32) -> (i32, i32) {
    %c0_i32 = arith.constant 0 : i32
    return %arg0, %arg1 : i32, i32
  }
}

module attributes {stable_mosaic.version = 11 : i64} {
  func.func @_fused_conv_kernel(%arg0: i32, %arg1: i32, %arg2: i32, %arg3: memref<32x512xbf16, #tpu.memory_space<vmem>>, %arg4: memref<512x128xbf16, #tpu.memory_space<vmem>>, %arg5: memref<1x128xf32, #tpu.memory_space<vmem>>, %arg6: memref<32x128xf32, #tpu.memory_space<vmem>>, %arg7: memref<32x128xf32, #tpu.memory_space<vmem>>) attributes {dimension_semantics = [#tpu.dimension_semantics<parallel>, #tpu.dimension_semantics<parallel>, #tpu.dimension_semantics<arbitrary>], iteration_bounds = array<i64: 1, 1, 2>, scalar_prefetch = 0 : i64, scratch_operands = 1 : i64, tpu.core_type = #tpu.core_type<tc>, window_params = [{transform_indices = @transform_0, window_bounds = array<i64: 32, 512>}, {transform_indices = @transform_1, window_bounds = array<i64: 512, 128>}, {transform_indices = @transform_2, window_bounds = array<i64: 1, 128>}, {transform_indices = @transform_3, window_bounds = array<i64: 32, 128>}]} {
    %c0_i32 = arith.constant 0 : i32
    %0 = arith.cmpi eq, %arg2, %c0_i32 : i32
    %1 = arith.extui %0 : i1 to i32
    %c0_i32_0 = arith.constant 0 : i32
    %2 = arith.cmpi ne, %1, %c0_i32_0 : i32
    scf.if %2 {
      %cst_9 = arith.constant 0.000000e+00 : f32
      %12 = vector.broadcast %cst_9 : f32 to vector<32x128xf32>
      %c0_10 = arith.constant 0 : index
      %c0_11 = arith.constant 0 : index
      %13 = vector.load %arg7[%c0_10, %c0_11] : memref<32x128xf32, #tpu.memory_space<vmem>>, vector<32x128xf32>
      tpu.vector_store %arg7[%c0_10, %c0_11], %12 {strides = array<i32>} : memref<32x128xf32, #tpu.memory_space<vmem>>, vector<32x128xf32>,
    } else {
    }
    %c0 = arith.constant 0 : index
    %c0_1 = arith.constant 0 : index
    %3 = vector.load %arg7[%c0, %c0_1] : memref<32x128xf32, #tpu.memory_space<vmem>>, vector<32x128xf32>
    %c0_2 = arith.constant 0 : index
    %c0_3 = arith.constant 0 : index
    %4 = vector.load %arg3[%c0_2, %c0_3] : memref<32x512xbf16, #tpu.memory_space<vmem>>, vector<32x512xbf16>
    %c0_4 = arith.constant 0 : index
    %c0_5 = arith.constant 0 : index
    %5 = vector.load %arg4[%c0_4, %c0_5] : memref<512x128xbf16, #tpu.memory_space<vmem>>, vector<512x128xbf16>
    %cst = arith.constant dense<0.000000e+00> : vector<32x128xf32>
    %6 = tpu.matmul %4, %5, %cst {dimension_numbers = #tpu.dot_dimension_numbers<[1], [0], [0], [1], [0, 0, 1, 1], [], []>} : vector<32x512xbf16>, vector<512x128xbf16>, vector<32x128xf32> -> vector<32x128xf32>
    %7 = arith.addf %3, %6 : vector<32x128xf32>
    %c0_6 = arith.constant 0 : index
    %c0_7 = arith.constant 0 : index
    %8 = vector.load %arg7[%c0_6, %c0_7] : memref<32x128xf32, #tpu.memory_space<vmem>>, vector<32x128xf32>
    tpu.vector_store %arg7[%c0_6, %c0_7], %7 {strides = array<i32>} : memref<32x128xf32, #tpu.memory_space<vmem>>, vector<32x128xf32>,
    %c1_i32 = arith.constant 1 : i32
    %9 = arith.cmpi eq, %arg2, %c1_i32 : i32
    %10 = arith.extui %9 : i1 to i32
    %c0_i32_8 = arith.constant 0 : i32
    %11 = arith.cmpi ne, %10, %c0_i32_8 : i32
    scf.if %11 {
      %c0_9 = arith.constant 0 : index
      %c0_10 = arith.constant 0 : index
      %12 = vector.load %arg7[%c0_9, %c0_10] : memref<32x128xf32, #tpu.memory_space<vmem>>, vector<32x128xf32>
      %c0_11 = arith.constant 0 : index
      %c0_12 = arith.constant 0 : index
      %13 = vector.load %arg5[%c0_11, %c0_12] : memref<1x128xf32, #tpu.memory_space<vmem>>, vector<1x128xf32>
      %14 = vector.broadcast %13 : vector<1x128xf32> to vector<32x128xf32>
      %15 = arith.addf %12, %14 : vector<32x128xf32>
      %cst_13 = arith.constant 0.000000e+00 : f32
      %16 = vector.broadcast %cst_13 : f32 to vector<32x128xf32>
      %17 = arith.cmpf oge, %15, %16 : vector<32x128xf32>
      %cst_14 = arith.constant 2.000000e-01 : f32
      %18 = vector.broadcast %cst_14 : f32 to vector<32x128xf32>
      %19 = arith.mulf %18, %15 : vector<32x128xf32>
      %20 = arith.select %17, %15, %19 : vector<32x128xi1>, vector<32x128xf32>
      %c0_15 = arith.constant 0 : index
      %c0_16 = arith.constant 0 : index
      %21 = vector.load %arg6[%c0_15, %c0_16] : memref<32x128xf32, #tpu.memory_space<vmem>>, vector<32x128xf32>
      tpu.vector_store %arg6[%c0_15, %c0_16], %20 {strides = array<i32>} : memref<32x128xf32, #tpu.memory_space<vmem>>, vector<32x128xf32>,
    } else {
    }
    return
  }
  func.func @transform_0(%arg0: i32, %arg1: i32, %arg2: i32) -> (i32, i32) {
    %c0_i32 = arith.constant 0 : i32
    return %arg0, %arg2 : i32, i32
  }
  func.func @transform_1(%arg0: i32, %arg1: i32, %arg2: i32) -> (i32, i32) {
    %c0_i32 = arith.constant 0 : i32
    return %arg2, %arg1 : i32, i32
  }
  func.func @transform_2(%arg0: i32, %arg1: i32, %arg2: i32) -> (i32, i32) {
    %c0_i32 = arith.constant 0 : i32
    %c0_i32_0 = arith.constant 0 : i32
    return %c0_i32, %arg1 : i32, i32
  }
  func.func @transform_3(%arg0: i32, %arg1: i32, %arg2: i32) -> (i32, i32) {
    %c0_i32 = arith.constant 0 : i32
    return %arg0, %arg1 : i32, i32
  }
}

module attributes {stable_mosaic.version = 11 : i64} {
  func.func @_fused_conv_kernel(%arg0: i32, %arg1: i32, %arg2: i32, %arg3: memref<176x128xbf16, #tpu.memory_space<vmem>>, %arg4: memref<128x128xbf16, #tpu.memory_space<vmem>>, %arg5: memref<1x128xf32, #tpu.memory_space<vmem>>, %arg6: memref<176x128xf32, #tpu.memory_space<vmem>>, %arg7: memref<176x128xf32, #tpu.memory_space<vmem>>) attributes {dimension_semantics = [#tpu.dimension_semantics<parallel>, #tpu.dimension_semantics<parallel>, #tpu.dimension_semantics<arbitrary>], iteration_bounds = array<i64: 1, 1, 1>, scalar_prefetch = 0 : i64, scratch_operands = 1 : i64, tpu.core_type = #tpu.core_type<tc>, window_params = [{transform_indices = @transform_0, window_bounds = array<i64: 176, 128>}, {transform_indices = @transform_1, window_bounds = array<i64: 128, 128>}, {transform_indices = @transform_2, window_bounds = array<i64: 1, 128>}, {transform_indices = @transform_3, window_bounds = array<i64: 176, 128>}]} {
    %c0_i32 = arith.constant 0 : i32
    %0 = arith.cmpi eq, %arg2, %c0_i32 : i32
    %1 = arith.extui %0 : i1 to i32
    %c0_i32_0 = arith.constant 0 : i32
    %2 = arith.cmpi ne, %1, %c0_i32_0 : i32
    scf.if %2 {
      %cst_10 = arith.constant 0.000000e+00 : f32
      %12 = vector.broadcast %cst_10 : f32 to vector<176x128xf32>
      %c0_11 = arith.constant 0 : index
      %c0_12 = arith.constant 0 : index
      %13 = vector.load %arg7[%c0_11, %c0_12] : memref<176x128xf32, #tpu.memory_space<vmem>>, vector<176x128xf32>
      tpu.vector_store %arg7[%c0_11, %c0_12], %12 {strides = array<i32>} : memref<176x128xf32, #tpu.memory_space<vmem>>, vector<176x128xf32>,
    } else {
    }
    %c0 = arith.constant 0 : index
    %c0_1 = arith.constant 0 : index
    %3 = vector.load %arg7[%c0, %c0_1] : memref<176x128xf32, #tpu.memory_space<vmem>>, vector<176x128xf32>
    %c0_2 = arith.constant 0 : index
    %c0_3 = arith.constant 0 : index
    %4 = vector.load %arg3[%c0_2, %c0_3] : memref<176x128xbf16, #tpu.memory_space<vmem>>, vector<176x128xbf16>
    %c0_4 = arith.constant 0 : index
    %c0_5 = arith.constant 0 : index
    %5 = vector.load %arg4[%c0_4, %c0_5] : memref<128x128xbf16, #tpu.memory_space<vmem>>, vector<128x128xbf16>
    %cst = arith.constant dense<0.000000e+00> : vector<176x128xf32>
    %6 = tpu.matmul %4, %5, %cst {dimension_numbers = #tpu.dot_dimension_numbers<[1], [0], [0], [1], [0, 0, 1, 1], [], []>} : vector<176x128xbf16>, vector<128x128xbf16>, vector<176x128xf32> -> vector<176x128xf32>
    %7 = arith.addf %3, %6 : vector<176x128xf32>
    %c0_6 = arith.constant 0 : index
    %c0_7 = arith.constant 0 : index
    %8 = vector.load %arg7[%c0_6, %c0_7] : memref<176x128xf32, #tpu.memory_space<vmem>>, vector<176x128xf32>
    tpu.vector_store %arg7[%c0_6, %c0_7], %7 {strides = array<i32>} : memref<176x128xf32, #tpu.memory_space<vmem>>, vector<176x128xf32>,
    %c0_i32_8 = arith.constant 0 : i32
    %9 = arith.cmpi eq, %arg2, %c0_i32_8 : i32
    %10 = arith.extui %9 : i1 to i32
    %c0_i32_9 = arith.constant 0 : i32
    %11 = arith.cmpi ne, %10, %c0_i32_9 : i32
    scf.if %11 {
      %c0_10 = arith.constant 0 : index
      %c0_11 = arith.constant 0 : index
      %12 = vector.load %arg7[%c0_10, %c0_11] : memref<176x128xf32, #tpu.memory_space<vmem>>, vector<176x128xf32>
      %c0_12 = arith.constant 0 : index
      %c0_13 = arith.constant 0 : index
      %13 = vector.load %arg5[%c0_12, %c0_13] : memref<1x128xf32, #tpu.memory_space<vmem>>, vector<1x128xf32>
      %14 = vector.broadcast %13 : vector<1x128xf32> to vector<176x128xf32>
      %15 = arith.addf %12, %14 : vector<176x128xf32>
      %cst_14 = arith.constant 0.000000e+00 : f32
      %16 = vector.broadcast %cst_14 : f32 to vector<176x128xf32>
      %17 = arith.cmpf oge, %15, %16 : vector<176x128xf32>
      %cst_15 = arith.constant 2.000000e-01 : f32
      %18 = vector.broadcast %cst_15 : f32 to vector<176x128xf32>
      %19 = arith.mulf %18, %15 : vector<176x128xf32>
      %20 = arith.select %17, %15, %19 : vector<176x128xi1>, vector<176x128xf32>
      %c0_16 = arith.constant 0 : index
      %c0_17 = arith.constant 0 : index
      %21 = vector.load %arg6[%c0_16, %c0_17] : memref<176x128xf32, #tpu.memory_space<vmem>>, vector<176x128xf32>
      tpu.vector_store %arg6[%c0_16, %c0_17], %20 {strides = array<i32>} : memref<176x128xf32, #tpu.memory_space<vmem>>, vector<176x128xf32>,
    } else {
    }
    return
  }
  func.func @transform_0(%arg0: i32, %arg1: i32, %arg2: i32) -> (i32, i32) {
    %c0_i32 = arith.constant 0 : i32
    return %arg0, %arg2 : i32, i32
  }
  func.func @transform_1(%arg0: i32, %arg1: i32, %arg2: i32) -> (i32, i32) {
    %c0_i32 = arith.constant 0 : i32
    return %arg2, %arg1 : i32, i32
  }
  func.func @transform_2(%arg0: i32, %arg1: i32, %arg2: i32) -> (i32, i32) {
    %c0_i32 = arith.constant 0 : i32
    %c0_i32_0 = arith.constant 0 : i32
    return %c0_i32, %arg1 : i32, i32
  }
  func.func @transform_3(%arg0: i32, %arg1: i32, %arg2: i32) -> (i32, i32) {
    %c0_i32 = arith.constant 0 : i32
    return %arg0, %arg1 : i32, i32
  }
}

module attributes {stable_mosaic.version = 11 : i64} {
  func.func @_fused_conv_kernel(%arg0: i32, %arg1: i32, %arg2: i32, %arg3: memref<64x512xbf16, #tpu.memory_space<vmem>>, %arg4: memref<512x128xbf16, #tpu.memory_space<vmem>>, %arg5: memref<1x128xf32, #tpu.memory_space<vmem>>, %arg6: memref<64x128xf32, #tpu.memory_space<vmem>>, %arg7: memref<64x128xf32, #tpu.memory_space<vmem>>) attributes {dimension_semantics = [#tpu.dimension_semantics<parallel>, #tpu.dimension_semantics<parallel>, #tpu.dimension_semantics<arbitrary>], iteration_bounds = array<i64: 1, 1, 2>, scalar_prefetch = 0 : i64, scratch_operands = 1 : i64, tpu.core_type = #tpu.core_type<tc>, window_params = [{transform_indices = @transform_0, window_bounds = array<i64: 64, 512>}, {transform_indices = @transform_1, window_bounds = array<i64: 512, 128>}, {transform_indices = @transform_2, window_bounds = array<i64: 1, 128>}, {transform_indices = @transform_3, window_bounds = array<i64: 64, 128>}]} {
    %c0_i32 = arith.constant 0 : i32
    %0 = arith.cmpi eq, %arg2, %c0_i32 : i32
    %1 = arith.extui %0 : i1 to i32
    %c0_i32_0 = arith.constant 0 : i32
    %2 = arith.cmpi ne, %1, %c0_i32_0 : i32
    scf.if %2 {
      %cst_9 = arith.constant 0.000000e+00 : f32
      %12 = vector.broadcast %cst_9 : f32 to vector<64x128xf32>
      %c0_10 = arith.constant 0 : index
      %c0_11 = arith.constant 0 : index
      %13 = vector.load %arg7[%c0_10, %c0_11] : memref<64x128xf32, #tpu.memory_space<vmem>>, vector<64x128xf32>
      tpu.vector_store %arg7[%c0_10, %c0_11], %12 {strides = array<i32>} : memref<64x128xf32, #tpu.memory_space<vmem>>, vector<64x128xf32>,
    } else {
    }
    %c0 = arith.constant 0 : index
    %c0_1 = arith.constant 0 : index
    %3 = vector.load %arg7[%c0, %c0_1] : memref<64x128xf32, #tpu.memory_space<vmem>>, vector<64x128xf32>
    %c0_2 = arith.constant 0 : index
    %c0_3 = arith.constant 0 : index
    %4 = vector.load %arg3[%c0_2, %c0_3] : memref<64x512xbf16, #tpu.memory_space<vmem>>, vector<64x512xbf16>
    %c0_4 = arith.constant 0 : index
    %c0_5 = arith.constant 0 : index
    %5 = vector.load %arg4[%c0_4, %c0_5] : memref<512x128xbf16, #tpu.memory_space<vmem>>, vector<512x128xbf16>
    %cst = arith.constant dense<0.000000e+00> : vector<64x128xf32>
    %6 = tpu.matmul %4, %5, %cst {dimension_numbers = #tpu.dot_dimension_numbers<[1], [0], [0], [1], [0, 0, 1, 1], [], []>} : vector<64x512xbf16>, vector<512x128xbf16>, vector<64x128xf32> -> vector<64x128xf32>
    %7 = arith.addf %3, %6 : vector<64x128xf32>
    %c0_6 = arith.constant 0 : index
    %c0_7 = arith.constant 0 : index
    %8 = vector.load %arg7[%c0_6, %c0_7] : memref<64x128xf32, #tpu.memory_space<vmem>>, vector<64x128xf32>
    tpu.vector_store %arg7[%c0_6, %c0_7], %7 {strides = array<i32>} : memref<64x128xf32, #tpu.memory_space<vmem>>, vector<64x128xf32>,
    %c1_i32 = arith.constant 1 : i32
    %9 = arith.cmpi eq, %arg2, %c1_i32 : i32
    %10 = arith.extui %9 : i1 to i32
    %c0_i32_8 = arith.constant 0 : i32
    %11 = arith.cmpi ne, %10, %c0_i32_8 : i32
    scf.if %11 {
      %c0_9 = arith.constant 0 : index
      %c0_10 = arith.constant 0 : index
      %12 = vector.load %arg7[%c0_9, %c0_10] : memref<64x128xf32, #tpu.memory_space<vmem>>, vector<64x128xf32>
      %c0_11 = arith.constant 0 : index
      %c0_12 = arith.constant 0 : index
      %13 = vector.load %arg5[%c0_11, %c0_12] : memref<1x128xf32, #tpu.memory_space<vmem>>, vector<1x128xf32>
      %14 = vector.broadcast %13 : vector<1x128xf32> to vector<64x128xf32>
      %15 = arith.addf %12, %14 : vector<64x128xf32>
      %cst_13 = arith.constant 0.000000e+00 : f32
      %16 = vector.broadcast %cst_13 : f32 to vector<64x128xf32>
      %17 = arith.cmpf oge, %15, %16 : vector<64x128xf32>
      %cst_14 = arith.constant 2.000000e-01 : f32
      %18 = vector.broadcast %cst_14 : f32 to vector<64x128xf32>
      %19 = arith.mulf %18, %15 : vector<64x128xf32>
      %20 = arith.select %17, %15, %19 : vector<64x128xi1>, vector<64x128xf32>
      %c0_15 = arith.constant 0 : index
      %c0_16 = arith.constant 0 : index
      %21 = vector.load %arg6[%c0_15, %c0_16] : memref<64x128xf32, #tpu.memory_space<vmem>>, vector<64x128xf32>
      tpu.vector_store %arg6[%c0_15, %c0_16], %20 {strides = array<i32>} : memref<64x128xf32, #tpu.memory_space<vmem>>, vector<64x128xf32>,
    } else {
    }
    return
  }
  func.func @transform_0(%arg0: i32, %arg1: i32, %arg2: i32) -> (i32, i32) {
    %c0_i32 = arith.constant 0 : i32
    return %arg0, %arg2 : i32, i32
  }
  func.func @transform_1(%arg0: i32, %arg1: i32, %arg2: i32) -> (i32, i32) {
    %c0_i32 = arith.constant 0 : i32
    return %arg2, %arg1 : i32, i32
  }
  func.func @transform_2(%arg0: i32, %arg1: i32, %arg2: i32) -> (i32, i32) {
    %c0_i32 = arith.constant 0 : i32
    %c0_i32_0 = arith.constant 0 : i32
    return %c0_i32, %arg1 : i32, i32
  }
  func.func @transform_3(%arg0: i32, %arg1: i32, %arg2: i32) -> (i32, i32) {
    %c0_i32 = arith.constant 0 : i32
    return %arg0, %arg1 : i32, i32
  }
}

module attributes {stable_mosaic.version = 11 : i64} {
  func.func @_fused_conv_kernel(%arg0: i32, %arg1: i32, %arg2: i32, %arg3: memref<32x512xbf16, #tpu.memory_space<vmem>>, %arg4: memref<512x256xbf16, #tpu.memory_space<vmem>>, %arg5: memref<1x256xf32, #tpu.memory_space<vmem>>, %arg6: memref<32x256xf32, #tpu.memory_space<vmem>>, %arg7: memref<32x256xf32, #tpu.memory_space<vmem>>) attributes {dimension_semantics = [#tpu.dimension_semantics<parallel>, #tpu.dimension_semantics<parallel>, #tpu.dimension_semantics<arbitrary>], iteration_bounds = array<i64: 1, 1, 4>, scalar_prefetch = 0 : i64, scratch_operands = 1 : i64, tpu.core_type = #tpu.core_type<tc>, window_params = [{transform_indices = @transform_0, window_bounds = array<i64: 32, 512>}, {transform_indices = @transform_1, window_bounds = array<i64: 512, 256>}, {transform_indices = @transform_2, window_bounds = array<i64: 1, 256>}, {transform_indices = @transform_3, window_bounds = array<i64: 32, 256>}]} {
    %c0_i32 = arith.constant 0 : i32
    %0 = arith.cmpi eq, %arg2, %c0_i32 : i32
    %1 = arith.extui %0 : i1 to i32
    %c0_i32_0 = arith.constant 0 : i32
    %2 = arith.cmpi ne, %1, %c0_i32_0 : i32
    scf.if %2 {
      %cst_9 = arith.constant 0.000000e+00 : f32
      %12 = vector.broadcast %cst_9 : f32 to vector<32x256xf32>
      %c0_10 = arith.constant 0 : index
      %c0_11 = arith.constant 0 : index
      %13 = vector.load %arg7[%c0_10, %c0_11] : memref<32x256xf32, #tpu.memory_space<vmem>>, vector<32x256xf32>
      tpu.vector_store %arg7[%c0_10, %c0_11], %12 {strides = array<i32>} : memref<32x256xf32, #tpu.memory_space<vmem>>, vector<32x256xf32>,
    } else {
    }
    %c0 = arith.constant 0 : index
    %c0_1 = arith.constant 0 : index
    %3 = vector.load %arg7[%c0, %c0_1] : memref<32x256xf32, #tpu.memory_space<vmem>>, vector<32x256xf32>
    %c0_2 = arith.constant 0 : index
    %c0_3 = arith.constant 0 : index
    %4 = vector.load %arg3[%c0_2, %c0_3] : memref<32x512xbf16, #tpu.memory_space<vmem>>, vector<32x512xbf16>
    %c0_4 = arith.constant 0 : index
    %c0_5 = arith.constant 0 : index
    %5 = vector.load %arg4[%c0_4, %c0_5] : memref<512x256xbf16, #tpu.memory_space<vmem>>, vector<512x256xbf16>
    %cst = arith.constant dense<0.000000e+00> : vector<32x256xf32>
    %6 = tpu.matmul %4, %5, %cst {dimension_numbers = #tpu.dot_dimension_numbers<[1], [0], [0], [1], [0, 0, 1, 1], [], []>} : vector<32x512xbf16>, vector<512x256xbf16>, vector<32x256xf32> -> vector<32x256xf32>
    %7 = arith.addf %3, %6 : vector<32x256xf32>
    %c0_6 = arith.constant 0 : index
    %c0_7 = arith.constant 0 : index
    %8 = vector.load %arg7[%c0_6, %c0_7] : memref<32x256xf32, #tpu.memory_space<vmem>>, vector<32x256xf32>
    tpu.vector_store %arg7[%c0_6, %c0_7], %7 {strides = array<i32>} : memref<32x256xf32, #tpu.memory_space<vmem>>, vector<32x256xf32>,
    %c3_i32 = arith.constant 3 : i32
    %9 = arith.cmpi eq, %arg2, %c3_i32 : i32
    %10 = arith.extui %9 : i1 to i32
    %c0_i32_8 = arith.constant 0 : i32
    %11 = arith.cmpi ne, %10, %c0_i32_8 : i32
    scf.if %11 {
      %c0_9 = arith.constant 0 : index
      %c0_10 = arith.constant 0 : index
      %12 = vector.load %arg7[%c0_9, %c0_10] : memref<32x256xf32, #tpu.memory_space<vmem>>, vector<32x256xf32>
      %c0_11 = arith.constant 0 : index
      %c0_12 = arith.constant 0 : index
      %13 = vector.load %arg5[%c0_11, %c0_12] : memref<1x256xf32, #tpu.memory_space<vmem>>, vector<1x256xf32>
      %14 = vector.broadcast %13 : vector<1x256xf32> to vector<32x256xf32>
      %15 = arith.addf %12, %14 : vector<32x256xf32>
      %cst_13 = arith.constant 0.000000e+00 : f32
      %16 = vector.broadcast %cst_13 : f32 to vector<32x256xf32>
      %17 = arith.cmpf oge, %15, %16 : vector<32x256xf32>
      %cst_14 = arith.constant 2.000000e-01 : f32
      %18 = vector.broadcast %cst_14 : f32 to vector<32x256xf32>
      %19 = arith.mulf %18, %15 : vector<32x256xf32>
      %20 = arith.select %17, %15, %19 : vector<32x256xi1>, vector<32x256xf32>
      %c0_15 = arith.constant 0 : index
      %c0_16 = arith.constant 0 : index
      %21 = vector.load %arg6[%c0_15, %c0_16] : memref<32x256xf32, #tpu.memory_space<vmem>>, vector<32x256xf32>
      tpu.vector_store %arg6[%c0_15, %c0_16], %20 {strides = array<i32>} : memref<32x256xf32, #tpu.memory_space<vmem>>, vector<32x256xf32>,
    } else {
    }
    return
  }
  func.func @transform_0(%arg0: i32, %arg1: i32, %arg2: i32) -> (i32, i32) {
    %c0_i32 = arith.constant 0 : i32
    return %arg0, %arg2 : i32, i32
  }
  func.func @transform_1(%arg0: i32, %arg1: i32, %arg2: i32) -> (i32, i32) {
    %c0_i32 = arith.constant 0 : i32
    return %arg2, %arg1 : i32, i32
  }
  func.func @transform_2(%arg0: i32, %arg1: i32, %arg2: i32) -> (i32, i32) {
    %c0_i32 = arith.constant 0 : i32
    %c0_i32_0 = arith.constant 0 : i32
    return %c0_i32, %arg1 : i32, i32
  }
  func.func @transform_3(%arg0: i32, %arg1: i32, %arg2: i32) -> (i32, i32) {
    %c0_i32 = arith.constant 0 : i32
    return %arg0, %arg1 : i32, i32
  }
}

module attributes {stable_mosaic.version = 11 : i64} {
  func.func @_fused_conv_kernel(%arg0: i32, %arg1: i32, %arg2: i32, %arg3: memref<64x512xbf16, #tpu.memory_space<vmem>>, %arg4: memref<512x128xbf16, #tpu.memory_space<vmem>>, %arg5: memref<1x128xf32, #tpu.memory_space<vmem>>, %arg6: memref<64x128xf32, #tpu.memory_space<vmem>>, %arg7: memref<64x128xf32, #tpu.memory_space<vmem>>) attributes {dimension_semantics = [#tpu.dimension_semantics<parallel>, #tpu.dimension_semantics<parallel>, #tpu.dimension_semantics<arbitrary>], iteration_bounds = array<i64: 1, 1, 16>, scalar_prefetch = 0 : i64, scratch_operands = 1 : i64, tpu.core_type = #tpu.core_type<tc>, window_params = [{transform_indices = @transform_0, window_bounds = array<i64: 64, 512>}, {transform_indices = @transform_1, window_bounds = array<i64: 512, 128>}, {transform_indices = @transform_2, window_bounds = array<i64: 1, 128>}, {transform_indices = @transform_3, window_bounds = array<i64: 64, 128>}]} {
    %c0_i32 = arith.constant 0 : i32
    %0 = arith.cmpi eq, %arg2, %c0_i32 : i32
    %1 = arith.extui %0 : i1 to i32
    %c0_i32_0 = arith.constant 0 : i32
    %2 = arith.cmpi ne, %1, %c0_i32_0 : i32
    scf.if %2 {
      %cst_9 = arith.constant 0.000000e+00 : f32
      %12 = vector.broadcast %cst_9 : f32 to vector<64x128xf32>
      %c0_10 = arith.constant 0 : index
      %c0_11 = arith.constant 0 : index
      %13 = vector.load %arg7[%c0_10, %c0_11] : memref<64x128xf32, #tpu.memory_space<vmem>>, vector<64x128xf32>
      tpu.vector_store %arg7[%c0_10, %c0_11], %12 {strides = array<i32>} : memref<64x128xf32, #tpu.memory_space<vmem>>, vector<64x128xf32>,
    } else {
    }
    %c0 = arith.constant 0 : index
    %c0_1 = arith.constant 0 : index
    %3 = vector.load %arg7[%c0, %c0_1] : memref<64x128xf32, #tpu.memory_space<vmem>>, vector<64x128xf32>
    %c0_2 = arith.constant 0 : index
    %c0_3 = arith.constant 0 : index
    %4 = vector.load %arg3[%c0_2, %c0_3] : memref<64x512xbf16, #tpu.memory_space<vmem>>, vector<64x512xbf16>
    %c0_4 = arith.constant 0 : index
    %c0_5 = arith.constant 0 : index
    %5 = vector.load %arg4[%c0_4, %c0_5] : memref<512x128xbf16, #tpu.memory_space<vmem>>, vector<512x128xbf16>
    %cst = arith.constant dense<0.000000e+00> : vector<64x128xf32>
    %6 = tpu.matmul %4, %5, %cst {dimension_numbers = #tpu.dot_dimension_numbers<[1], [0], [0], [1], [0, 0, 1, 1], [], []>} : vector<64x512xbf16>, vector<512x128xbf16>, vector<64x128xf32> -> vector<64x128xf32>
    %7 = arith.addf %3, %6 : vector<64x128xf32>
    %c0_6 = arith.constant 0 : index
    %c0_7 = arith.constant 0 : index
    %8 = vector.load %arg7[%c0_6, %c0_7] : memref<64x128xf32, #tpu.memory_space<vmem>>, vector<64x128xf32>
    tpu.vector_store %arg7[%c0_6, %c0_7], %7 {strides = array<i32>} : memref<64x128xf32, #tpu.memory_space<vmem>>, vector<64x128xf32>,
    %c15_i32 = arith.constant 15 : i32
    %9 = arith.cmpi eq, %arg2, %c15_i32 : i32
    %10 = arith.extui %9 : i1 to i32
    %c0_i32_8 = arith.constant 0 : i32
    %11 = arith.cmpi ne, %10, %c0_i32_8 : i32
    scf.if %11 {
      %c0_9 = arith.constant 0 : index
      %c0_10 = arith.constant 0 : index
      %12 = vector.load %arg7[%c0_9, %c0_10] : memref<64x128xf32, #tpu.memory_space<vmem>>, vector<64x128xf32>
      %c0_11 = arith.constant 0 : index
      %c0_12 = arith.constant 0 : index
      %13 = vector.load %arg5[%c0_11, %c0_12] : memref<1x128xf32, #tpu.memory_space<vmem>>, vector<1x128xf32>
      %14 = vector.broadcast %13 : vector<1x128xf32> to vector<64x128xf32>
      %15 = arith.addf %12, %14 : vector<64x128xf32>
      %c0_13 = arith.constant 0 : index
      %c0_14 = arith.constant 0 : index
      %16 = vector.load %arg6[%c0_13, %c0_14] : memref<64x128xf32, #tpu.memory_space<vmem>>, vector<64x128xf32>
      tpu.vector_store %arg6[%c0_13, %c0_14], %15 {strides = array<i32>} : memref<64x128xf32, #tpu.memory_space<vmem>>, vector<64x128xf32>,
    } else {
    }
    return
  }
  func.func @transform_0(%arg0: i32, %arg1: i32, %arg2: i32) -> (i32, i32) {
    %c0_i32 = arith.constant 0 : i32
    return %arg0, %arg2 : i32, i32
  }
  func.func @transform_1(%arg0: i32, %arg1: i32, %arg2: i32) -> (i32, i32) {
    %c0_i32 = arith.constant 0 : i32
    return %arg2, %arg1 : i32, i32
  }
  func.func @transform_2(%arg0: i32, %arg1: i32, %arg2: i32) -> (i32, i32) {
    %c0_i32 = arith.constant 0 : i32
    %c0_i32_0 = arith.constant 0 : i32
    return %c0_i32, %arg1 : i32, i32
  }
  func.func @transform_3(%arg0: i32, %arg1: i32, %arg2: i32) -> (i32, i32) {
    %c0_i32 = arith.constant 0 : i32
    return %arg0, %arg1 : i32, i32
  }
}

</mosaic_0001>

<bundles_post_ra>
// kernel: _lambda_.25
= control target key start
LH: loop header
LB: loop body
LE: loop exit
PB: predicated region body
PF: predicated region fallthrough
CT: control target
= control target key end

     0   :  { %8 = vsyncpa [#allocation4], 0  ;;  %s399_s0 = inlined_call_operand.vmem [shape: bf16[32,128], index: 0, kind: input, shape index: {}]   ;;  %s400_s1 = inlined_call_operand.hbm [shape: bf16[128,128], index: 1, kind: input, shape index: {}]   ;;  %s401_s2 = inlined_call_operand.hbm [shape: f32[1,128], index: 2, kind: input, shape index: {}]   ;;  %s402_s3 = inlined_call_operand.vmem [shape: f32[32,128], index: 3, kind: output, shape index: {}]  }
   0x1   :  { %9 = vsyncpa [#allocation6], 0  ;;  %s333_s12 = smov [#allocation3]   ;;  %s285_s16 = scalar_lea.hbm %s400_s1, 1024 }
   0x2   :  { %s17_s13 = sshll.u32 %s333_s12, 4  ;;  %p286_p0 = scmp.ne.s32.totalorder %s400_s1, %s285_s16  ;;  %s18_s13 = int_to_ptr.vmem [resolvable:$true] %s17_s13 }
   0x3   :  { %p289_p1 = scmp.lt.u32.totalorder %s285_s16, %s400_s1 }
   0x5   :  { %p291_p2 = pnand %p289_p1, %p286_p0 }
   0x7   :  { %294 = shalt.err (!%p291_p2)
}
   0x8   :  { %s295_s21 = scalar_lea.vmem %s18_s13, 1024  ;;  %p300_p4 = scmp.lt.s32.totalorder %s18_s13, %s18_s13 }
   0x9   :  { %p296_p3 = scmp.ne.s32.totalorder %s18_s13, %s295_s21  ;;  %p301_p5 = scmp.lt.s32.totalorder %s295_s21, %s295_s21 }
   0xb   :  { %p302_p6 = por %p301_p5, %p300_p4 }
   0xd   :  { %p303_p7 = pnand %p302_p6, %p296_p3 }
   0xf   :  { %306 = shalt.err (!%p303_p7)
}
  0x10   :  { %s334_s22 = smov 64   ;;  %s335_s23 = smov 4  }
  0x11   :  { %23 = dma.hbm_to_vmem [thread:$0]  %s400_s1, 1024, %s18_s13, [#allocation4], %s334_s22, %s334_s22, %s335_s23  }
  0x12   :  { %s336_s26 = smov [#allocation5]   ;;  %s307_s30 = scalar_lea.hbm %s401_s2, 16 }
  0x13   :  { %s30_s27 = sshll.u32 %s336_s26, 4  ;;  %p308_p8 = scmp.ne.s32.totalorder %s401_s2, %s307_s30  ;;  %s31_s27 = int_to_ptr.vmem [resolvable:$true] %s30_s27 }
  0x14   :  { %p311_p9 = scmp.lt.u32.totalorder %s307_s30, %s401_s2 }
  0x16   :  { %p313_p10 = pnand %p311_p9, %p308_p8 }
  0x18   :  { %316 = shalt.err (!%p313_p10)
}
  0x19   :  { %s317_s8 = scalar_lea.vmem %s31_s27, 16  ;;  %s321_s1 = scalar_lea.vmem %s31_s27, 32 }
  0x1a   :  { %p318_p11 = scmp.ne.s32.totalorder %s31_s27, %s317_s8  ;;  %p322_p12 = scmp.lt.s32.totalorder %s31_s27, %s31_s27 }
  0x1b   :  { %p323_p13 = scmp.lt.s32.totalorder %s321_s1, %s317_s8 }
  0x1d   :  { %p324_p0 = por %p323_p13, %p322_p12 }
  0x1f   :  { %p325_p1 = pnand %p324_p0, %p318_p11 }
  0x21   :  { %328 = shalt.err (!%p325_p1)
}
  0x22   :  { %33 = dma.hbm_to_vmem [thread:$0]  %s401_s2, 16, %s31_s27, [#allocation6]  }
  0x23   :  { %329 = dma.done.wait [#allocation4], 1024  }
  0x24   :  { %330 = vsyncadd [#allocation4], 4294966272 }
  0x25   :  { %331 = dma.done.wait [#allocation6], 16  }
  0x26   :  { %332 = vsyncadd [#allocation6], 4294967280  ;;  %v275_v0 = vld [vmem:[#allocation3] sm:$0xff]   ;;  %v276_v1 = vld [vmem:[#allocation3 + $0x8] sm:$0xff]  }
  0x27   :  { %251 = vmatprep.subr.bf16.mxu0 %v275_v0  ;;  %v277_v2 = vld [vmem:[#allocation3 + $0x10] sm:$0xff]   ;;  %v278_v3 = vld [vmem:[#allocation3 + $0x18] sm:$0xff]   ;;  %v283_v4 = vld [vmem:[%s399_s0] sm:$0xff]  }
  0x28   :  { %252 = vmatpush3.bf16.msra.mxu0 %v275_v0  ;;  %267 = vmatprep.mubr.bf16.mxu0 %v283_v4  ;;  %v279_v5 = vld [vmem:[#allocation3 + $0x20] sm:$0xff]   ;;  %v280_v6 = vld [vmem:[#allocation3 + $0x28] sm:$0xff]   ;;  %v281_v7 = vld [vmem:[#allocation3 + $0x30] sm:$0xff]  }
  0x29   :  { %253 = vmatprep.subr.bf16.mxu0 %v276_v1  ;;  %v282_v8 = vld [vmem:[#allocation3 + $0x38] sm:$0xff]   ;;  %v284_v9 = vld [vmem:[%s399_s0 + $0x8] sm:$0xff]   ;;  %v240_v10 = vld [vmem:[#allocation5] ss:$0 sm:$0xff] }
  0x2c   :  { %254 = vmatpush3.bf16.msra.mxu0 %v276_v1 }
  0x2d   :  { %255 = vmatprep.subr.bf16.mxu0 %v277_v2 }
  0x30   :  { %256 = vmatpush3.bf16.msra.mxu0 %v277_v2 }
  0x31   :  { %257 = vmatprep.subr.bf16.mxu0 %v278_v3 }
  0x34   :  { %258 = vmatpush3.bf16.msra.mxu0 %v278_v3 }
  0x35   :  { %259 = vmatprep.subr.bf16.mxu0 %v279_v5 }
  0x38   :  { %260 = vmatpush3.bf16.msra.mxu0 %v279_v5 }
  0x39   :  { %261 = vmatprep.subr.bf16.mxu0 %v280_v6 }
  0x3c   :  { %262 = vmatpush3.bf16.msra.mxu0 %v280_v6 }
  0x3d   :  { %263 = vmatprep.subr.bf16.mxu0 %v281_v7 }
  0x40   :  { %264 = vmatpush3.bf16.msra.mxu0 %v281_v7 }
  0x41   :  { %265 = vmatprep.subr.bf16.mxu0 %v282_v8 }
  0x44   :  { %266 = vmatpush3.bf16.msra.mxu0 %v282_v8 }
  0x47   :  { %268 = vmatmul.mubr.bf16.vlgmr.msra.gmra.mrb[0].mxu0 %v284_v9 }
 0x11a   :  { %v269_v11 = vpop.f32.mrb[0].mxu0 }
 0x11b   :  { %v206_v12 = vadd.f32 %v269_v11, %v240_v10  ;;  %v167_v13 = vpop.f32.mrb[1].mxu0 }
 0x11c   :  { %v204_v14 = vadd.f32 %v240_v10, %v167_v13  ;;  %v270_v15 = vpop.f32.mrb[2].mxu0 }
 0x11d   :  { %vm210_vm0 = vcmp.ge.f32.partialorder %v206_v12, 0.0  ;;  %v214_v16 = vmul.f32 0.2, %v206_v12  ;;  %v207_v17 = vadd.f32 %v270_v15, %v240_v10  ;;  %v170_v18 = vpop.f32.mrb[3].mxu0 }
 0x11e   :  { %vm208_vm1 = vcmp.ge.f32.partialorder %v204_v14, 0.0  ;;  %v212_v19 = vmul.f32 0.2, %v204_v14  ;;  %v205_v20 = vadd.f32 %v240_v10, %v170_v18 }
 0x11f   :  { %v218_v21 = vsel %vm210_vm0, %v206_v12, %v214_v16  ;;  %vm211_vm2 = vcmp.ge.f32.partialorder %v207_v17, 0.0  ;;  %v215_v22 = vmul.f32 0.2, %v207_v17 }
 0x120   :  { %222 = vst [vmem:[%s402_s3 + $0x10] sm:$0xff] %v218_v21  ;;  %v216_v23 = vsel %vm208_vm1, %v204_v14, %v212_v19  ;;  %vm209_vm3 = vcmp.ge.f32.partialorder %v205_v20, 0.0  ;;  %v213_v24 = vmul.f32 0.2, %v205_v20 }
 0x121   :  { %220 = vst [vmem:[%s402_s3] sm:$0xff] %v216_v23  ;;  %v219_v25 = vsel %vm211_vm2, %v207_v17, %v215_v22 }
 0x122   :  { %223 = vst [vmem:[%s402_s3 + $0x18] sm:$0xff] %v219_v25  ;;  %v217_v26 = vsel %vm209_vm3, %v205_v20, %v213_v24 }
 0x123   :  { %221 = vst [vmem:[%s402_s3 + $0x8] sm:$0xff] %v217_v26 }
 0x124   :  { %228 = vsyncpa [#allocation4], 1 }
 0x125   :  { %229 = vsyncpa [#allocation6], 1 }

// kernel: _lambda_.26
= control target key start
LH: loop header
LB: loop body
LE: loop exit
PB: predicated region body
PF: predicated region fallthrough
CT: control target
= control target key end

     0   :  { %8 = vsyncpa [#allocation5], 0  ;;  %s1361_s0 = inlined_call_operand.vmem [shape: bf16[16,1024], index: 0, kind: input, shape index: {}]   ;;  %s1362_s1 = inlined_call_operand.hbm [shape: bf16[1024,128], index: 1, kind: input, shape index: {}]   ;;  %s1363_s2 = inlined_call_operand.hbm [shape: f32[1,128], index: 2, kind: input, shape index: {}]   ;;  %s1364_s3 = inlined_call_operand.vmem [shape: f32[16,128], index: 3, kind: output, shape index: {}]  }
   0x1   :  { %10 = vsyncpa [#allocation5 + $0x1], 0 }
   0x2   :  { %11 = vsyncpa [#allocation7], 0  ;;  %s1157_s12 = smov 0   ;;  %s1159_s13 = smov 0  }
   0x3   :  { %s1161_s14 = smov 0   ;;  %s1163_s15 = smov 0  }
   0x4   :  { %s1165_s16 = smov 0   ;;  %s1167_s17 = smov 0  }
   0x5 LB: > { %s815_s18 = sadd.s32 4294967295, %s1130_s17   ;;  %s29_s19 = sadd.s32 1, %s1126_s16  ;;  %s1130_s17 = sphi %s1167_s17, %s17_s17   ;;  %s1126_s16 = sphi %s1165_s16, %s1384_s16   ;;  %s1122_s15 = sphi %s1163_s15, %s1383_s15   ;;  %s1118_s14 = sphi %s1161_s14, %s1382_s14   ;;  %s1114_s13 = sphi %s1159_s13, %s1381_s13   ;;  %s1110_s12 = sphi %s1157_s12, %s1380_s12  }
   0x6   : > { %p30_p0 = scmp.ge.s32.totalorder %s29_s19, 2  ;;  %s45_s20 = sadd.s32 1, %s1118_s14 }
   0x7   : > { %p52_p1 = scmp.ne.s32.totalorder %s1118_s14, %s1114_s13  ;;  %p53_p2 = scmp.eq.s32.totalorder %s1130_s17, 0 }
   0x8   : > { %s1386_s19 = smov (%p30_p0, %s29_s19), 0  ;;  %p86_p4 = scmp.ne.s32.totalorder %s1114_s13, %s1110_s12 }
   0x9   : > { %p1193_p3 = por %p53_p2, %p52_p1  ;;  %s41_s22 = ssub.s32 %s1126_s16, %s1386_s19 }
   0xa   : > { %p1200_p5 = scmp.eq.s32.totalorder %s815_s18, 0  ;;  %p43_p6 = scmp.eq.s32.totalorder %s41_s22, 0 }
   0xb   : > { %s1370_s21 = scalar_select %p1193_p3, 1, 0 }
   0xc   : > { %s1371_s23 = scalar_select %p1200_p5, 1, 0 }
   0xd   : > { %p816_p7 = scmp.ge.s32.totalorder %s1130_s17, 1  ;;  %p1207_p8 = por %p1200_p5, %p86_p4 }
   0xe   : > { %p151_p9 = scmp.lt.s32.totalorder %s1130_s17, 3  ;;  %s1132_s27 = smov [#allocation6]  }
   0xf   : > { %s1372_s24 = scalar_select %p1207_p8, 1, 0 }
  0x10   : > { %s1213_s25 = scalar_select %p43_p6, %s1118_s14, %s45_s20  }
  0x11   : > { %p1215_p10 = pnand %p816_p7, %p151_p9  ;;  %s166_s28 = sshll.u32 %s1132_s27, 4  ;;  %s167_s28 = int_to_ptr.vmem [resolvable:$true] %s166_s28 }
  0x12   : > { %s1020_s5 = scalar_lea.hbm %s1363_s2, 16 }
  0x13   : > { %s1373_s26 = scalar_select %p1215_p10, 1, 0 }
  0x14   : > { %p924_p11 = pneg %p1215_p10  ;;  %p1021_p13 = scmp.ne.s32.totalorder %s1363_s2, %s1020_s5 }
  0x15   : > { %p1027_p4 = scmp.lt.u32.totalorder %s1020_s5, %s1363_s2 }
  0x16   : > { %p1223_p12 = pnand %p924_p11, %p1200_p5 }
  0x18   : > { %p1022_p0 = pneg %p1223_p12 }
  0x1a   : > { %p1023_p1 = pnand %p1022_p0, %p1021_p13 }
  0x1c   : > { %p1024_p2 = pneg %p1023_p1 }
  0x1e   : > { %p1029_p6 = pnand %p1027_p4, %p1024_p2 }
  0x20   : > { %1032 = shalt.err (!%p1029_p6)
}
  0x21   : > { %s1033_s10 = scalar_lea.vmem %s167_s28, 16  ;;  %s1040_s11 = scalar_lea.vmem %s167_s28, 32 }
  0x22   : > { %p1034_p7 = scmp.ne.s32.totalorder %s167_s28, %s1033_s10  ;;  %p1041_p5 = scmp.lt.s32.totalorder %s167_s28, %s167_s28 }
  0x23   : > { %p1042_p8 = scmp.lt.s32.totalorder %s1040_s11, %s1033_s10 }
  0x24   : > { %p1036_p9 = pnand %p1034_p7, %p1022_p0 }
  0x25   : > { %p1043_p10 = por %p1042_p8, %p1041_p5 }
  0x26   : > { %p1037_p11 = pneg %p1036_p9 }
  0x28   : > { %p1044_p3 = pnand %p1043_p10, %p1037_p11 }
  0x2a   : > { %1047 = shalt.err (!%p1044_p3)
}
  0x2b   : > { %927 = dma.hbm_to_vmem [thread:$0]  (!%p1223_p12), %s1363_s2, 16, %s167_s28, [#allocation7]  }
  0x2c   : > { %p818_p13 = scmp.ge.s32.totalorder %s1130_s17, 2 }
  0x2d   : > { %p1375_p1 = scmp.ne.s32.totalorder (!%p818_p13), %s1370_s21, 0 }
  0x2e   : > { %173 = sbr.rel (%p818_p13) target bundleno = 87 (0x57), region = 20 }
  0x35   : > { %176 = sbr.rel (!%p1375_p1) target bundleno = 60 (0x3c), region = 24  ;;  %s178_s20 = sand.u32 (%p1375_p1), 1, %s1118_s14  }
  0x36   : > { %s872_s22 = sshll.u32 (%p1375_p1), %s1126_s16, 4  ;;  %s819_s27 = sshll.u32 (%p1375_p1), %s178_s20, 5 }
  0x37   : > { %s186_s5 = scalar_lea.vmem (%p1375_p1), %s1361_s0, %s872_s22  ;;  %s180_s29 = scalar_lea.vmem (%p1375_p1), [#allocation3], %s819_s27 }
  0x38   : > { %v199_v0 = vld [vmem:[%s186_s5] sm:$0xff] (%p1375_p1)  ;;  %v201_v1 = vld [vmem:[%s186_s5 + $0x8] sm:$0xff] (%p1375_p1) }
  0x39   : > { %v203_v2 = vld [vmem:[%s186_s5 + $0x20] sm:$0xff] (%p1375_p1)  ;;  %200 = vst [vmem:[%s180_s29] sm:$0xff] (%p1375_p1), %v199_v0  ;;  %202 = vst [vmem:[%s180_s29 + $0x8] sm:$0xff] (%p1375_p1), %v201_v1  ;;  %v205_v3 = vld [vmem:[%s186_s5 + $0x28] sm:$0xff] (%p1375_p1) }
  0x3a   : > { %204 = vst [vmem:[%s180_s29 + $0x10] sm:$0xff] (%p1375_p1), %v203_v2  ;;  %206 = vst [vmem:[%s180_s29 + $0x18] sm:$0xff] (%p1375_p1), %v205_v3 }
  0x3c PF: > { %s213_s28 = sand.u32 1, %s1118_s14   ;;  %s873_s6 = sshll.u32 %s1126_s16, 12 }
  0x3d   : > { %s822_s7 = sshll.u32 %s213_s28, 8  ;;  %s1256_s10 = scalar_lea.hbm %s1362_s1, %s873_s6 }
  0x3e   : > { %s217_s11 = scalar_lea.vmem [#allocation4], %s822_s7  ;;  %s1260_s18 = scalar_lea.sflag [#allocation5], %s213_s28 }
  0x3f   : > { %s225_s12 = sshll.u32 %s217_s11, 4  ;;  %s1048_s20 = scalar_lea.hbm %s1256_s10, 4096  ;;  %s1258_s12 = int_to_ptr.vmem [resolvable:$true] %s225_s12 }
  0x40   : > { %p1049_p3 = scmp.ne.s32.totalorder %s1256_s10, %s1048_s20  ;;  %p1376_p5 = scmp.ne.s32.totalorder %s1370_s21, 0 }
  0x41   : > { %s1052_s30 = scalar_lea.hbm %s1362_s1, 8192  ;;  %p1053_p12 = scmp.lt.u32.totalorder %s1256_s10, %s1362_s1 }
  0x42   : > { %p1050_p8 = pnand %p1049_p3, %p1376_p5  ;;  %p1054_p0 = scmp.lt.u32.totalorder %s1052_s30, %s1048_s20 }
  0x43   : > { %p1056_p4 = scmp.lt.u32.totalorder %s1048_s20, %s1256_s10 }
  0x44   : > { %p1051_p10 = pneg %p1050_p8  ;;  %p1055_p2 = por %p1054_p0, %p1053_p12 }
  0x46   : > { %p1057_p6 = por %p1056_p4, %p1055_p2 }
  0x48   : > { %p1058_p7 = pnand %p1057_p6, %p1051_p10 }
  0x4a   : > { %1061 = shalt.err (!%p1058_p7)
}
  0x4b   : > { %s1062_s29 = scalar_lea.vmem %s1258_s12, 4096  ;;  %s1133_s28 = smov [#allocation4]  }
  0x4c   : > { %p1063_p9 = scmp.ne.s32.totalorder %s1258_s12, %s1062_s29  ;;  %s1066_s6 = sshll.u32 %s1133_s28, 4  ;;  %s1067_s6 = int_to_ptr.vmem [resolvable:$false] %s1066_s6 }
  0x4d   : > { %s1068_s7 = scalar_lea.vmem %s1067_s6, 8192  ;;  %p1069_p1 = scmp.lt.s32.totalorder %s1258_s12, %s1067_s6 }
  0x4e   : > { %p1064_p11 = pnand %p1063_p9, %p1376_p5  ;;  %p1070_p3 = scmp.lt.s32.totalorder %s1068_s7, %s1062_s29 }
  0x50   : > { %p1065_p13 = pneg %p1064_p11  ;;  %p1071_p8 = por %p1070_p3, %p1069_p1 }
  0x52   : > { %p1072_p12 = pnand %p1071_p8, %p1065_p13 }
  0x54   : > { %1075 = shalt.err (!%p1072_p12)
}
  0x55   : > { %s1134_s8 = smov 64   ;;  %s1135_s9 = smov 4  }
  0x56   : > { %920 = dma.hbm_to_vmem [thread:$0]  (%p1376_p5), %s1256_s10, 4096, %s1258_s12, %s1260_s18, %s1134_s8, %s1134_s8, %s1135_s9  }
  0x57 PF: > { %p1377_p10 = scmp.ne.s32.totalorder %s1373_s26, 0 }
  0x58   : > { %s240_s11 = sand.u32 (!%p1377_p10), 1, %s1114_s13   ;;  %p1378_p0 = scmp.ne.s32.totalorder (!%p1377_p10), %s1372_s24, 0 }
  0x59   : > { %237 = sbr.rel (%p1377_p10) target bundleno = 379 (0x17b), region = 51  ;;  %s826_s20 = sshll.u32 (!%p1377_p10), %s240_s11, 5 }
  0x5a   : > { %s827_s22 = sshll.u32 (!%p1377_p10), %s240_s11, 8  ;;  %s1287_s27 = scalar_lea.vmem (!%p1377_p10), [#allocation3], %s826_s20 }
  0x5b   : > { %s247_s30 = scalar_lea.sflag (!%p1377_p10), [#allocation5], %s240_s11  ;;  %s1289_s4 = scalar_lea.vmem (!%p1377_p10), [#allocation4], %s827_s22 }
  0x60   : > { %1101 = dma.done.wait (%p1378_p0), %s247_s30, 4096  }
  0x61   : > { %1103 = vsyncadd (%p1378_p0), %s247_s30, 4294963200  ;;  %p1379_p5 = scmp.ne.s32.totalorder %s1371_s23, 0 }
  0x63   : > { %1105 = dma.done.wait (%p1379_p5), [#allocation7], 16  }
  0x64   : > { %1107 = vsyncadd (%p1379_p5), [#allocation7], 4294967280  ;;  %p829_p2 = scmp.ne.s32.totalorder %s1122_s15, 0 }
  0x65   : > { %v1136_v4 = vmov (!%p829_p2), 0.0  }
  0x66   : > { %300 = sbr.rel (%p829_p2) target bundleno = 109 (0x6d), region = 67  ;;  %301 = vst [vmem:[#allocation2] sm:$0xff] (!%p829_p2), %v1136_v4  ;;  %302 = vst [vmem:[#allocation2 + $0x8] sm:$0xff] (!%p829_p2), %v1136_v4 }
  0x6d PF: > { %v982_v5 = vld [vmem:[%s1289_s4 + $0x40] sm:$0xff]   ;;  %v986_v9 = vld [vmem:[%s1289_s4 + $0x48] sm:$0xff]   ;;  %v990_v13 = vld [vmem:[%s1289_s4 + $0x50] sm:$0xff]   ;;  %p866_p4 = scmp.ne.s32.totalorder %s1122_s15, 1 }
  0x6e   : > { %v983_v6 = vld [vmem:[%s1289_s4 + $0xc0] sm:$0xff]   ;;  %874 = vmatprep.subr.bf16.mxu0 %v982_v5  ;;  %v987_v10 = vld [vmem:[%s1289_s4 + $0xc8] sm:$0xff]   ;;  %v991_v14 = vld [vmem:[%s1289_s4 + $0xd0] sm:$0xff]  }
  0x6f   : > { %v984_v7 = vld [vmem:[%s1289_s4] sm:$0xff]   ;;  %896 = vmatprep.subr.bf16.mxu1 %v983_v6  ;;  %v988_v11 = vld [vmem:[%s1289_s4 + $0x8] sm:$0xff]   ;;  %v992_v15 = vld [vmem:[%s1289_s4 + $0x10] sm:$0xff]  }
  0x70   : > { %v985_v8 = vld [vmem:[%s1289_s4 + $0x80] sm:$0xff]   ;;  %875 = vmatpush3.bf16.msra.mxu0 %v984_v7  ;;  %v989_v12 = vld [vmem:[%s1289_s4 + $0x88] sm:$0xff]   ;;  %v993_v16 = vld [vmem:[%s1289_s4 + $0x90] sm:$0xff]  }
  0x71   : > { %897 = vmatpush3.bf16.msra.mxu1 %v985_v8  ;;  %876 = vmatprep.subr.bf16.mxu0 %v986_v9  ;;  %v994_v17 = vld [vmem:[%s1289_s4 + $0x58] sm:$0xff]   ;;  %v998_v21 = vld [vmem:[%s1289_s4 + $0x60] sm:$0xff]   ;;  %v1002_v25 = vld [vmem:[%s1289_s4 + $0x68] sm:$0xff]  }
  0x72   : > { %898 = vmatprep.subr.bf16.mxu1 %v987_v10  ;;  %v995_v18 = vld [vmem:[%s1289_s4 + $0xd8] sm:$0xff]   ;;  %v999_v22 = vld [vmem:[%s1289_s4 + $0xe0] sm:$0xff]   ;;  %v1003_v26 = vld [vmem:[%s1289_s4 + $0xe8] sm:$0xff]  }
  0x73   : > { %v996_v19 = vld [vmem:[%s1289_s4 + $0x18] sm:$0xff]   ;;  %v1000_v23 = vld [vmem:[%s1289_s4 + $0x20] sm:$0xff]   ;;  %v1004_v27 = vld [vmem:[%s1289_s4 + $0x28] sm:$0xff]  }
  0x74   : > { %877 = vmatpush3.bf16.msra.mxu0 %v988_v11  ;;  %v997_v20 = vld [vmem:[%s1289_s4 + $0x98] sm:$0xff]   ;;  %v1001_v24 = vld [vmem:[%s1289_s4 + $0xa0] sm:$0xff]   ;;  %v1005_v28 = vld [vmem:[%s1289_s4 + $0xa8] sm:$0xff]  }
  0x75   : > { %899 = vmatpush3.bf16.msra.mxu1 %v989_v12  ;;  %878 = vmatprep.subr.bf16.mxu0 %v990_v13  ;;  %v1006_v29 = vld [vmem:[%s1289_s4 + $0x70] sm:$0xff]   ;;  %v1010_v33 = vld [vmem:[%s1289_s4 + $0x78] sm:$0xff]   ;;  %v867_v60 = vld [vmem:[#allocation6] ss:$0 sm:$0xff] (!%p866_p4) }
  0x76   : > { %900 = vmatprep.subr.bf16.mxu1 %v991_v14  ;;  %v1007_v30 = vld [vmem:[%s1289_s4 + $0xf0] sm:$0xff]   ;;  %v1011_v34 = vld [vmem:[%s1289_s4 + $0xf8] sm:$0xff]  }
  0x77   : > { %v1008_v31 = vld [vmem:[%s1289_s4 + $0x30] sm:$0xff]   ;;  %v1012_v35 = vld [vmem:[%s1289_s4 + $0x38] sm:$0xff]  }
  0x78   : > { %879 = vmatpush3.bf16.msra.mxu0 %v992_v15  ;;  %v1009_v32 = vld [vmem:[%s1289_s4 + $0xb0] sm:$0xff]   ;;  %v1013_v36 = vld [vmem:[%s1289_s4 + $0xb8] sm:$0xff]  }
  0x79   : > { %901 = vmatpush3.bf16.msra.mxu1 %v993_v16  ;;  %880 = vmatprep.subr.bf16.mxu0 %v994_v17  ;;  %v1014_v37 = vld [vmem:[%s1287_s27] ss:$16 sps:$4 sm:$0xff]   ;;  %v1016_v38 = vld [vmem:[%s1287_s27 + $0x4] ss:$16 sps:$4 sm:$0xff]   ;;  %v1017_v39 = vld [vmem:[%s1287_s27 + $0x8] ss:$16 sps:$4 sm:$0xff]  }
  0x7a   : > { %902 = vmatprep.subr.bf16.mxu1 %v995_v18  ;;  %v1019_v40 = vld [vmem:[%s1287_s27 + $0xc] ss:$16 sps:$4 sm:$0xff]   ;;  %617 = vmatprep.mubr.bf16.mxu0 %v1016_v38  ;;  %v303_v50 = vld [vmem:[#allocation2] sm:$0xff] }
  0x7b   : > { %658 = vmatprep.mubr.bf16.mxu1 %v1019_v40  ;;  %v304_v55 = vld [vmem:[#allocation2 + $0x8] sm:$0xff] }
  0x7c   : > { %881 = vmatpush3.bf16.msra.mxu0 %v996_v19 }
  0x7d   : > { %903 = vmatpush3.bf16.msra.mxu1 %v997_v20  ;;  %882 = vmatprep.subr.bf16.mxu0 %v998_v21 }
  0x7e   : > { %904 = vmatprep.subr.bf16.mxu1 %v999_v22 }
  0x80   : > { %883 = vmatpush3.bf16.msra.mxu0 %v1000_v23 }
  0x81   : > { %905 = vmatpush3.bf16.msra.mxu1 %v1001_v24  ;;  %884 = vmatprep.subr.bf16.mxu0 %v1002_v25 }
  0x82   : > { %906 = vmatprep.subr.bf16.mxu1 %v1003_v26 }
  0x84   : > { %885 = vmatpush3.bf16.msra.mxu0 %v1004_v27 }
  0x85   : > { %907 = vmatpush3.bf16.msra.mxu1 %v1005_v28  ;;  %886 = vmatprep.subr.bf16.mxu0 %v1006_v29 }
  0x86   : > { %908 = vmatprep.subr.bf16.mxu1 %v1007_v30 }
  0x88   : > { %887 = vmatpush3.bf16.msra.mxu0 %v1008_v31 }
  0x89   : > { %909 = vmatpush3.bf16.msra.mxu1 %v1009_v32  ;;  %888 = vmatprep.subr.bf16.mxu0 %v1010_v33 }
  0x8a   : > { %910 = vmatprep.subr.bf16.mxu1 %v1011_v34 }
  0x8c   : > { %889 = vmatpush3.bf16.msra.mxu0 %v1012_v35 }
  0x8d   : > { %911 = vmatpush3.bf16.msra.mxu1 %v1013_v36 }
  0x8f   : > { %618 = vmatmul.mubr.bf16.vlgmr.msra.gmra.mrb[0].mxu0 %v1014_v37 }
  0x90   : > { %659 = vmatmul.mubr.bf16.vlgmr.msra.gmra.mrb[0].mxu1 %v1017_v39 }
 0x162   : > { %v890_v41 = vpop.f32.mrb[0].mxu0 }
 0x163   : > { %v912_v42 = vpop.f32.mrb[0].mxu1  ;;  %v891_v43 = vpop.f32.mrb[1].mxu0 }
 0x164   : > { %v892_v44 = vadd.f32 %v891_v43, %v890_v41  ;;  %v913_v45 = vpop.f32.mrb[1].mxu1  ;;  %v893_v46 = vpop.f32.mrb[2].mxu0 }
 0x165   : > { %v914_v47 = vadd.f32 %v913_v45, %v912_v42  ;;  %v915_v48 = vpop.f32.mrb[2].mxu1  ;;  %v894_v49 = vpop.f32.mrb[3].mxu0 }
 0x166   : > { %v895_v51 = vadd.f32 %v894_v49, %v893_v46  ;;  %v916_v52 = vpop.f32.mrb[3].mxu1 }
 0x167   : > { %v661_v53 = vadd.f32 %v914_v47, %v892_v44  ;;  %v917_v54 = vadd.f32 %v916_v52, %v915_v48  ;;  %674 = sbr.rel (%p866_p4) target bundleno = 379 (0x17b), region = 71 }
 0x169   : > { %v667_v56 = vadd.f32 %v661_v53, %v303_v50  ;;  %v664_v57 = vadd.f32 %v917_v54, %v895_v51 }
 0x16b   : > { %669 = vst [vmem:[#allocation2] sm:$0xff] %v667_v56  ;;  %v668_v58 = vadd.f32 %v664_v57, %v304_v55 }
 0x16d   : > { %670 = vst [vmem:[#allocation2 + $0x8] sm:$0xff] %v668_v58 }
 0x172   : > { %v675_v59 = vld [vmem:[#allocation2] sm:$0xff] }
 0x173   : > { %v684_v62 = vadd.f32 %v867_v60, %v675_v59 }
 0x174   : > { %v676_v61 = vld [vmem:[#allocation2 + $0x8] sm:$0xff] }
 0x175   : > { %v685_v63 = vadd.f32 %v867_v60, %v676_v61  ;;  %vm686_vm0 = vcmp.ge.f32.partialorder %v684_v62, 0.0  ;;  %v688_v0 = vmul.f32 0.2, %v684_v62 }
 0x177   : > { %vm687_vm1 = vcmp.ge.f32.partialorder %v685_v63, 0.0  ;;  %v689_v1 = vmul.f32 0.2, %v685_v63  ;;  %v690_v2 = vsel %vm686_vm0, %v684_v62, %v688_v0 }
 0x178   : > { %692 = vst [vmem:[%s1364_s3] sm:$0xff] %v690_v2 }
 0x179   : > { %v691_v3 = vsel %vm687_vm1, %v685_v63, %v689_v1 }
 0x17a   : > { %693 = vst [vmem:[%s1364_s3 + $0x8] sm:$0xff] %v691_v3 }
 0x17b PF: > { %s17_s17 = sadd.s32 1, %s1130_s17   ;;  %s1380_s12 = smov %s1114_s13 }
 0x17c   : > { %p14_p6 = scmp.ge.s32.totalorder %s17_s17, 4   ;;  %s1381_s13 = smov %s1118_s14 }
 0x17d   : > { %s1382_s14 = smov %s1213_s25  ;;  %s1383_s15 = smov %s1126_s16 }
 0x17e   : > { %s1384_s16 = smov %s1386_s19  ;;  %16 = sbr.rel (!%p14_p6) target bundleno = 5 (0x5), region = 116 }
 0x185   :  { %722 = vsyncpa [#allocation5], 1 }
 0x186   :  { %724 = vsyncpa [#allocation5 + $0x1], 1 }
 0x187   :  { %725 = vsyncpa [#allocation7], 1 }

// kernel: _lambda_.27
= control target key start
LH: loop header
LB: loop body
LE: loop exit
PB: predicated region body
PF: predicated region fallthrough
CT: control target
= control target key end

     0   :  { %s1270_s12 = smov 0   ;;  %s1272_s13 = smov 0   ;;  %s1424_s0 = inlined_call_operand.vmem [shape: bf16[16,2048], index: 0, kind: input, shape index: {}]   ;;  %s1425_s1 = inlined_call_operand.vmem [shape: bf16[2048,256], index: 1, kind: input, shape index: {}]   ;;  %s1426_s2 = inlined_call_operand.vmem [shape: f32[1,256], index: 2, kind: input, shape index: {}]   ;;  %s1427_s3 = inlined_call_operand.vmem [shape: f32[16,256], index: 3, kind: output, shape index: {}]  }
   0x1   :  { %s1274_s14 = smov 0   ;;  %s1276_s15 = smov 0  }
   0x2   :  { %s1278_s16 = smov 0  }
   0x3 LB: > { %s25_s17 = sadd.s32 1, %s1243_s15  ;;  %p48_p1 = scmp.ne.s32.totalorder %s1235_s13, %s1231_s12  ;;  %s1247_s16 = sphi %s1278_s16, %s13_s16   ;;  %s1243_s15 = sphi %s1276_s15, %s1431_s15   ;;  %s1239_s14 = sphi %s1274_s14, %s1430_s14   ;;  %s1235_s13 = sphi %s1272_s13, %s1429_s13   ;;  %s1231_s12 = sphi %s1270_s12, %s1428_s12  }
   0x4   : > { %p26_p0 = scmp.ge.s32.totalorder %s25_s17, 4  ;;  %p49_p2 = scmp.eq.s32.totalorder %s1247_s16, 0 }
   0x5   : > { %s41_s19 = sadd.s32 1, %s1235_s13  ;;  %p977_p5 = scmp.ge.s32.totalorder %s1247_s16, 4 }
   0x6   : > { %s1433_s17 = smov (%p26_p0, %s25_s17), 0  ;;  %p50_p3 = por %p49_p2, %p48_p1 }
   0x7   : > { %s37_s18 = ssub.s32 %s1243_s15, %s1433_s17  ;;  %164 = sbr.rel (%p977_p5) target bundleno = 21 (0x15), region = 20 }
   0x8   : > { %p39_p4 = scmp.eq.s32.totalorder %s37_s18, 0 }
   0xa   : > { %s1305_s20 = scalar_select %p39_p4, %s1235_s13, %s41_s19  }
   0xe   : > { %167 = sbr.rel (!%p50_p3) target bundleno = 21 (0x15), region = 24  ;;  %s169_s21 = sand.u32 (%p50_p3), 1, %s1235_s13  }
   0xf   : > { %s1060_s22 = sshll.u32 (%p50_p3), %s1243_s15, 4  ;;  %s978_s23 = sshll.u32 (%p50_p3), %s169_s21, 5 }
  0x10   : > { %s177_s26 = scalar_lea.vmem (%p50_p3), %s1424_s0, %s1060_s22  ;;  %s171_s27 = scalar_lea.vmem (%p50_p3), [#allocation3], %s978_s23 }
  0x11   : > { %v190_v0 = vld [vmem:[%s177_s26] sm:$0xff] (%p50_p3)  ;;  %v192_v1 = vld [vmem:[%s177_s26 + $0x8] sm:$0xff] (%p50_p3) }
  0x12   : > { %v194_v2 = vld [vmem:[%s177_s26 + $0x40] sm:$0xff] (%p50_p3)  ;;  %191 = vst [vmem:[%s171_s27] sm:$0xff] (%p50_p3), %v190_v0  ;;  %193 = vst [vmem:[%s171_s27 + $0x8] sm:$0xff] (%p50_p3), %v192_v1  ;;  %v196_v3 = vld [vmem:[%s177_s26 + $0x48] sm:$0xff] (%p50_p3) }
  0x13   : > { %195 = vst [vmem:[%s171_s27 + $0x10] sm:$0xff] (%p50_p3), %v194_v2  ;;  %197 = vst [vmem:[%s171_s27 + $0x18] sm:$0xff] (%p50_p3), %v196_v3 }
  0x15 PF: > { %p981_p6 = scmp.ge.s32.totalorder %s1247_s16, 1  ;;  %p217_p7 = scmp.lt.s32.totalorder %s1247_s16, 5 }
  0x17   : > { %p218_p8 = pnand %p981_p6, %p217_p7 }
  0x18   : > { %s224_s28 = sand.u32 (!%p218_p8), 1, %s1231_s12   ;;  %s983_s29 = sshll.u32 (!%p218_p8), %s1239_s14, 6 }
  0x19   : > { %221 = sbr.rel (%p218_p8) target bundleno = 338 (0x152), region = 51  ;;  %s982_s30 = sshll.u32 (!%p218_p8), %s224_s28, 5 }
  0x1a   : > { %p270_p9 = scmp.lt.s32.totalorder (!%p218_p8), %s983_s29, 255  ;;  %s1322_s8 = scalar_lea.vmem (!%p218_p8), [#allocation3], %s982_s30 }
  0x1b   : > { %p986_p10 = scmp.ne.s32.totalorder (!%p218_p8), %s1239_s14, 0 }
  0x20   : > { %s1435_s29 = smov (!%p270_p9, %s983_s29), 255  ;;  %300 = sbr.rel (%p986_p10) target bundleno = 39 (0x27), region = 59 }
  0x21   : > { %s1061_s4 = sshll.u32 %s1435_s29, 3  ;;  %v1249_v4 = vmov (!%p986_p10), 0.0  }
  0x22   : > { %s1320_s7 = scalar_lea.vmem %s1425_s1, %s1061_s4  ;;  %301 = vst [vmem:[#allocation2] sm:$0xff] (!%p986_p10), %v1249_v4  ;;  %302 = vst [vmem:[#allocation2 + $0x8] sm:$0xff] (!%p986_p10), %v1249_v4 }
  0x23   : > { %303 = vst [vmem:[#allocation2 + $0x10] sm:$0xff] (!%p986_p10), %v1249_v4  ;;  %304 = vst [vmem:[#allocation2 + $0x18] sm:$0xff] (!%p986_p10), %v1249_v4 }
  0x27 PF: > { %v1107_v5 = vld [vmem:[%s1320_s7 + $0x4] ss:$8 sps:$4 sm:$0xff]   ;;  %v1111_v7 = vld [vmem:[%s1320_s7] ss:$8 sps:$4 sm:$0xff]   ;;  %v1113_v9 = vld [vmem:[%s1320_s7 + $0x14] ss:$8 sps:$4 sm:$0xff]  }
  0x28   : > { %v1109_v6 = vld [vmem:[%s1320_s7 + $0x104] ss:$8 sps:$4 sm:$0xff]   ;;  %717 = vmatprep.subr.bf16.mxu1 %v1107_v5  ;;  %v1112_v8 = vld [vmem:[%s1320_s7 + $0x100] ss:$8 sps:$4 sm:$0xff]   ;;  %v1115_v10 = vld [vmem:[%s1320_s7 + $0x114] ss:$8 sps:$4 sm:$0xff]  }
  0x29   : > { %760 = vmatprep.subr.bf16.mxu0 %v1109_v6  ;;  %718 = vmatpush1.bf16.msra.mxu1 %v1111_v7  ;;  %v1117_v11 = vld [vmem:[%s1320_s7 + $0x10] ss:$8 sps:$4 sm:$0xff]   ;;  %v1119_v13 = vld [vmem:[%s1320_s7 + $0x24] ss:$8 sps:$4 sm:$0xff]   ;;  %v1123_v15 = vld [vmem:[%s1320_s7 + $0x20] ss:$8 sps:$4 sm:$0xff]  }
  0x2a   : > { %761 = vmatpush1.bf16.msra.mxu0 %v1112_v8  ;;  %719 = vmatprep.subr.bf16.mxu1 %v1113_v9  ;;  %v1118_v12 = vld [vmem:[%s1320_s7 + $0x110] ss:$8 sps:$4 sm:$0xff]   ;;  %v1121_v14 = vld [vmem:[%s1320_s7 + $0x124] ss:$8 sps:$4 sm:$0xff]   ;;  %v1124_v16 = vld [vmem:[%s1320_s7 + $0x120] ss:$8 sps:$4 sm:$0xff]  }
  0x2b   : > { %762 = vmatprep.subr.bf16.mxu0 %v1115_v10  ;;  %v1125_v17 = vld [vmem:[%s1320_s7 + $0x34] ss:$8 sps:$4 sm:$0xff]   ;;  %v1129_v19 = vld [vmem:[%s1320_s7 + $0x30] ss:$8 sps:$4 sm:$0xff]   ;;  %v1131_v21 = vld [vmem:[%s1320_s7 + $0x44] ss:$8 sps:$4 sm:$0xff]  }
  0x2c   : > { %v1127_v18 = vld [vmem:[%s1320_s7 + $0x134] ss:$8 sps:$4 sm:$0xff]   ;;  %v1130_v20 = vld [vmem:[%s1320_s7 + $0x130] ss:$8 sps:$4 sm:$0xff]   ;;  %v1133_v22 = vld [vmem:[%s1320_s7 + $0x144] ss:$8 sps:$4 sm:$0xff]  }
  0x2d   : > { %720 = vmatpush1.bf16.msra.mxu1 %v1117_v11  ;;  %v1135_v23 = vld [vmem:[%s1320_s7 + $0x40] ss:$8 sps:$4 sm:$0xff]   ;;  %v1137_v25 = vld [vmem:[%s1320_s7 + $0x54] ss:$8 sps:$4 sm:$0xff]   ;;  %v1141_v27 = vld [vmem:[%s1320_s7 + $0x50] ss:$8 sps:$4 sm:$0xff]  }
  0x2e   : > { %763 = vmatpush1.bf16.msra.mxu0 %v1118_v12  ;;  %721 = vmatprep.subr.bf16.mxu1 %v1119_v13  ;;  %v1136_v24 = vld [vmem:[%s1320_s7 + $0x140] ss:$8 sps:$4 sm:$0xff]   ;;  %v1139_v26 = vld [vmem:[%s1320_s7 + $0x154] ss:$8 sps:$4 sm:$0xff]   ;;  %v1142_v28 = vld [vmem:[%s1320_s7 + $0x150] ss:$8 sps:$4 sm:$0xff]  }
  0x2f   : > { %764 = vmatprep.subr.bf16.mxu0 %v1121_v14  ;;  %v1143_v29 = vld [vmem:[%s1320_s7 + $0x64] ss:$8 sps:$4 sm:$0xff]   ;;  %v1147_v31 = vld [vmem:[%s1320_s7 + $0x60] ss:$8 sps:$4 sm:$0xff]   ;;  %v1149_v33 = vld [vmem:[%s1320_s7 + $0x74] ss:$8 sps:$4 sm:$0xff]  }
  0x30   : > { %v1145_v30 = vld [vmem:[%s1320_s7 + $0x164] ss:$8 sps:$4 sm:$0xff]   ;;  %v1148_v32 = vld [vmem:[%s1320_s7 + $0x160] ss:$8 sps:$4 sm:$0xff]   ;;  %v1151_v34 = vld [vmem:[%s1320_s7 + $0x174] ss:$8 sps:$4 sm:$0xff]  }
  0x31   : > { %722 = vmatpush1.bf16.msra.mxu1 %v1123_v15  ;;  %v1153_v35 = vld [vmem:[%s1320_s7 + $0x70] ss:$8 sps:$4 sm:$0xff]   ;;  %v1155_v37 = vld [vmem:[%s1320_s7 + $0x84] ss:$8 sps:$4 sm:$0xff]   ;;  %v1159_v39 = vld [vmem:[%s1320_s7 + $0x80] ss:$8 sps:$4 sm:$0xff]  }
  0x32   : > { %765 = vmatpush1.bf16.msra.mxu0 %v1124_v16  ;;  %723 = vmatprep.subr.bf16.mxu1 %v1125_v17  ;;  %v1154_v36 = vld [vmem:[%s1320_s7 + $0x170] ss:$8 sps:$4 sm:$0xff]   ;;  %v1157_v38 = vld [vmem:[%s1320_s7 + $0x184] ss:$8 sps:$4 sm:$0xff]   ;;  %v1160_v40 = vld [vmem:[%s1320_s7 + $0x180] ss:$8 sps:$4 sm:$0xff]  }
  0x33   : > { %766 = vmatprep.subr.bf16.mxu0 %v1127_v18  ;;  %v1161_v41 = vld [vmem:[%s1320_s7 + $0x94] ss:$8 sps:$4 sm:$0xff]   ;;  %v1165_v43 = vld [vmem:[%s1320_s7 + $0x90] ss:$8 sps:$4 sm:$0xff]   ;;  %v1167_v45 = vld [vmem:[%s1320_s7 + $0xa4] ss:$8 sps:$4 sm:$0xff]  }
  0x34   : > { %v1163_v42 = vld [vmem:[%s1320_s7 + $0x194] ss:$8 sps:$4 sm:$0xff]   ;;  %v1166_v44 = vld [vmem:[%s1320_s7 + $0x190] ss:$8 sps:$4 sm:$0xff]   ;;  %v1169_v46 = vld [vmem:[%s1320_s7 + $0x1a4] ss:$8 sps:$4 sm:$0xff]  }
  0x35   : > { %724 = vmatpush1.bf16.msra.mxu1 %v1129_v19  ;;  %v1171_v47 = vld [vmem:[%s1320_s7 + $0xa0] ss:$8 sps:$4 sm:$0xff]   ;;  %v1173_v49 = vld [vmem:[%s1320_s7 + $0xb4] ss:$8 sps:$4 sm:$0xff]   ;;  %v1177_v51 = vld [vmem:[%s1320_s7 + $0xb0] ss:$8 sps:$4 sm:$0xff]  }
  0x36   : > { %767 = vmatpush1.bf16.msra.mxu0 %v1130_v20  ;;  %725 = vmatprep.subr.bf16.mxu1 %v1131_v21  ;;  %v1172_v48 = vld [vmem:[%s1320_s7 + $0x1a0] ss:$8 sps:$4 sm:$0xff]   ;;  %v1175_v50 = vld [vmem:[%s1320_s7 + $0x1b4] ss:$8 sps:$4 sm:$0xff]   ;;  %v1178_v53 = vld [vmem:[%s1320_s7 + $0x1b0] ss:$8 sps:$4 sm:$0xff]  }
  0x37   : > { %768 = vmatprep.subr.bf16.mxu0 %v1133_v22  ;;  %v1205_v52 = vld [vmem:[%s1322_s8 + $0x4] ss:$16 sps:$4 sm:$0xff]   ;;  %v1208_v56 = vld [vmem:[%s1322_s8 + $0xc] ss:$16 sps:$4 sm:$0xff]   ;;  %v1183_v57 = vld [vmem:[%s1320_s7 + $0xc0] ss:$8 sps:$4 sm:$0xff]  }
  0x38   : > { %v1179_v54 = vld [vmem:[%s1320_s7 + $0xc4] ss:$8 sps:$4 sm:$0xff]   ;;  %749 = vmatprep.mubr.bf16.mxu1 %v1205_v52  ;;  %792 = vmatprep.mubr.bf16.mxu0 %v1208_v56  ;;  %v1184_v58 = vld [vmem:[%s1320_s7 + $0x1c0] ss:$8 sps:$4 sm:$0xff]   ;;  %v1185_v59 = vld [vmem:[%s1320_s7 + $0xd4] ss:$8 sps:$4 sm:$0xff]  }
  0x39   : > { %726 = vmatpush1.bf16.msra.mxu1 %v1135_v23  ;;  %v1181_v55 = vld [vmem:[%s1320_s7 + $0x1c4] ss:$8 sps:$4 sm:$0xff]   ;;  %v1187_v60 = vld [vmem:[%s1320_s7 + $0x1d4] ss:$8 sps:$4 sm:$0xff]   ;;  %v1189_v61 = vld [vmem:[%s1320_s7 + $0xd0] ss:$8 sps:$4 sm:$0xff]  }
  0x3a   : > { %769 = vmatpush1.bf16.msra.mxu0 %v1136_v24  ;;  %727 = vmatprep.subr.bf16.mxu1 %v1137_v25  ;;  %v1190_v62 = vld [vmem:[%s1320_s7 + $0x1d0] ss:$8 sps:$4 sm:$0xff]   ;;  %v1191_v63 = vld [vmem:[%s1320_s7 + $0xe4] ss:$8 sps:$4 sm:$0xff]   ;;  %v1195_v1 = vld [vmem:[%s1320_s7 + $0xe0] ss:$8 sps:$4 sm:$0xff]  }
  0x3b   : > { %770 = vmatprep.subr.bf16.mxu0 %v1139_v26  ;;  %v1193_v0 = vld [vmem:[%s1320_s7 + $0x1e4] ss:$8 sps:$4 sm:$0xff]   ;;  %v1196_v2 = vld [vmem:[%s1320_s7 + $0x1e0] ss:$8 sps:$4 sm:$0xff]   ;;  %v1197_v3 = vld [vmem:[%s1320_s7 + $0xf4] ss:$8 sps:$4 sm:$0xff]  }
  0x3c   : > { %v1199_v4 = vld [vmem:[%s1320_s7 + $0x1f4] ss:$8 sps:$4 sm:$0xff]   ;;  %v1201_v5 = vld [vmem:[%s1320_s7 + $0xf0] ss:$8 sps:$4 sm:$0xff]   ;;  %v305_v10 = vld [vmem:[#allocation2] sm:$0xff]  ;;  %p1055_p11 = scmp.ne.s32.totalorder %s1239_s14, 3 }
  0x3d   : > { %728 = vmatpush1.bf16.msra.mxu1 %v1141_v27  ;;  %v1202_v6 = vld [vmem:[%s1320_s7 + $0x1f0] ss:$8 sps:$4 sm:$0xff]   ;;  %v306_v14 = vld [vmem:[#allocation2 + $0x8] sm:$0xff] }
  0x3e   : > { %771 = vmatpush1.bf16.msra.mxu0 %v1142_v28  ;;  %729 = vmatprep.subr.bf16.mxu1 %v1143_v29  ;;  %v1203_v7 = vld [vmem:[%s1322_s8] ss:$16 sps:$4 sm:$0xff]   ;;  %v1206_v8 = vld [vmem:[%s1322_s8 + $0x8] ss:$16 sps:$4 sm:$0xff]   ;;  %v821_v29 = vlaneseq (!%p1055_p11) }
  0x3f   : > { %772 = vmatprep.subr.bf16.mxu0 %v1145_v30  ;;  %v307_v18 = vld [vmem:[#allocation2 + $0x10] sm:$0xff]  ;;  %v308_v23 = vld [vmem:[#allocation2 + $0x18] sm:$0xff] }
  0x40   : > { %v822_v30 = vshrl.u32 (!%p1055_p11), %v821_v29, 7 }
  0x41   : > { %730 = vmatpush1.bf16.msra.mxu1 %v1147_v31  ;;  %v819_v31 = vld [vmem:[%s1426_s2] sm:$0x3] (!%p1055_p11) }
  0x42   : > { %773 = vmatpush1.bf16.msra.mxu0 %v1148_v32  ;;  %731 = vmatprep.subr.bf16.mxu1 %v1149_v33  ;;  %v823_v33 = vsub.s32 (!%p1055_p11), 0, %v822_v30 }
  0x43   : > { %774 = vmatprep.subr.bf16.mxu0 %v1151_v34  ;;  %v827_v34 = vsub.s32 (!%p1055_p11), 1, %v822_v30 }
  0x45   : > { %732 = vmatpush1.bf16.msra.mxu1 %v1153_v35 }
  0x46   : > { %775 = vmatpush1.bf16.msra.mxu0 %v1154_v36  ;;  %733 = vmatprep.subr.bf16.mxu1 %v1155_v37 }
  0x47   : > { %776 = vmatprep.subr.bf16.mxu0 %v1157_v38  ;;  %v824_v38 = vrot.slane (!%p1055_p11), %v819_v31, %v823_v33 }
  0x49   : > { %734 = vmatpush1.bf16.msra.mxu1 %v1159_v39  ;;  %v828_v39 = vrot.slane (!%p1055_p11), %v819_v31, %v827_v34 }
  0x4a   : > { %777 = vmatpush1.bf16.msra.mxu0 %v1160_v40  ;;  %735 = vmatprep.subr.bf16.mxu1 %v1161_v41 }
  0x4b   : > { %778 = vmatprep.subr.bf16.mxu0 %v1163_v42 }
  0x4d   : > { %736 = vmatpush1.bf16.msra.mxu1 %v1165_v43 }
  0x4e   : > { %779 = vmatpush1.bf16.msra.mxu0 %v1166_v44  ;;  %737 = vmatprep.subr.bf16.mxu1 %v1167_v45 }
  0x4f   : > { %780 = vmatprep.subr.bf16.mxu0 %v1169_v46 }
  0x51   : > { %738 = vmatpush1.bf16.msra.mxu1 %v1171_v47 }
  0x52   : > { %781 = vmatpush1.bf16.msra.mxu0 %v1172_v48  ;;  %739 = vmatprep.subr.bf16.mxu1 %v1173_v49 }
  0x53   : > { %782 = vmatprep.subr.bf16.mxu0 %v1175_v50 }
  0x55   : > { %740 = vmatpush1.bf16.msra.mxu1 %v1177_v51 }
  0x56   : > { %783 = vmatpush1.bf16.msra.mxu0 %v1178_v53  ;;  %741 = vmatprep.subr.bf16.mxu1 %v1179_v54 }
  0x57   : > { %784 = vmatprep.subr.bf16.mxu0 %v1181_v55 }
  0x59   : > { %742 = vmatpush1.bf16.msra.mxu1 %v1183_v57 }
  0x5a   : > { %785 = vmatpush1.bf16.msra.mxu0 %v1184_v58  ;;  %743 = vmatprep.subr.bf16.mxu1 %v1185_v59 }
  0x5b   : > { %786 = vmatprep.subr.bf16.mxu0 %v1187_v60 }
  0x5d   : > { %744 = vmatpush1.bf16.msra.mxu1 %v1189_v61 }
  0x5e   : > { %787 = vmatpush1.bf16.msra.mxu0 %v1190_v62  ;;  %745 = vmatprep.subr.bf16.mxu1 %v1191_v63 }
  0x5f   : > { %788 = vmatprep.subr.bf16.mxu0 %v1193_v0 }
  0x61   : > { %746 = vmatpush1.bf16.msra.mxu1 %v1195_v1 }
  0x62   : > { %789 = vmatpush1.bf16.msra.mxu0 %v1196_v2  ;;  %747 = vmatprep.subr.bf16.mxu1 %v1197_v3 }
  0x63   : > { %790 = vmatprep.subr.bf16.mxu0 %v1199_v4 }
  0x65   : > { %748 = vmatpush1.bf16.msra.mxu1 %v1201_v5 }
  0x66   : > { %791 = vmatpush1.bf16.msra.mxu0 %v1202_v6 }
  0x68   : > { %750 = vmatmul.mubr.bf16.vlgmr.msra.gmra.mrb[0].mxu1 %v1203_v7 }
  0x69   : > { %793 = vmatmul.mubr.bf16.vlgmr.msra.gmra.mrb[0].mxu0 %v1206_v8 }
 0x13b   : > { %v751_v9 = vpop.f32.mrb[0].mxu1 }
 0x13c   : > { %v794_v11 = vpop.f32.mrb[0].mxu0  ;;  %v753_v13 = vpop.f32.mrb[1].mxu1 }
 0x13d   : > { %v795_v12 = vadd.f32 %v794_v11, %v751_v9  ;;  %v796_v15 = vpop.f32.mrb[1].mxu0  ;;  %v755_v17 = vpop.f32.mrb[2].mxu1 }
 0x13e   : > { %v797_v16 = vadd.f32 %v796_v15, %v753_v13  ;;  %v798_v19 = vpop.f32.mrb[2].mxu0  ;;  %v757_v22 = vpop.f32.mrb[3].mxu1  ;;  %814 = sbr.rel (%p1055_p11) target bundleno = 338 (0x152), region = 63 }
 0x13f   : > { %v803_v20 = vadd.f32 %v795_v12, %v305_v10  ;;  %v799_v21 = vadd.f32 %v798_v19, %v755_v17  ;;  %v800_v24 = vpop.f32.mrb[3].mxu0 }
 0x140   : > { %v804_v25 = vadd.f32 %v797_v16, %v306_v14  ;;  %v801_v26 = vadd.f32 %v800_v24, %v757_v22 }
 0x141   : > { %807 = vst [vmem:[#allocation2] sm:$0xff] %v803_v20  ;;  %v805_v27 = vadd.f32 %v799_v21, %v307_v18 }
 0x142   : > { %808 = vst [vmem:[#allocation2 + $0x8] sm:$0xff] %v804_v25  ;;  %v806_v28 = vadd.f32 %v801_v26, %v308_v23 }
 0x143   : > { %809 = vst [vmem:[#allocation2 + $0x10] sm:$0xff] %v805_v27 }
 0x144   : > { %810 = vst [vmem:[#allocation2 + $0x18] sm:$0xff] %v806_v28 }
 0x148   : > { %v815_v32 = vld [vmem:[#allocation2] sm:$0xff] }
 0x149   : > { %v816_v35 = vld [vmem:[#allocation2 + $0x8] sm:$0xff]  ;;  %v831_v40 = vadd.f32 %v824_v38, %v815_v32 }
 0x14a   : > { %v817_v36 = vld [vmem:[#allocation2 + $0x10] sm:$0xff]  ;;  %v832_v41 = vadd.f32 %v828_v39, %v816_v35 }
 0x14b   : > { %v818_v37 = vld [vmem:[#allocation2 + $0x18] sm:$0xff]  ;;  %v833_v42 = vadd.f32 %v824_v38, %v817_v36  ;;  %vm835_vm0 = vcmp.ge.f32.partialorder %v831_v40, 0.0  ;;  %v839_v44 = vmul.f32 0.2, %v831_v40 }
 0x14c   : > { %v834_v43 = vadd.f32 %v828_v39, %v818_v37  ;;  %vm836_vm1 = vcmp.ge.f32.partialorder %v832_v41, 0.0  ;;  %v840_v45 = vmul.f32 0.2, %v832_v41 }
 0x14d   : > { %vm837_vm2 = vcmp.ge.f32.partialorder %v833_v42, 0.0  ;;  %v841_v46 = vmul.f32 0.2, %v833_v42  ;;  %v843_v48 = vsel %vm835_vm0, %v831_v40, %v839_v44 }
 0x14e   : > { %vm838_vm3 = vcmp.ge.f32.partialorder %v834_v43, 0.0  ;;  %v842_v47 = vmul.f32 0.2, %v834_v43  ;;  %v844_v49 = vsel %vm836_vm1, %v832_v41, %v840_v45  ;;  %847 = vst [vmem:[%s1427_s3] sm:$0xff] %v843_v48 }
 0x14f   : > { %848 = vst [vmem:[%s1427_s3 + $0x8] sm:$0xff] %v844_v49  ;;  %v845_v50 = vsel %vm837_vm2, %v833_v42, %v841_v46 }
 0x150   : > { %v846_v51 = vsel %vm838_vm3, %v834_v43, %v842_v47  ;;  %849 = vst [vmem:[%s1427_s3 + $0x10] sm:$0xff] %v845_v50 }
 0x151   : > { %850 = vst [vmem:[%s1427_s3 + $0x18] sm:$0xff] %v846_v51 }
 0x152 PF: > { %s13_s16 = sadd.s32 1, %s1247_s16   ;;  %s1428_s12 = smov %s1235_s13 }
 0x153   : > { %p10_p12 = scmp.ge.s32.totalorder %s13_s16, 6   ;;  %s1429_s13 = smov %s1305_s20 }
 0x154   : > { %s1430_s14 = smov %s1243_s15  ;;  %s1431_s15 = smov %s1433_s17 }
 0x155   :  { %12 = sbr.rel (!%p10_p12) target bundleno = 3 (0x3), region = 104 }

// kernel: _lambda_.28
= control target key start
LH: loop header
LB: loop body
LE: loop exit
PB: predicated region body
PF: predicated region fallthrough
CT: control target
= control target key end

     0   :  { %s2162_s0 = inlined_call_operand.vmem [shape: bf16[32,4096], index: 0, kind: input, shape index: {}]   ;;  %s2163_s1 = inlined_call_operand.vmem [shape: bf16[4096,512], index: 1, kind: input, shape index: {}]   ;;  %s2164_s2 = inlined_call_operand.vmem [shape: f32[1,512], index: 2, kind: input, shape index: {}]   ;;  %s2165_s3 = inlined_call_operand.vmem [shape: f32[32,512], index: 3, kind: output, shape index: {}]  }
   0x1   :  { %2167 = sst [smem:[#allocation7_spill]] %s2162_s0 }
   0x2   :  { %2168 = sst [smem:[#allocation8_spill]] %s2163_s1 }
   0x3   :  { %s1764_s12 = smov 0   ;;  %s1766_s13 = smov 0  }
   0x4   :  { %s1768_s14 = smov 0   ;;  %s1770_s15 = smov 0  }
   0x5   :  { %s1772_s16 = smov 0   ;;  %s1774_s17 = smov 0  }
   0x6   :  { %s1776_s18 = smov 0   ;;  %s1778_s19 = smov 0  }
   0x7   :  { %s1780_s20 = smov 0   ;;  %s1782_s21 = smov 0  }
   0x8   :  { %s1784_s22 = smov 0  }
   0x9 LB: > { %s1351_s23 = sadd.s32 4294967295, %s1741_s22   ;;  %s25_s24 = sadd.s32 1, %s1733_s20  ;;  %s1741_s22 = sphi %s1784_s22, %s13_s22   ;;  %s1737_s21 = sphi %s1782_s21, %s2185_s21   ;;  %s1733_s20 = sphi %s1780_s20, %s2184_s20   ;;  %s1729_s19 = sphi %s1778_s19, %s2183_s19   ;;  %s1725_s18 = sphi %s1776_s18, %s2182_s18   ;;  %s1721_s17 = sphi %s1774_s17, %s2181_s17   ;;  %s1717_s16 = sphi %s1772_s16, %s2180_s16   ;;  %s1713_s15 = sphi %s1770_s15, %s2179_s15   ;;  %s1709_s14 = sphi %s1768_s14, %s2178_s14   ;;  %s1705_s13 = sphi %s1766_s13, %s2177_s13   ;;  %s1701_s12 = sphi %s1764_s12, %s2176_s12  }
   0xa   : > { %p26_p0 = scmp.ge.s32.totalorder %s25_s24, 8  ;;  %s28_s25 = sadd.s32 1, %s1737_s21 }
   0xb   : > { %s41_s26 = sadd.s32 1, %s1721_s17  ;;  %p48_p1 = scmp.ne.s32.totalorder %s1721_s17, %s1717_s16 }
   0xc   : > { %s2187_s24 = smov (%p26_p0, %s25_s24), 0  ;;  %s2189_s25 = smov (!%p26_p0, %s28_s25), %s1737_s21 }
   0xd   : > { %s37_s27 = ssub.s32 %s1733_s20, %s2187_s24  ;;  %p49_p2 = scmp.eq.s32.totalorder %s1741_s22, 0 }
   0xe   : > { %p30_p3 = scmp.ge.s32.totalorder %s2189_s25, 2  ;;  %p39_p4 = scmp.eq.s32.totalorder %s37_s27, 0 }
   0xf   : > { %p1831_p5 = por %p49_p2, %p48_p1  ;;  %s69_s29 = sadd.s32 1, %s1713_s15 }
  0x10   : > { %s2191_s25 = smov (%p30_p3, %s2189_s25), 0  ;;  %p76_p6 = scmp.ne.s32.totalorder %s1713_s15, %s1709_s14 }
  0x11   : > { %2170 = sst [smem:[#allocation6_spill]] %s2191_s25  ;;  %s65_s4 = ssub.s32 %s1737_s21, %s2191_s25 }
  0x12   : > { %s1839_s30 = scalar_select %p39_p4, %s1721_s17, %s41_s26  }
  0x13   : > { %s66_s5 = sor.u32 %s65_s4, %s37_s27  ;;  %p121_p7 = scmp.eq.s32.totalorder %s65_s4, 0 }
  0x14   : > { %p67_p8 = scmp.eq.s32.totalorder %s66_s5, 0  ;;  %p1845_p9 = por %p76_p6, %p49_p2 }
  0x15   : > { %s123_s7 = sadd.s32 1, %s1705_s13  ;;  %p133_p10 = scmp.ne.s32.totalorder %s1705_s13, %s1701_s12 }
  0x16   : > { %s1853_s8 = scalar_select %p67_p8, %s1713_s15, %s69_s29  }
  0x17   : > { %s1856_s9 = scalar_select %p121_p7, %s1705_s13, %s123_s7  }
  0x18   : > { %p134_p11 = scmp.eq.s32.totalorder %s1351_s23, 15  ;;  %p1354_p13 = scmp.ge.s32.totalorder %s1741_s22, 16 }
  0x1a   : > { %p1858_p12 = por %p134_p11, %p133_p10  ;;  %156 = sbr.rel (%p1354_p13) target bundleno = 89 (0x59), region = 16 }
  0x21   : > { %159 = sbr.rel (!%p1831_p5) target bundleno = 47 (0x2f), region = 20  ;;  %s161_s11 = sand.u32 (%p1831_p5), 1, %s1721_s17  }
  0x22   : > { %s1447_s26 = sshll.u32 (%p1831_p5), %s1733_s20, 4  ;;  %s1355_s27 = sshll.u32 (%p1831_p5), %s161_s11, 6 }
  0x23   : > { %s2173_s0 = sld [smem:[#allocation7_spill]] (%p1831_p5)  ;;  %s163_s23 = scalar_lea.vmem (%p1831_p5), [#allocation3], %s1355_s27 }
  0x29   : > { %s169_s5 = scalar_lea.vmem %s2173_s0, %s1447_s26 }
  0x2a   : > { %v182_v0 = vld [vmem:[%s169_s5] sm:$0xff]  ;;  %v184_v1 = vld [vmem:[%s169_s5 + $0x8] sm:$0xff] }
  0x2b   : > { %v186_v2 = vld [vmem:[%s169_s5 + $0x80] sm:$0xff]  ;;  %183 = vst [vmem:[%s163_s23] sm:$0xff] %v182_v0  ;;  %185 = vst [vmem:[%s163_s23 + $0x8] sm:$0xff] %v184_v1  ;;  %v188_v3 = vld [vmem:[%s169_s5 + $0x88] sm:$0xff] }
  0x2c   : > { %187 = vst [vmem:[%s163_s23 + $0x10] sm:$0xff] %v186_v2  ;;  %v190_v4 = vld [vmem:[%s169_s5 + $0x100] sm:$0xff]  ;;  %v192_v5 = vld [vmem:[%s169_s5 + $0x108] sm:$0xff]  ;;  %189 = vst [vmem:[%s163_s23 + $0x18] sm:$0xff] %v188_v3 }
  0x2d   : > { %191 = vst [vmem:[%s163_s23 + $0x20] sm:$0xff] %v190_v4  ;;  %193 = vst [vmem:[%s163_s23 + $0x28] sm:$0xff] %v192_v5  ;;  %v194_v6 = vld [vmem:[%s169_s5 + $0x180] sm:$0xff]  ;;  %v196_v7 = vld [vmem:[%s169_s5 + $0x188] sm:$0xff] }
  0x2e   : > { %195 = vst [vmem:[%s163_s23 + $0x30] sm:$0xff] %v194_v6  ;;  %197 = vst [vmem:[%s163_s23 + $0x38] sm:$0xff] %v196_v7 }
  0x2f PF: > { %203 = sbr.rel (!%p1845_p9) target bundleno = 89 (0x59), region = 43  ;;  %s205_s28 = sand.u32 (%p1845_p9), 1, %s1713_s15  }
  0x30   : > { %s1360_s7 = sshll.u32 (%p1845_p9), %s1737_s21, 1  ;;  %s1358_s11 = sshll.u32 (%p1845_p9), %s205_s28, 9 }
  0x31   : > { %s1448_s26 = sshll.u32 (%p1845_p9), %s1733_s20, 8  ;;  %s2174_s1 = sld [smem:[#allocation8_spill]] (%p1845_p9) }
  0x32   : > { %s211_s27 = sadd.s32 (%p1845_p9), %s1448_s26, %s1360_s7  ;;  %s1883_s6 = scalar_lea.vmem (%p1845_p9), [#allocation4], %s1358_s11 }
  0x33   : > { %s1362_s29 = sshll.u32 (%p1845_p9), %s211_s27, 2 }
  0x37   : > { %s1878_s25 = scalar_lea.vmem %s2174_s1, %s1362_s29 }
  0x38   : > { %v367_v8 = vld [vmem:[%s1878_s25] sm:$0xff]  ;;  %v369_v9 = vld [vmem:[%s1878_s25 + $0x10] sm:$0xff] }
  0x39   : > { %v371_v10 = vld [vmem:[%s1878_s25 + $0x20] sm:$0xff]  ;;  %368 = vst [vmem:[%s1883_s6] sm:$0xff] %v367_v8  ;;  %370 = vst [vmem:[%s1883_s6 + $0x8] sm:$0xff] %v369_v9  ;;  %v373_v11 = vld [vmem:[%s1878_s25 + $0x30] sm:$0xff] }
  0x3a   : > { %372 = vst [vmem:[%s1883_s6 + $0x10] sm:$0xff] %v371_v10  ;;  %v375_v12 = vld [vmem:[%s1878_s25 + $0x40] sm:$0xff]  ;;  %v377_v13 = vld [vmem:[%s1878_s25 + $0x50] sm:$0xff]  ;;  %374 = vst [vmem:[%s1883_s6 + $0x18] sm:$0xff] %v373_v11 }
  0x3b   : > { %376 = vst [vmem:[%s1883_s6 + $0x20] sm:$0xff] %v375_v12  ;;  %378 = vst [vmem:[%s1883_s6 + $0x28] sm:$0xff] %v377_v13  ;;  %v379_v14 = vld [vmem:[%s1878_s25 + $0x60] sm:$0xff]  ;;  %v381_v15 = vld [vmem:[%s1878_s25 + $0x70] sm:$0xff] }
  0x3c   : > { %v383_v16 = vld [vmem:[%s1878_s25 + $0x80] sm:$0xff]  ;;  %380 = vst [vmem:[%s1883_s6 + $0x30] sm:$0xff] %v379_v14  ;;  %382 = vst [vmem:[%s1883_s6 + $0x38] sm:$0xff] %v381_v15  ;;  %v385_v17 = vld [vmem:[%s1878_s25 + $0x90] sm:$0xff] }
  0x3d   : > { %384 = vst [vmem:[%s1883_s6 + $0x40] sm:$0xff] %v383_v16  ;;  %v387_v18 = vld [vmem:[%s1878_s25 + $0xa0] sm:$0xff]  ;;  %v389_v19 = vld [vmem:[%s1878_s25 + $0xb0] sm:$0xff]  ;;  %386 = vst [vmem:[%s1883_s6 + $0x48] sm:$0xff] %v385_v17 }
  0x3e   : > { %388 = vst [vmem:[%s1883_s6 + $0x50] sm:$0xff] %v387_v18  ;;  %390 = vst [vmem:[%s1883_s6 + $0x58] sm:$0xff] %v389_v19  ;;  %v391_v20 = vld [vmem:[%s1878_s25 + $0xc0] sm:$0xff]  ;;  %v393_v21 = vld [vmem:[%s1878_s25 + $0xd0] sm:$0xff] }
  0x3f   : > { %v395_v22 = vld [vmem:[%s1878_s25 + $0xe0] sm:$0xff]  ;;  %392 = vst [vmem:[%s1883_s6 + $0x60] sm:$0xff] %v391_v20  ;;  %394 = vst [vmem:[%s1883_s6 + $0x68] sm:$0xff] %v393_v21  ;;  %v397_v23 = vld [vmem:[%s1878_s25 + $0xf0] sm:$0xff] }
  0x40   : > { %396 = vst [vmem:[%s1883_s6 + $0x70] sm:$0xff] %v395_v22  ;;  %v399_v24 = vld [vmem:[%s1878_s25 + $0x100] sm:$0xff]  ;;  %v401_v25 = vld [vmem:[%s1878_s25 + $0x110] sm:$0xff]  ;;  %398 = vst [vmem:[%s1883_s6 + $0x78] sm:$0xff] %v397_v23 }
  0x41   : > { %400 = vst [vmem:[%s1883_s6 + $0x80] sm:$0xff] %v399_v24  ;;  %402 = vst [vmem:[%s1883_s6 + $0x88] sm:$0xff] %v401_v25  ;;  %v403_v26 = vld [vmem:[%s1878_s25 + $0x120] sm:$0xff]  ;;  %v405_v27 = vld [vmem:[%s1878_s25 + $0x130] sm:$0xff] }
  0x42   : > { %v407_v28 = vld [vmem:[%s1878_s25 + $0x140] sm:$0xff]  ;;  %404 = vst [vmem:[%s1883_s6 + $0x90] sm:$0xff] %v403_v26  ;;  %406 = vst [vmem:[%s1883_s6 + $0x98] sm:$0xff] %v405_v27  ;;  %v409_v29 = vld [vmem:[%s1878_s25 + $0x150] sm:$0xff] }
  0x43   : > { %408 = vst [vmem:[%s1883_s6 + $0xa0] sm:$0xff] %v407_v28  ;;  %v411_v30 = vld [vmem:[%s1878_s25 + $0x160] sm:$0xff]  ;;  %v413_v31 = vld [vmem:[%s1878_s25 + $0x170] sm:$0xff]  ;;  %410 = vst [vmem:[%s1883_s6 + $0xa8] sm:$0xff] %v409_v29 }
  0x44   : > { %412 = vst [vmem:[%s1883_s6 + $0xb0] sm:$0xff] %v411_v30  ;;  %414 = vst [vmem:[%s1883_s6 + $0xb8] sm:$0xff] %v413_v31  ;;  %v415_v32 = vld [vmem:[%s1878_s25 + $0x180] sm:$0xff]  ;;  %v417_v33 = vld [vmem:[%s1878_s25 + $0x190] sm:$0xff] }
  0x45   : > { %v419_v34 = vld [vmem:[%s1878_s25 + $0x1a0] sm:$0xff]  ;;  %416 = vst [vmem:[%s1883_s6 + $0xc0] sm:$0xff] %v415_v32  ;;  %418 = vst [vmem:[%s1883_s6 + $0xc8] sm:$0xff] %v417_v33  ;;  %v421_v35 = vld [vmem:[%s1878_s25 + $0x1b0] sm:$0xff] }
  0x46   : > { %420 = vst [vmem:[%s1883_s6 + $0xd0] sm:$0xff] %v419_v34  ;;  %v423_v36 = vld [vmem:[%s1878_s25 + $0x1c0] sm:$0xff]  ;;  %v425_v37 = vld [vmem:[%s1878_s25 + $0x1d0] sm:$0xff]  ;;  %422 = vst [vmem:[%s1883_s6 + $0xd8] sm:$0xff] %v421_v35 }
  0x47   : > { %424 = vst [vmem:[%s1883_s6 + $0xe0] sm:$0xff] %v423_v36  ;;  %426 = vst [vmem:[%s1883_s6 + $0xe8] sm:$0xff] %v425_v37  ;;  %v427_v38 = vld [vmem:[%s1878_s25 + $0x1e0] sm:$0xff]  ;;  %v429_v39 = vld [vmem:[%s1878_s25 + $0x1f0] sm:$0xff] }
  0x48   : > { %v431_v40 = vld [vmem:[%s1878_s25 + $0x200] sm:$0xff]  ;;  %428 = vst [vmem:[%s1883_s6 + $0xf0] sm:$0xff] %v427_v38  ;;  %430 = vst [vmem:[%s1883_s6 + $0xf8] sm:$0xff] %v429_v39  ;;  %v433_v41 = vld [vmem:[%s1878_s25 + $0x210] sm:$0xff] }
  0x49   : > { %432 = vst [vmem:[%s1883_s6 + $0x100] sm:$0xff] %v431_v40  ;;  %v435_v42 = vld [vmem:[%s1878_s25 + $0x220] sm:$0xff]  ;;  %v437_v43 = vld [vmem:[%s1878_s25 + $0x230] sm:$0xff]  ;;  %434 = vst [vmem:[%s1883_s6 + $0x108] sm:$0xff] %v433_v41 }
  0x4a   : > { %436 = vst [vmem:[%s1883_s6 + $0x110] sm:$0xff] %v435_v42  ;;  %438 = vst [vmem:[%s1883_s6 + $0x118] sm:$0xff] %v437_v43  ;;  %v439_v44 = vld [vmem:[%s1878_s25 + $0x240] sm:$0xff]  ;;  %v441_v45 = vld [vmem:[%s1878_s25 + $0x250] sm:$0xff] }
  0x4b   : > { %v443_v46 = vld [vmem:[%s1878_s25 + $0x260] sm:$0xff]  ;;  %440 = vst [vmem:[%s1883_s6 + $0x120] sm:$0xff] %v439_v44  ;;  %442 = vst [vmem:[%s1883_s6 + $0x128] sm:$0xff] %v441_v45  ;;  %v445_v47 = vld [vmem:[%s1878_s25 + $0x270] sm:$0xff] }
  0x4c   : > { %444 = vst [vmem:[%s1883_s6 + $0x130] sm:$0xff] %v443_v46  ;;  %v447_v48 = vld [vmem:[%s1878_s25 + $0x280] sm:$0xff]  ;;  %v449_v49 = vld [vmem:[%s1878_s25 + $0x290] sm:$0xff]  ;;  %446 = vst [vmem:[%s1883_s6 + $0x138] sm:$0xff] %v445_v47 }
  0x4d   : > { %448 = vst [vmem:[%s1883_s6 + $0x140] sm:$0xff] %v447_v48  ;;  %450 = vst [vmem:[%s1883_s6 + $0x148] sm:$0xff] %v449_v49  ;;  %v451_v50 = vld [vmem:[%s1878_s25 + $0x2a0] sm:$0xff]  ;;  %v453_v51 = vld [vmem:[%s1878_s25 + $0x2b0] sm:$0xff] }
  0x4e   : > { %v455_v52 = vld [vmem:[%s1878_s25 + $0x2c0] sm:$0xff]  ;;  %452 = vst [vmem:[%s1883_s6 + $0x150] sm:$0xff] %v451_v50  ;;  %454 = vst [vmem:[%s1883_s6 + $0x158] sm:$0xff] %v453_v51  ;;  %v457_v53 = vld [vmem:[%s1878_s25 + $0x2d0] sm:$0xff] }
  0x4f   : > { %456 = vst [vmem:[%s1883_s6 + $0x160] sm:$0xff] %v455_v52  ;;  %v459_v54 = vld [vmem:[%s1878_s25 + $0x2e0] sm:$0xff]  ;;  %v461_v55 = vld [vmem:[%s1878_s25 + $0x2f0] sm:$0xff]  ;;  %458 = vst [vmem:[%s1883_s6 + $0x168] sm:$0xff] %v457_v53 }
  0x50   : > { %460 = vst [vmem:[%s1883_s6 + $0x170] sm:$0xff] %v459_v54  ;;  %462 = vst [vmem:[%s1883_s6 + $0x178] sm:$0xff] %v461_v55  ;;  %v463_v56 = vld [vmem:[%s1878_s25 + $0x300] sm:$0xff]  ;;  %v465_v57 = vld [vmem:[%s1878_s25 + $0x310] sm:$0xff] }
  0x51   : > { %v467_v58 = vld [vmem:[%s1878_s25 + $0x320] sm:$0xff]  ;;  %464 = vst [vmem:[%s1883_s6 + $0x180] sm:$0xff] %v463_v56  ;;  %466 = vst [vmem:[%s1883_s6 + $0x188] sm:$0xff] %v465_v57  ;;  %v469_v59 = vld [vmem:[%s1878_s25 + $0x330] sm:$0xff] }
  0x52   : > { %468 = vst [vmem:[%s1883_s6 + $0x190] sm:$0xff] %v467_v58  ;;  %v471_v60 = vld [vmem:[%s1878_s25 + $0x340] sm:$0xff]  ;;  %v473_v61 = vld [vmem:[%s1878_s25 + $0x350] sm:$0xff]  ;;  %470 = vst [vmem:[%s1883_s6 + $0x198] sm:$0xff] %v469_v59 }
  0x53   : > { %472 = vst [vmem:[%s1883_s6 + $0x1a0] sm:$0xff] %v471_v60  ;;  %474 = vst [vmem:[%s1883_s6 + $0x1a8] sm:$0xff] %v473_v61  ;;  %v475_v62 = vld [vmem:[%s1878_s25 + $0x360] sm:$0xff]  ;;  %v477_v63 = vld [vmem:[%s1878_s25 + $0x370] sm:$0xff] }
  0x54   : > { %v479_v0 = vld [vmem:[%s1878_s25 + $0x380] sm:$0xff]  ;;  %476 = vst [vmem:[%s1883_s6 + $0x1b0] sm:$0xff] %v475_v62  ;;  %478 = vst [vmem:[%s1883_s6 + $0x1b8] sm:$0xff] %v477_v63  ;;  %v481_v1 = vld [vmem:[%s1878_s25 + $0x390] sm:$0xff] }
  0x55   : > { %480 = vst [vmem:[%s1883_s6 + $0x1c0] sm:$0xff] %v479_v0  ;;  %v483_v2 = vld [vmem:[%s1878_s25 + $0x3a0] sm:$0xff]  ;;  %v485_v3 = vld [vmem:[%s1878_s25 + $0x3b0] sm:$0xff]  ;;  %482 = vst [vmem:[%s1883_s6 + $0x1c8] sm:$0xff] %v481_v1 }
  0x56   : > { %484 = vst [vmem:[%s1883_s6 + $0x1d0] sm:$0xff] %v483_v2  ;;  %486 = vst [vmem:[%s1883_s6 + $0x1d8] sm:$0xff] %v485_v3  ;;  %v487_v4 = vld [vmem:[%s1878_s25 + $0x3c0] sm:$0xff]  ;;  %v489_v5 = vld [vmem:[%s1878_s25 + $0x3d0] sm:$0xff] }
  0x57   : > { %v491_v6 = vld [vmem:[%s1878_s25 + $0x3e0] sm:$0xff]  ;;  %488 = vst [vmem:[%s1883_s6 + $0x1e0] sm:$0xff] %v487_v4  ;;  %490 = vst [vmem:[%s1883_s6 + $0x1e8] sm:$0xff] %v489_v5  ;;  %v493_v7 = vld [vmem:[%s1878_s25 + $0x3f0] sm:$0xff] }
  0x58   : > { %492 = vst [vmem:[%s1883_s6 + $0x1f0] sm:$0xff] %v491_v6  ;;  %494 = vst [vmem:[%s1883_s6 + $0x1f8] sm:$0xff] %v493_v7 }
  0x59 PF: > { %p1363_p0 = scmp.ge.s32.totalorder %s1741_s22, 1  ;;  %p507_p1 = scmp.lt.s32.totalorder %s1741_s22, 17 }
  0x5b   : > { %p508_p2 = pnand %p1363_p0, %p507_p1 }
  0x5c   : > { %s514_s0 = sand.u32 (!%p508_p2), 1, %s1717_s16   ;;  %s521_s5 = sand.u32 (!%p508_p2), 1, %s1709_s14  }
  0x5d   : > { %511 = sbr.rel (%p508_p2) target bundleno = 422 (0x1a6), region = 85  ;;  %s1364_s23 = sshll.u32 (!%p508_p2), %s514_s0, 6 }
  0x5e   : > { %s1365_s28 = sshll.u32 (!%p508_p2), %s521_s5, 9  ;;  %s548_s7 = sand.u32 (!%p508_p2), 1, %s1701_s12  }
  0x5f   : > { %s1367_s11 = sshll.u32 (!%p508_p2), %s1729_s19, 1  ;;  %s1366_s25 = sshll.u32 (!%p508_p2), %s548_s7, 6 }
  0x60   : > { %p556_p3 = scmp.lt.s32.totalorder (!%p508_p2), %s1367_s11, 3  ;;  %s2022_s4 = scalar_lea.vmem (!%p508_p2), [#allocation3], %s1364_s23 }
  0x61   : > { %s2024_s6 = scalar_lea.vmem (!%p508_p2), [#allocation4], %s1365_s28  ;;  %s2026_s1 = scalar_lea.vmem (!%p508_p2), [#allocation5], %s1366_s25 }
  0x62   : > { %p1368_p4 = scmp.ne.s32.totalorder (!%p508_p2), %s1725_s18, 0 }
  0x64   : > { %s2193_s11 = smov (!%p556_p3, %s1367_s11), 3  ;;  %565 = sbr.rel (%p1368_p4) target bundleno = 107 (0x6b), region = 97 }
  0x65   : > { %s558_s29 = scalar_lea.vmem %s2164_s2, %s2193_s11  ;;  %v1743_v8 = vmov (!%p1368_p4), 0.0  }
  0x66   : > { %566 = vst [vmem:[#allocation2] sm:$0xff] (!%p1368_p4), %v1743_v8  ;;  %567 = vst [vmem:[#allocation2 + $0x8] sm:$0xff] (!%p1368_p4), %v1743_v8 }
  0x67   : > { %568 = vst [vmem:[#allocation2 + $0x10] sm:$0xff] (!%p1368_p4), %v1743_v8  ;;  %569 = vst [vmem:[#allocation2 + $0x18] sm:$0xff] (!%p1368_p4), %v1743_v8 }
  0x68   : > { %570 = vst [vmem:[#allocation2 + $0x20] sm:$0xff] (!%p1368_p4), %v1743_v8  ;;  %571 = vst [vmem:[#allocation2 + $0x28] sm:$0xff] (!%p1368_p4), %v1743_v8 }
  0x69   : > { %572 = vst [vmem:[#allocation2 + $0x30] sm:$0xff] (!%p1368_p4), %v1743_v8  ;;  %573 = vst [vmem:[#allocation2 + $0x38] sm:$0xff] (!%p1368_p4), %v1743_v8 }
  0x6b PF: > { %v1547_v9 = vld [vmem:[%s2024_s6 + $0x4] ss:$8 sps:$4 sm:$0xff]   ;;  %v1551_v11 = vld [vmem:[%s2024_s6] ss:$8 sps:$4 sm:$0xff]   ;;  %v1553_v13 = vld [vmem:[%s2024_s6 + $0x14] ss:$8 sps:$4 sm:$0xff]  }
  0x6c   : > { %v1549_v10 = vld [vmem:[%s2024_s6 + $0x104] ss:$8 sps:$4 sm:$0xff]   ;;  %1014 = vmatprep.subr.bf16.mxu1 %v1547_v9  ;;  %v1552_v12 = vld [vmem:[%s2024_s6 + $0x100] ss:$8 sps:$4 sm:$0xff]   ;;  %v1555_v14 = vld [vmem:[%s2024_s6 + $0x114] ss:$8 sps:$4 sm:$0xff]  }
  0x6d   : > { %1067 = vmatprep.subr.bf16.mxu0 %v1549_v10  ;;  %1015 = vmatpush1.bf16.msra.mxu1 %v1551_v11  ;;  %v1557_v15 = vld [vmem:[%s2024_s6 + $0x10] ss:$8 sps:$4 sm:$0xff]   ;;  %v1559_v17 = vld [vmem:[%s2024_s6 + $0x24] ss:$8 sps:$4 sm:$0xff]   ;;  %v1563_v19 = vld [vmem:[%s2024_s6 + $0x20] ss:$8 sps:$4 sm:$0xff]  }
  0x6e   : > { %1068 = vmatpush1.bf16.msra.mxu0 %v1552_v12  ;;  %1016 = vmatprep.subr.bf16.mxu1 %v1553_v13  ;;  %v1558_v16 = vld [vmem:[%s2024_s6 + $0x110] ss:$8 sps:$4 sm:$0xff]   ;;  %v1561_v18 = vld [vmem:[%s2024_s6 + $0x124] ss:$8 sps:$4 sm:$0xff]   ;;  %v1564_v20 = vld [vmem:[%s2024_s6 + $0x120] ss:$8 sps:$4 sm:$0xff]  }
  0x6f   : > { %1069 = vmatprep.subr.bf16.mxu0 %v1555_v14  ;;  %v1565_v21 = vld [vmem:[%s2024_s6 + $0x34] ss:$8 sps:$4 sm:$0xff]   ;;  %v1569_v23 = vld [vmem:[%s2024_s6 + $0x30] ss:$8 sps:$4 sm:$0xff]   ;;  %v1571_v25 = vld [vmem:[%s2024_s6 + $0x44] ss:$8 sps:$4 sm:$0xff]  }
  0x70   : > { %v1567_v22 = vld [vmem:[%s2024_s6 + $0x134] ss:$8 sps:$4 sm:$0xff]   ;;  %v1570_v24 = vld [vmem:[%s2024_s6 + $0x130] ss:$8 sps:$4 sm:$0xff]   ;;  %v1573_v26 = vld [vmem:[%s2024_s6 + $0x144] ss:$8 sps:$4 sm:$0xff]  }
  0x71   : > { %1017 = vmatpush1.bf16.msra.mxu1 %v1557_v15  ;;  %v1575_v27 = vld [vmem:[%s2024_s6 + $0x40] ss:$8 sps:$4 sm:$0xff]   ;;  %v1577_v29 = vld [vmem:[%s2024_s6 + $0x54] ss:$8 sps:$4 sm:$0xff]   ;;  %v1581_v31 = vld [vmem:[%s2024_s6 + $0x50] ss:$8 sps:$4 sm:$0xff]  }
  0x72   : > { %1070 = vmatpush1.bf16.msra.mxu0 %v1558_v16  ;;  %1018 = vmatprep.subr.bf16.mxu1 %v1559_v17  ;;  %v1576_v28 = vld [vmem:[%s2024_s6 + $0x140] ss:$8 sps:$4 sm:$0xff]   ;;  %v1579_v30 = vld [vmem:[%s2024_s6 + $0x154] ss:$8 sps:$4 sm:$0xff]   ;;  %v1582_v32 = vld [vmem:[%s2024_s6 + $0x150] ss:$8 sps:$4 sm:$0xff]  }
  0x73   : > { %1071 = vmatprep.subr.bf16.mxu0 %v1561_v18  ;;  %v1583_v33 = vld [vmem:[%s2024_s6 + $0x64] ss:$8 sps:$4 sm:$0xff]   ;;  %v1587_v35 = vld [vmem:[%s2024_s6 + $0x60] ss:$8 sps:$4 sm:$0xff]   ;;  %v1589_v37 = vld [vmem:[%s2024_s6 + $0x74] ss:$8 sps:$4 sm:$0xff]  }
  0x74   : > { %v1585_v34 = vld [vmem:[%s2024_s6 + $0x164] ss:$8 sps:$4 sm:$0xff]   ;;  %v1588_v36 = vld [vmem:[%s2024_s6 + $0x160] ss:$8 sps:$4 sm:$0xff]   ;;  %v1591_v38 = vld [vmem:[%s2024_s6 + $0x174] ss:$8 sps:$4 sm:$0xff]  }
  0x75   : > { %1019 = vmatpush1.bf16.msra.mxu1 %v1563_v19  ;;  %v1593_v39 = vld [vmem:[%s2024_s6 + $0x70] ss:$8 sps:$4 sm:$0xff]   ;;  %v1595_v41 = vld [vmem:[%s2024_s6 + $0x84] ss:$8 sps:$4 sm:$0xff]   ;;  %v1599_v43 = vld [vmem:[%s2024_s6 + $0x80] ss:$8 sps:$4 sm:$0xff]  }
  0x76   : > { %1072 = vmatpush1.bf16.msra.mxu0 %v1564_v20  ;;  %1020 = vmatprep.subr.bf16.mxu1 %v1565_v21  ;;  %v1594_v40 = vld [vmem:[%s2024_s6 + $0x170] ss:$8 sps:$4 sm:$0xff]   ;;  %v1597_v42 = vld [vmem:[%s2024_s6 + $0x184] ss:$8 sps:$4 sm:$0xff]   ;;  %v1600_v44 = vld [vmem:[%s2024_s6 + $0x180] ss:$8 sps:$4 sm:$0xff]  }
  0x77   : > { %1073 = vmatprep.subr.bf16.mxu0 %v1567_v22  ;;  %v1601_v45 = vld [vmem:[%s2024_s6 + $0x94] ss:$8 sps:$4 sm:$0xff]   ;;  %v1605_v47 = vld [vmem:[%s2024_s6 + $0x90] ss:$8 sps:$4 sm:$0xff]   ;;  %v1607_v49 = vld [vmem:[%s2024_s6 + $0xa4] ss:$8 sps:$4 sm:$0xff]  }
  0x78   : > { %v1603_v46 = vld [vmem:[%s2024_s6 + $0x194] ss:$8 sps:$4 sm:$0xff]   ;;  %v1606_v48 = vld [vmem:[%s2024_s6 + $0x190] ss:$8 sps:$4 sm:$0xff]   ;;  %v1609_v50 = vld [vmem:[%s2024_s6 + $0x1a4] ss:$8 sps:$4 sm:$0xff]  }
  0x79   : > { %1021 = vmatpush1.bf16.msra.mxu1 %v1569_v23  ;;  %v1611_v51 = vld [vmem:[%s2024_s6 + $0xa0] ss:$8 sps:$4 sm:$0xff]   ;;  %v1613_v53 = vld [vmem:[%s2024_s6 + $0xb4] ss:$8 sps:$4 sm:$0xff]   ;;  %v1617_v55 = vld [vmem:[%s2024_s6 + $0xb0] ss:$8 sps:$4 sm:$0xff]  }
  0x7a   : > { %1074 = vmatpush1.bf16.msra.mxu0 %v1570_v24  ;;  %1022 = vmatprep.subr.bf16.mxu1 %v1571_v25  ;;  %v1612_v52 = vld [vmem:[%s2024_s6 + $0x1a0] ss:$8 sps:$4 sm:$0xff]   ;;  %v1615_v54 = vld [vmem:[%s2024_s6 + $0x1b4] ss:$8 sps:$4 sm:$0xff]   ;;  %v1618_v56 = vld [vmem:[%s2024_s6 + $0x1b0] ss:$8 sps:$4 sm:$0xff]  }
  0x7b   : > { %1075 = vmatprep.subr.bf16.mxu0 %v1573_v26  ;;  %v1619_v57 = vld [vmem:[%s2024_s6 + $0xc4] ss:$8 sps:$4 sm:$0xff]   ;;  %v1623_v61 = vld [vmem:[%s2024_s6 + $0xc0] ss:$8 sps:$4 sm:$0xff]   ;;  %v1625_v63 = vld [vmem:[%s2024_s6 + $0xd4] ss:$8 sps:$4 sm:$0xff]  }
  0x7c   : > { %v1645_v58 = vld [vmem:[%s2022_s4 + $0x4] ss:$16 sps:$4 sm:$0xff]   ;;  %v1648_v60 = vld [vmem:[%s2022_s4 + $0xc] ss:$16 sps:$4 sm:$0xff]   ;;  %v1624_v62 = vld [vmem:[%s2024_s6 + $0x1c0] ss:$8 sps:$4 sm:$0xff]  }
  0x7d   : > { %1023 = vmatpush1.bf16.msra.mxu1 %v1575_v27  ;;  %v1621_v59 = vld [vmem:[%s2024_s6 + $0x1c4] ss:$8 sps:$4 sm:$0xff]   ;;  %1046 = vmatprep.mubr.bf16.mxu1 %v1645_v58  ;;  %v1627_v0 = vld [vmem:[%s2024_s6 + $0x1d4] ss:$8 sps:$4 sm:$0xff]   ;;  %v1629_v1 = vld [vmem:[%s2024_s6 + $0xd0] ss:$8 sps:$4 sm:$0xff]  }
  0x7e   : > { %1076 = vmatpush1.bf16.msra.mxu0 %v1576_v28  ;;  %1024 = vmatprep.subr.bf16.mxu1 %v1577_v29  ;;  %v1630_v2 = vld [vmem:[%s2024_s6 + $0x1d0] ss:$8 sps:$4 sm:$0xff]   ;;  %v1631_v3 = vld [vmem:[%s2024_s6 + $0xe4] ss:$8 sps:$4 sm:$0xff]   ;;  %v1635_v5 = vld [vmem:[%s2024_s6 + $0xe0] ss:$8 sps:$4 sm:$0xff]  }
  0x7f   : > { %1077 = vmatprep.subr.bf16.mxu0 %v1579_v30  ;;  %1099 = vmatprep.mubr.bf16.mxu0 %v1648_v60  ;;  %v1633_v4 = vld [vmem:[%s2024_s6 + $0x1e4] ss:$8 sps:$4 sm:$0xff]   ;;  %v1636_v6 = vld [vmem:[%s2024_s6 + $0x1e0] ss:$8 sps:$4 sm:$0xff]   ;;  %v1637_v7 = vld [vmem:[%s2024_s6 + $0xf4] ss:$8 sps:$4 sm:$0xff]  }
  0x80   : > { %v1639_v8 = vld [vmem:[%s2024_s6 + $0x1f4] ss:$8 sps:$4 sm:$0xff]   ;;  %v1641_v9 = vld [vmem:[%s2024_s6 + $0xf0] ss:$8 sps:$4 sm:$0xff]   ;;  %v574_v18 = vld [vmem:[#allocation2] sm:$0xff]  ;;  %p1441_p5 = scmp.ne.s32.totalorder %s1725_s18, 7 }
  0x81   : > { %1025 = vmatpush1.bf16.msra.mxu1 %v1581_v31  ;;  %v1642_v10 = vld [vmem:[%s2024_s6 + $0x1f0] ss:$8 sps:$4 sm:$0xff]   ;;  %v1649_v13 = vld [vmem:[%s2022_s4 + $0x24] ss:$16 sps:$4 sm:$0xff]   ;;  %v1651_v14 = vld [vmem:[%s2022_s4 + $0x2c] ss:$16 sps:$4 sm:$0xff]  }
  0x82   : > { %1078 = vmatpush1.bf16.msra.mxu0 %v1582_v32  ;;  %1026 = vmatprep.subr.bf16.mxu1 %v1583_v33  ;;  %v1643_v11 = vld [vmem:[%s2022_s4] ss:$16 sps:$4 sm:$0xff]   ;;  %v1646_v12 = vld [vmem:[%s2022_s4 + $0x8] ss:$16 sps:$4 sm:$0xff]  }
  0x83   : > { %1079 = vmatprep.subr.bf16.mxu0 %v1585_v34  ;;  %v1653_v15 = vld [vmem:[%s2022_s4 + $0x20] ss:$16 sps:$4 sm:$0xff]   ;;  %v1654_v16 = vld [vmem:[%s2022_s4 + $0x28] ss:$16 sps:$4 sm:$0xff]  }
  0x84   : > { %v575_v22 = vld [vmem:[#allocation2 + $0x8] sm:$0xff]  ;;  %v576_v26 = vld [vmem:[#allocation2 + $0x10] sm:$0xff]  ;;  %v577_v31 = vld [vmem:[#allocation2 + $0x18] sm:$0xff] }
  0x85   : > { %1027 = vmatpush1.bf16.msra.mxu1 %v1587_v35 }
  0x86   : > { %1080 = vmatpush1.bf16.msra.mxu0 %v1588_v36  ;;  %1028 = vmatprep.subr.bf16.mxu1 %v1589_v37 }
  0x87   : > { %1081 = vmatprep.subr.bf16.mxu0 %v1591_v38  ;;  %v578_v38 = vld [vmem:[#allocation2 + $0x20] sm:$0xff] }
  0x89   : > { %1029 = vmatpush1.bf16.msra.mxu1 %v1593_v39 }
  0x8a   : > { %1082 = vmatpush1.bf16.msra.mxu0 %v1594_v40  ;;  %1030 = vmatprep.subr.bf16.mxu1 %v1595_v41 }
  0x8b   : > { %1083 = vmatprep.subr.bf16.mxu0 %v1597_v42  ;;  %v579_v42 = vld [vmem:[#allocation2 + $0x28] sm:$0xff] }
  0x8d   : > { %1031 = vmatpush1.bf16.msra.mxu1 %v1599_v43 }
  0x8e   : > { %1084 = vmatpush1.bf16.msra.mxu0 %v1600_v44  ;;  %1032 = vmatprep.subr.bf16.mxu1 %v1601_v45 }
  0x8f   : > { %1085 = vmatprep.subr.bf16.mxu0 %v1603_v46  ;;  %v580_v46 = vld [vmem:[#allocation2 + $0x30] sm:$0xff] }
  0x91   : > { %1033 = vmatpush1.bf16.msra.mxu1 %v1605_v47 }
  0x92   : > { %1086 = vmatpush1.bf16.msra.mxu0 %v1606_v48  ;;  %1034 = vmatprep.subr.bf16.mxu1 %v1607_v49 }
  0x93   : > { %1087 = vmatprep.subr.bf16.mxu0 %v1609_v50 }
  0x95   : > { %1035 = vmatpush1.bf16.msra.mxu1 %v1611_v51  ;;  %v581_v51 = vld [vmem:[#allocation2 + $0x38] sm:$0xff] }
  0x96   : > { %1088 = vmatpush1.bf16.msra.mxu0 %v1612_v52  ;;  %1036 = vmatprep.subr.bf16.mxu1 %v1613_v53 }
  0x97   : > { %1089 = vmatprep.subr.bf16.mxu0 %v1615_v54 }
  0x99   : > { %1037 = vmatpush1.bf16.msra.mxu1 %v1617_v55 }
  0x9a   : > { %1090 = vmatpush1.bf16.msra.mxu0 %v1618_v56  ;;  %1038 = vmatprep.subr.bf16.mxu1 %v1619_v57  ;;  %v1150_v57 = vlaneseq (!%p1441_p5) }
  0x9b   : > { %1091 = vmatprep.subr.bf16.mxu0 %v1621_v59  ;;  %v1148_v59 = vld [vmem:[%s558_s29] sm:$0x3] (!%p1441_p5) }
  0x9c   : > { %v1151_v58 = vshrl.u32 (!%p1441_p5), %v1150_v57, 7 }
  0x9d   : > { %1039 = vmatpush1.bf16.msra.mxu1 %v1623_v61 }
  0x9e   : > { %1092 = vmatpush1.bf16.msra.mxu0 %v1624_v62  ;;  %1040 = vmatprep.subr.bf16.mxu1 %v1625_v63  ;;  %v1152_v61 = vsub.s32 (!%p1441_p5), 0, %v1151_v58  ;;  %v1156_v63 = vsub.s32 (!%p1441_p5), 1, %v1151_v58 }
  0x9f   : > { %1093 = vmatprep.subr.bf16.mxu0 %v1627_v0 }
  0xa1   : > { %1041 = vmatpush1.bf16.msra.mxu1 %v1629_v1 }
  0xa2   : > { %1094 = vmatpush1.bf16.msra.mxu0 %v1630_v2  ;;  %1042 = vmatprep.subr.bf16.mxu1 %v1631_v3  ;;  %v1153_v3 = vrot.slane (!%p1441_p5), %v1148_v59, %v1152_v61 }
  0xa3   : > { %1095 = vmatprep.subr.bf16.mxu0 %v1633_v4  ;;  %v1157_v4 = vrot.slane (!%p1441_p5), %v1148_v59, %v1156_v63 }
  0xa5   : > { %1043 = vmatpush1.bf16.msra.mxu1 %v1635_v5 }
  0xa6   : > { %1096 = vmatpush1.bf16.msra.mxu0 %v1636_v6  ;;  %1044 = vmatprep.subr.bf16.mxu1 %v1637_v7 }
  0xa7   : > { %1097 = vmatprep.subr.bf16.mxu0 %v1639_v8 }
  0xa9   : > { %1045 = vmatpush1.bf16.msra.mxu1 %v1641_v9 }
  0xaa   : > { %1098 = vmatpush1.bf16.msra.mxu0 %v1642_v10 }
  0xac   : > { %1047 = vmatmul.mubr.bf16.vlgmr.msra.gmra.mrb[0].mxu1 %v1643_v11 }
  0xad   : > { %1100 = vmatmul.mubr.bf16.vlgmr.msra.gmra.mrb[0].mxu0 %v1646_v12  ;;  %1056 = vmatprep.mubr.bf16.mxu1 %v1649_v13 }
  0xae   : > { %1109 = vmatprep.mubr.bf16.mxu0 %v1651_v14 }
  0xb4   : > { %1057 = vmatmul.mubr.bf16.gmra.mrb[4].mxu1 %v1653_v15 }
  0xb5   : > { %1110 = vmatmul.mubr.bf16.gmra.mrb[4].mxu0 %v1654_v16 }
 0x17f   : > { %v1048_v17 = vpop.f32.mrb[0].mxu1 }
 0x180   : > { %v1101_v19 = vpop.f32.mrb[0].mxu0  ;;  %v1050_v21 = vpop.f32.mrb[1].mxu1 }
 0x181   : > { %v1102_v20 = vadd.f32 %v1101_v19, %v1048_v17  ;;  %v1103_v23 = vpop.f32.mrb[1].mxu0  ;;  %v1052_v25 = vpop.f32.mrb[2].mxu1 }
 0x182   : > { %v1104_v24 = vadd.f32 %v1103_v23, %v1050_v21  ;;  %v1105_v27 = vpop.f32.mrb[2].mxu0  ;;  %v1054_v30 = vpop.f32.mrb[3].mxu1 }
 0x183   : > { %v1120_v28 = vadd.f32 %v1102_v20, %v574_v18  ;;  %v1106_v29 = vadd.f32 %v1105_v27, %v1052_v25  ;;  %v1107_v32 = vpop.f32.mrb[3].mxu0 }
 0x184   : > { %v1121_v33 = vadd.f32 %v1104_v24, %v575_v22  ;;  %v1108_v34 = vadd.f32 %v1107_v32, %v1054_v30 }
 0x185   : > { %1128 = vst [vmem:[#allocation2] sm:$0xff] %v1120_v28  ;;  %v1122_v35 = vadd.f32 %v1106_v29, %v576_v26 }
 0x186   : > { %1129 = vst [vmem:[#allocation2 + $0x8] sm:$0xff] %v1121_v33  ;;  %v1123_v36 = vadd.f32 %v1108_v34, %v577_v31 }
 0x187   : > { %1130 = vst [vmem:[#allocation2 + $0x10] sm:$0xff] %v1122_v35  ;;  %v1058_v37 = vpop.f32.mrb[4].mxu1 }
 0x188   : > { %1131 = vst [vmem:[#allocation2 + $0x18] sm:$0xff] %v1123_v36  ;;  %v1111_v39 = vpop.f32.mrb[4].mxu0  ;;  %v1060_v41 = vpop.f32.mrb[5].mxu1 }
 0x189   : > { %v1112_v40 = vadd.f32 %v1111_v39, %v1058_v37  ;;  %v1113_v43 = vpop.f32.mrb[5].mxu0  ;;  %v1062_v45 = vpop.f32.mrb[6].mxu1 }
 0x18a   : > { %v1114_v44 = vadd.f32 %v1113_v43, %v1060_v41  ;;  %v1115_v47 = vpop.f32.mrb[6].mxu0  ;;  %v1064_v50 = vpop.f32.mrb[7].mxu1  ;;  %1139 = sbr.rel (%p1441_p5) target bundleno = 414 (0x19e), region = 101 }
 0x18b   : > { %v1124_v48 = vadd.f32 %v1112_v40, %v578_v38  ;;  %v1116_v49 = vadd.f32 %v1115_v47, %v1062_v45  ;;  %v1117_v52 = vpop.f32.mrb[7].mxu0 }
 0x18c   : > { %v1125_v53 = vadd.f32 %v1114_v44, %v579_v42  ;;  %v1118_v54 = vadd.f32 %v1117_v52, %v1064_v50  ;;  %v1140_v60 = vld [vmem:[#allocation2] sm:$0xff] (!%p1441_p5) }
 0x18d   : > { %1132 = vst [vmem:[#allocation2 + $0x20] sm:$0xff] %v1124_v48  ;;  %v1126_v55 = vadd.f32 %v1116_v49, %v580_v46  ;;  %v1141_v62 = vld [vmem:[#allocation2 + $0x8] sm:$0xff] (!%p1441_p5)  ;;  %v1160_v8 = vadd.f32 (!%p1441_p5), %v1153_v3, %v1140_v60 }
 0x18e   : > { %1133 = vst [vmem:[#allocation2 + $0x28] sm:$0xff] %v1125_v53  ;;  %v1127_v56 = vadd.f32 %v1118_v54, %v581_v51  ;;  %v1142_v0 = vld [vmem:[#allocation2 + $0x10] sm:$0xff] (!%p1441_p5)  ;;  %v1161_v9 = vadd.f32 (!%p1441_p5), %v1157_v4, %v1141_v62 }
 0x18f   : > { %1134 = vst [vmem:[#allocation2 + $0x30] sm:$0xff] %v1126_v55  ;;  %v1143_v1 = vld [vmem:[#allocation2 + $0x18] sm:$0xff] (!%p1441_p5)  ;;  %v1162_v10 = vadd.f32 (!%p1441_p5), %v1153_v3, %v1142_v0  ;;  %vm1168_vm0 = vcmp.ge.f32.partialorder (!%p1441_p5), %v1160_v8, 0.0  ;;  %v1176_v16 = vmul.f32 (!%p1441_p5), 0.2, %v1160_v8 }
 0x190   : > { %1135 = vst [vmem:[#allocation2 + $0x38] sm:$0xff] %v1127_v56  ;;  %v1163_v11 = vadd.f32 (!%p1441_p5), %v1157_v4, %v1143_v1  ;;  %vm1169_vm1 = vcmp.ge.f32.partialorder (!%p1441_p5), %v1161_v9, 0.0  ;;  %v1177_v17 = vmul.f32 (!%p1441_p5), 0.2, %v1161_v9 }
 0x191   : > { %vm1170_vm2 = vcmp.ge.f32.partialorder %v1162_v10, 0.0  ;;  %v1178_v18 = vmul.f32 0.2, %v1162_v10  ;;  %v1184_v20 = vsel %vm1168_vm0, %v1160_v8, %v1176_v16 }
 0x192   : > { %vm1171_vm3 = vcmp.ge.f32.partialorder %v1163_v11, 0.0  ;;  %v1179_v19 = vmul.f32 0.2, %v1163_v11  ;;  %v1185_v21 = vsel %vm1169_vm1, %v1161_v9, %v1177_v17  ;;  %1192 = vst [vmem:[%s2026_s1] sm:$0xff] %v1184_v20 }
 0x193   : > { %1193 = vst [vmem:[%s2026_s1 + $0x8] sm:$0xff] %v1185_v21  ;;  %v1186_v23 = vsel %vm1170_vm2, %v1162_v10, %v1178_v18 }
 0x194   : > { %v1144_v2 = vld [vmem:[#allocation2 + $0x20] sm:$0xff]  ;;  %v1187_v24 = vsel %vm1171_vm3, %v1163_v11, %v1179_v19  ;;  %1194 = vst [vmem:[%s2026_s1 + $0x10] sm:$0xff] %v1186_v23 }
 0x195   : > { %v1145_v5 = vld [vmem:[#allocation2 + $0x28] sm:$0xff]  ;;  %v1164_v12 = vadd.f32 %v1153_v3, %v1144_v2  ;;  %1195 = vst [vmem:[%s2026_s1 + $0x18] sm:$0xff] %v1187_v24 }
 0x196   : > { %v1146_v6 = vld [vmem:[#allocation2 + $0x30] sm:$0xff]  ;;  %v1165_v13 = vadd.f32 %v1157_v4, %v1145_v5 }
 0x197   : > { %v1147_v7 = vld [vmem:[#allocation2 + $0x38] sm:$0xff]  ;;  %v1166_v14 = vadd.f32 %v1153_v3, %v1146_v6  ;;  %vm1172_vm4 = vcmp.ge.f32.partialorder %v1164_v12, 0.0  ;;  %v1180_v22 = vmul.f32 0.2, %v1164_v12 }
 0x198   : > { %v1167_v15 = vadd.f32 %v1157_v4, %v1147_v7  ;;  %vm1173_vm5 = vcmp.ge.f32.partialorder %v1165_v13, 0.0  ;;  %v1181_v25 = vmul.f32 0.2, %v1165_v13 }
 0x199   : > { %v1188_v26 = vsel %vm1172_vm4, %v1164_v12, %v1180_v22  ;;  %vm1174_vm6 = vcmp.ge.f32.partialorder %v1166_v14, 0.0  ;;  %v1182_v27 = vmul.f32 0.2, %v1166_v14 }
 0x19a   : > { %vm1175_vm7 = vcmp.ge.f32.partialorder %v1167_v15, 0.0  ;;  %1196 = vst [vmem:[%s2026_s1 + $0x20] sm:$0xff] %v1188_v26  ;;  %v1189_v28 = vsel %vm1173_vm5, %v1165_v13, %v1181_v25  ;;  %v1183_v29 = vmul.f32 0.2, %v1167_v15 }
 0x19b   : > { %1197 = vst [vmem:[%s2026_s1 + $0x28] sm:$0xff] %v1189_v28  ;;  %v1190_v30 = vsel %vm1174_vm6, %v1166_v14, %v1182_v27 }
 0x19c   : > { %1198 = vst [vmem:[%s2026_s1 + $0x30] sm:$0xff] %v1190_v30  ;;  %v1191_v31 = vsel %vm1175_vm7, %v1167_v15, %v1183_v29 }
 0x19d   : > { %1199 = vst [vmem:[%s2026_s1 + $0x38] sm:$0xff] %v1191_v31 }
 0x19e PF: > { %1206 = sbr.rel (!%p1858_p12) target bundleno = 422 (0x1a6), region = 105  ;;  %s1449_s16 = sshll.u32 (%p1858_p12), %s1729_s19, 4  ;;  %v1225_v32 = vld [vmem:[%s2026_s1] sm:$0xff] (%p1858_p12)  ;;  %v1227_v33 = vld [vmem:[%s2026_s1 + $0x8] sm:$0xff] (%p1858_p12)  ;;  %v1229_v34 = vld [vmem:[%s2026_s1 + $0x10] sm:$0xff] (%p1858_p12) }
 0x19f   : > { %s1212_s5 = scalar_lea.vmem (%p1858_p12), %s2165_s3, %s1449_s16  ;;  %v1231_v35 = vld [vmem:[%s2026_s1 + $0x18] sm:$0xff] (%p1858_p12) }
 0x1a0   : > { %1226 = vst [vmem:[%s1212_s5] sm:$0xff] (%p1858_p12), %v1225_v32  ;;  %1228 = vst [vmem:[%s1212_s5 + $0x8] sm:$0xff] (%p1858_p12), %v1227_v33 }
 0x1a1   : > { %v1233_v36 = vld [vmem:[%s2026_s1 + $0x20] sm:$0xff] (%p1858_p12)  ;;  %1230 = vst [vmem:[%s1212_s5 + $0x20] sm:$0xff] (%p1858_p12), %v1229_v34  ;;  %1232 = vst [vmem:[%s1212_s5 + $0x28] sm:$0xff] (%p1858_p12), %v1231_v35 }
 0x1a2   : > { %v1235_v37 = vld [vmem:[%s2026_s1 + $0x28] sm:$0xff] (%p1858_p12)  ;;  %1234 = vst [vmem:[%s1212_s5 + $0x40] sm:$0xff] (%p1858_p12), %v1233_v36 }
 0x1a3   : > { %1236 = vst [vmem:[%s1212_s5 + $0x48] sm:$0xff] (%p1858_p12), %v1235_v37  ;;  %v1237_v38 = vld [vmem:[%s2026_s1 + $0x30] sm:$0xff] (%p1858_p12) }
 0x1a4   : > { %v1239_v39 = vld [vmem:[%s2026_s1 + $0x38] sm:$0xff] (%p1858_p12)  ;;  %1238 = vst [vmem:[%s1212_s5 + $0x60] sm:$0xff] (%p1858_p12), %v1237_v38 }
 0x1a5   : > { %1240 = vst [vmem:[%s1212_s5 + $0x68] sm:$0xff] %v1239_v39 }
 0x1a6 PF: > { %s13_s22 = sadd.s32 1, %s1741_s22   ;;  %s2175_s10 = sld [smem:[#allocation6_spill]] }
 0x1a7   : > { %p10_p6 = scmp.ge.s32.totalorder %s13_s22, 18   ;;  %s2176_s12 = smov %s1705_s13 }
 0x1a8   : > { %s2177_s13 = smov %s1856_s9  ;;  %s2178_s14 = smov %s1713_s15 }
 0x1a9   : > { %s2179_s15 = smov %s1853_s8  ;;  %s2180_s16 = smov %s1721_s17 }
 0x1aa   : > { %s2181_s17 = smov %s1839_s30  ;;  %s2182_s18 = smov %s1733_s20 }
 0x1ab   : > { %s2183_s19 = smov %s1737_s21  ;;  %s2184_s20 = smov %s2187_s24 }
 0x1ac   : > { %s2185_s21 = smov %s2175_s10  ;;  %12 = sbr.rel (!%p10_p6) target bundleno = 9 (0x9), region = 170 }

// kernel: _lambda_.29
= control target key start
LH: loop header
LB: loop body
LE: loop exit
PB: predicated region body
PF: predicated region fallthrough
CT: control target
= control target key end

     0   :  { %s1105_s12 = smov 0   ;;  %s1107_s13 = smov 0   ;;  %s1231_s0 = inlined_call_operand.vmem [shape: bf16[32,8192], index: 0, kind: input, shape index: {}]   ;;  %s1232_s1 = inlined_call_operand.vmem [shape: bf16[8192,128], index: 1, kind: input, shape index: {}]   ;;  %s1233_s2 = inlined_call_operand.vmem [shape: f32[1,128], index: 2, kind: input, shape index: {}]   ;;  %s1234_s3 = inlined_call_operand.vmem [shape: f32[32,128], index: 3, kind: output, shape index: {}]  }
   0x1   :  { %s1109_s14 = smov 0   ;;  %s1111_s15 = smov 0  }
   0x2   :  { %s1113_s16 = smov 0  }
   0x3 LB: > { %s25_s17 = sadd.s32 1, %s1078_s15  ;;  %p48_p1 = scmp.ne.s32.totalorder %s1070_s13, %s1066_s12  ;;  %s1082_s16 = sphi %s1113_s16, %s13_s16   ;;  %s1078_s15 = sphi %s1111_s15, %s1238_s15   ;;  %s1074_s14 = sphi %s1109_s14, %s1237_s14   ;;  %s1070_s13 = sphi %s1107_s13, %s1236_s13   ;;  %s1066_s12 = sphi %s1105_s12, %s1235_s12  }
   0x4   : > { %p26_p0 = scmp.ge.s32.totalorder %s25_s17, 16  ;;  %p49_p2 = scmp.eq.s32.totalorder %s1082_s16, 0 }
   0x5   : > { %s41_s19 = sadd.s32 1, %s1070_s13  ;;  %p847_p5 = scmp.ge.s32.totalorder %s1082_s16, 16 }
   0x6   : > { %s1240_s17 = smov (%p26_p0, %s25_s17), 0  ;;  %p50_p3 = por %p49_p2, %p48_p1 }
   0x7   : > { %s37_s18 = ssub.s32 %s1078_s15, %s1240_s17  ;;  %162 = sbr.rel (%p847_p5) target bundleno = 22 (0x16), region = 20 }
   0x8   : > { %p39_p4 = scmp.eq.s32.totalorder %s37_s18, 0 }
   0xa   : > { %s1140_s20 = scalar_select %p39_p4, %s1070_s13, %s41_s19  }
   0xe   : > { %165 = sbr.rel (!%p50_p3) target bundleno = 22 (0x16), region = 24  ;;  %s167_s21 = sand.u32 (%p50_p3), 1, %s1070_s13  }
   0xf   : > { %s902_s22 = sshll.u32 (%p50_p3), %s1078_s15, 4  ;;  %s848_s23 = sshll.u32 (%p50_p3), %s167_s21, 6 }
  0x10   : > { %s175_s26 = scalar_lea.vmem (%p50_p3), %s1231_s0, %s902_s22  ;;  %s169_s27 = scalar_lea.vmem (%p50_p3), [#allocation3], %s848_s23 }
  0x11   : > { %v188_v0 = vld [vmem:[%s175_s26] sm:$0xff] (%p50_p3)  ;;  %v190_v1 = vld [vmem:[%s175_s26 + $0x8] sm:$0xff] (%p50_p3) }
  0x12   : > { %v192_v2 = vld [vmem:[%s175_s26 + $0x100] sm:$0xff] (%p50_p3)  ;;  %189 = vst [vmem:[%s169_s27] sm:$0xff] (%p50_p3), %v188_v0  ;;  %191 = vst [vmem:[%s169_s27 + $0x8] sm:$0xff] (%p50_p3), %v190_v1  ;;  %v194_v3 = vld [vmem:[%s175_s26 + $0x108] sm:$0xff] (%p50_p3) }
  0x13   : > { %193 = vst [vmem:[%s169_s27 + $0x10] sm:$0xff] (%p50_p3), %v192_v2  ;;  %v196_v4 = vld [vmem:[%s175_s26 + $0x200] sm:$0xff] (%p50_p3)  ;;  %v198_v5 = vld [vmem:[%s175_s26 + $0x208] sm:$0xff] (%p50_p3)  ;;  %195 = vst [vmem:[%s169_s27 + $0x18] sm:$0xff] (%p50_p3), %v194_v3 }
  0x14   : > { %197 = vst [vmem:[%s169_s27 + $0x20] sm:$0xff] (%p50_p3), %v196_v4  ;;  %199 = vst [vmem:[%s169_s27 + $0x28] sm:$0xff] (%p50_p3), %v198_v5  ;;  %v200_v6 = vld [vmem:[%s175_s26 + $0x300] sm:$0xff] (%p50_p3)  ;;  %v202_v7 = vld [vmem:[%s175_s26 + $0x308] sm:$0xff] (%p50_p3) }
  0x15   : > { %201 = vst [vmem:[%s169_s27 + $0x30] sm:$0xff] %v200_v6  ;;  %203 = vst [vmem:[%s169_s27 + $0x38] sm:$0xff] %v202_v7 }
  0x16 PF: > { %p851_p6 = scmp.ge.s32.totalorder %s1082_s16, 1  ;;  %p220_p7 = scmp.lt.s32.totalorder %s1082_s16, 17 }
  0x18   : > { %p221_p8 = pnand %p851_p6, %p220_p7 }
  0x19   : > { %s227_s28 = sand.u32 (!%p221_p8), 1, %s1066_s12   ;;  %s853_s29 = sshll.u32 (!%p221_p8), %s1074_s14, 6 }
  0x1a   : > { %224 = sbr.rel (%p221_p8) target bundleno = 315 (0x13b), region = 51  ;;  %s852_s30 = sshll.u32 (!%p221_p8), %s227_s28, 6 }
  0x1b   : > { %p267_p9 = scmp.lt.s32.totalorder (!%p221_p8), %s853_s29, 1023  ;;  %s1157_s8 = scalar_lea.vmem (!%p221_p8), [#allocation3], %s852_s30 }
  0x1c   : > { %p855_p10 = scmp.ne.s32.totalorder (!%p221_p8), %s1074_s14, 0 }
  0x21   : > { %s1242_s29 = smov (!%p267_p9, %s853_s29), 1023  ;;  %291 = sbr.rel (%p855_p10) target bundleno = 40 (0x28), region = 59 }
  0x22   : > { %s854_s4 = sshll.u32 %s1242_s29, 2  ;;  %v1084_v8 = vmov (!%p855_p10), 0.0  }
  0x23   : > { %s1155_s7 = scalar_lea.vmem %s1232_s1, %s854_s4  ;;  %292 = vst [vmem:[#allocation2] sm:$0xff] (!%p855_p10), %v1084_v8  ;;  %293 = vst [vmem:[#allocation2 + $0x8] sm:$0xff] (!%p855_p10), %v1084_v8 }
  0x24   : > { %294 = vst [vmem:[#allocation2 + $0x10] sm:$0xff] (!%p855_p10), %v1084_v8  ;;  %295 = vst [vmem:[#allocation2 + $0x18] sm:$0xff] (!%p855_p10), %v1084_v8 }
  0x28 PF: > { %v1000_v9 = vld [vmem:[%s1155_s7 + $0x40] sm:$0xff]   ;;  %v1004_v13 = vld [vmem:[%s1155_s7 + $0x48] sm:$0xff]   ;;  %v1008_v17 = vld [vmem:[%s1155_s7 + $0x50] sm:$0xff]   ;;  %p896_p11 = scmp.ne.s32.totalorder %s1074_s14, 15 }
  0x29   : > { %v1001_v10 = vld [vmem:[%s1155_s7 + $0xc0] sm:$0xff]   ;;  %903 = vmatprep.subr.bf16.mxu0 %v1000_v9  ;;  %v1005_v14 = vld [vmem:[%s1155_s7 + $0xc8] sm:$0xff]   ;;  %v1009_v18 = vld [vmem:[%s1155_s7 + $0xd0] sm:$0xff]  }
  0x2a   : > { %v1002_v11 = vld [vmem:[%s1155_s7] sm:$0xff]   ;;  %931 = vmatprep.subr.bf16.mxu1 %v1001_v10  ;;  %v1006_v15 = vld [vmem:[%s1155_s7 + $0x8] sm:$0xff]   ;;  %v1010_v19 = vld [vmem:[%s1155_s7 + $0x10] sm:$0xff]  }
  0x2b   : > { %v1003_v12 = vld [vmem:[%s1155_s7 + $0x80] sm:$0xff]   ;;  %904 = vmatpush3.bf16.msra.mxu0 %v1002_v11  ;;  %v1007_v16 = vld [vmem:[%s1155_s7 + $0x88] sm:$0xff]   ;;  %v1011_v20 = vld [vmem:[%s1155_s7 + $0x90] sm:$0xff]  }
  0x2c   : > { %932 = vmatpush3.bf16.msra.mxu1 %v1003_v12  ;;  %905 = vmatprep.subr.bf16.mxu0 %v1004_v13  ;;  %v1012_v21 = vld [vmem:[%s1155_s7 + $0x58] sm:$0xff]   ;;  %v1016_v25 = vld [vmem:[%s1155_s7 + $0x60] sm:$0xff]   ;;  %v1020_v29 = vld [vmem:[%s1155_s7 + $0x68] sm:$0xff]  }
  0x2d   : > { %933 = vmatprep.subr.bf16.mxu1 %v1005_v14  ;;  %v1013_v22 = vld [vmem:[%s1155_s7 + $0xd8] sm:$0xff]   ;;  %v1017_v26 = vld [vmem:[%s1155_s7 + $0xe0] sm:$0xff]   ;;  %v1021_v30 = vld [vmem:[%s1155_s7 + $0xe8] sm:$0xff]  }
  0x2e   : > { %v1014_v23 = vld [vmem:[%s1155_s7 + $0x18] sm:$0xff]   ;;  %v1018_v27 = vld [vmem:[%s1155_s7 + $0x20] sm:$0xff]   ;;  %v1022_v31 = vld [vmem:[%s1155_s7 + $0x28] sm:$0xff]  }
  0x2f   : > { %906 = vmatpush3.bf16.msra.mxu0 %v1006_v15  ;;  %v1015_v24 = vld [vmem:[%s1155_s7 + $0x98] sm:$0xff]   ;;  %v1019_v28 = vld [vmem:[%s1155_s7 + $0xa0] sm:$0xff]   ;;  %v1023_v32 = vld [vmem:[%s1155_s7 + $0xa8] sm:$0xff]  }
  0x30   : > { %934 = vmatpush3.bf16.msra.mxu1 %v1007_v16  ;;  %907 = vmatprep.subr.bf16.mxu0 %v1008_v17  ;;  %v1024_v33 = vld [vmem:[%s1155_s7 + $0x70] sm:$0xff]   ;;  %v1028_v37 = vld [vmem:[%s1155_s7 + $0x78] sm:$0xff]   ;;  %v296_v58 = vld [vmem:[#allocation2] sm:$0xff] }
  0x31   : > { %935 = vmatprep.subr.bf16.mxu1 %v1009_v18  ;;  %v1025_v34 = vld [vmem:[%s1155_s7 + $0xf0] sm:$0xff]   ;;  %v1029_v38 = vld [vmem:[%s1155_s7 + $0xf8] sm:$0xff]   ;;  %v297_v63 = vld [vmem:[#allocation2 + $0x8] sm:$0xff] }
  0x32   : > { %v1026_v35 = vld [vmem:[%s1155_s7 + $0x30] sm:$0xff]   ;;  %v1030_v39 = vld [vmem:[%s1155_s7 + $0x38] sm:$0xff]  }
  0x33   : > { %908 = vmatpush3.bf16.msra.mxu0 %v1010_v19  ;;  %v1027_v36 = vld [vmem:[%s1155_s7 + $0xb0] sm:$0xff]   ;;  %v1031_v40 = vld [vmem:[%s1155_s7 + $0xb8] sm:$0xff]  }
  0x34   : > { %936 = vmatpush3.bf16.msra.mxu1 %v1011_v20  ;;  %909 = vmatprep.subr.bf16.mxu0 %v1012_v21  ;;  %v1032_v41 = vld [vmem:[%s1157_s8] ss:$16 sps:$4 sm:$0xff]   ;;  %v1034_v42 = vld [vmem:[%s1157_s8 + $0x4] ss:$16 sps:$4 sm:$0xff]   ;;  %v1035_v43 = vld [vmem:[%s1157_s8 + $0x8] ss:$16 sps:$4 sm:$0xff]  }
  0x35   : > { %937 = vmatprep.subr.bf16.mxu1 %v1013_v22  ;;  %v1037_v44 = vld [vmem:[%s1157_s8 + $0xc] ss:$16 sps:$4 sm:$0xff]   ;;  %636 = vmatprep.mubr.bf16.mxu0 %v1034_v42  ;;  %v1038_v45 = vld [vmem:[%s1157_s8 + $0x24] ss:$16 sps:$4 sm:$0xff]   ;;  %v1042_v47 = vld [vmem:[%s1157_s8 + $0x20] ss:$16 sps:$4 sm:$0xff]  }
  0x36   : > { %685 = vmatprep.mubr.bf16.mxu1 %v1037_v44  ;;  %v1040_v46 = vld [vmem:[%s1157_s8 + $0x2c] ss:$16 sps:$4 sm:$0xff]   ;;  %v1043_v48 = vld [vmem:[%s1157_s8 + $0x28] ss:$16 sps:$4 sm:$0xff]   ;;  %v298_v12 = vld [vmem:[#allocation2 + $0x10] sm:$0xff] }
  0x37   : > { %910 = vmatpush3.bf16.msra.mxu0 %v1014_v23  ;;  %v299_v17 = vld [vmem:[#allocation2 + $0x18] sm:$0xff]  ;;  %v897_v22 = vld [vmem:[%s1233_s2] ss:$0 sm:$0xff] (!%p896_p11) }
  0x38   : > { %938 = vmatpush3.bf16.msra.mxu1 %v1015_v24  ;;  %911 = vmatprep.subr.bf16.mxu0 %v1016_v25 }
  0x39   : > { %939 = vmatprep.subr.bf16.mxu1 %v1017_v26 }
  0x3b   : > { %912 = vmatpush3.bf16.msra.mxu0 %v1018_v27 }
  0x3c   : > { %940 = vmatpush3.bf16.msra.mxu1 %v1019_v28  ;;  %913 = vmatprep.subr.bf16.mxu0 %v1020_v29 }
  0x3d   : > { %941 = vmatprep.subr.bf16.mxu1 %v1021_v30 }
  0x3f   : > { %914 = vmatpush3.bf16.msra.mxu0 %v1022_v31 }
  0x40   : > { %942 = vmatpush3.bf16.msra.mxu1 %v1023_v32  ;;  %915 = vmatprep.subr.bf16.mxu0 %v1024_v33 }
  0x41   : > { %943 = vmatprep.subr.bf16.mxu1 %v1025_v34 }
  0x43   : > { %916 = vmatpush3.bf16.msra.mxu0 %v1026_v35 }
  0x44   : > { %944 = vmatpush3.bf16.msra.mxu1 %v1027_v36  ;;  %917 = vmatprep.subr.bf16.mxu0 %v1028_v37 }
  0x45   : > { %945 = vmatprep.subr.bf16.mxu1 %v1029_v38 }
  0x47   : > { %918 = vmatpush3.bf16.msra.mxu0 %v1030_v39 }
  0x48   : > { %946 = vmatpush3.bf16.msra.mxu1 %v1031_v40 }
  0x4a   : > { %637 = vmatmul.mubr.bf16.vlgmr.msra.gmra.mrb[0].mxu0 %v1032_v41 }
  0x4b   : > { %686 = vmatmul.mubr.bf16.vlgmr.msra.gmra.mrb[0].mxu1 %v1035_v43  ;;  %644 = vmatprep.mubr.bf16.mxu0 %v1038_v45 }
  0x4c   : > { %693 = vmatprep.mubr.bf16.mxu1 %v1040_v46 }
  0x52   : > { %645 = vmatmul.mubr.bf16.gmra.mrb[4].mxu0 %v1042_v47 }
  0x53   : > { %694 = vmatmul.mubr.bf16.gmra.mrb[4].mxu1 %v1043_v48 }
 0x11d   : > { %v919_v49 = vpop.f32.mrb[0].mxu0 }
 0x11e   : > { %v947_v50 = vpop.f32.mrb[0].mxu1  ;;  %v920_v51 = vpop.f32.mrb[1].mxu0 }
 0x11f   : > { %v921_v52 = vadd.f32 %v920_v51, %v919_v49  ;;  %v948_v53 = vpop.f32.mrb[1].mxu1  ;;  %v922_v54 = vpop.f32.mrb[2].mxu0 }
 0x120   : > { %v949_v55 = vadd.f32 %v948_v53, %v947_v50  ;;  %v950_v56 = vpop.f32.mrb[2].mxu1  ;;  %v923_v57 = vpop.f32.mrb[3].mxu0 }
 0x121   : > { %v924_v59 = vadd.f32 %v923_v57, %v922_v54  ;;  %v951_v60 = vpop.f32.mrb[3].mxu1 }
 0x122   : > { %v688_v61 = vadd.f32 %v949_v55, %v921_v52  ;;  %v952_v62 = vadd.f32 %v951_v60, %v950_v56 }
 0x124   : > { %v702_v0 = vadd.f32 %v688_v61, %v296_v58  ;;  %v691_v1 = vadd.f32 %v952_v62, %v924_v59 }
 0x125   : > { %v925_v2 = vpop.f32.mrb[4].mxu0 }
 0x126   : > { %706 = vst [vmem:[#allocation2] sm:$0xff] %v702_v0  ;;  %v703_v3 = vadd.f32 %v691_v1, %v297_v63  ;;  %v953_v4 = vpop.f32.mrb[4].mxu1  ;;  %v926_v5 = vpop.f32.mrb[5].mxu0 }
 0x127   : > { %v927_v6 = vadd.f32 %v926_v5, %v925_v2  ;;  %v954_v7 = vpop.f32.mrb[5].mxu1  ;;  %v928_v8 = vpop.f32.mrb[6].mxu0 }
 0x128   : > { %707 = vst [vmem:[#allocation2 + $0x8] sm:$0xff] %v703_v3  ;;  %v955_v9 = vadd.f32 %v954_v7, %v953_v4  ;;  %v956_v10 = vpop.f32.mrb[6].mxu1  ;;  %v929_v11 = vpop.f32.mrb[7].mxu0 }
 0x129   : > { %v930_v13 = vadd.f32 %v929_v11, %v928_v8  ;;  %v957_v14 = vpop.f32.mrb[7].mxu1 }
 0x12a   : > { %v696_v15 = vadd.f32 %v955_v9, %v927_v6  ;;  %v958_v16 = vadd.f32 %v957_v14, %v956_v10  ;;  %713 = sbr.rel (%p896_p11) target bundleno = 315 (0x13b), region = 63 }
 0x12c   : > { %v704_v18 = vadd.f32 %v696_v15, %v298_v12  ;;  %v699_v19 = vadd.f32 %v958_v16, %v930_v13 }
 0x12d   : > { %v714_v21 = vld [vmem:[#allocation2] sm:$0xff] (!%p896_p11) }
 0x12e   : > { %708 = vst [vmem:[#allocation2 + $0x10] sm:$0xff] %v704_v18  ;;  %v705_v20 = vadd.f32 %v699_v19, %v299_v17  ;;  %v725_v24 = vadd.f32 (!%p896_p11), %v897_v22, %v714_v21 }
 0x12f   : > { %v715_v23 = vld [vmem:[#allocation2 + $0x8] sm:$0xff] (!%p896_p11) }
 0x130   : > { %709 = vst [vmem:[#allocation2 + $0x18] sm:$0xff] %v705_v20  ;;  %v726_v25 = vadd.f32 (!%p896_p11), %v897_v22, %v715_v23  ;;  %729 = vst [vmem:[%s1234_s3] sm:$0xff] (!%p896_p11), %v725_v24 }
 0x132   : > { %730 = vst [vmem:[%s1234_s3 + $0x8] sm:$0xff] %v726_v25 }
 0x135   : > { %v716_v26 = vld [vmem:[#allocation2 + $0x10] sm:$0xff] }
 0x136   : > { %v727_v28 = vadd.f32 %v897_v22, %v716_v26 }
 0x137   : > { %v717_v27 = vld [vmem:[#allocation2 + $0x18] sm:$0xff] }
 0x138   : > { %v728_v29 = vadd.f32 %v897_v22, %v717_v27  ;;  %731 = vst [vmem:[%s1234_s3 + $0x10] sm:$0xff] %v727_v28 }
 0x13a   : > { %732 = vst [vmem:[%s1234_s3 + $0x18] sm:$0xff] %v728_v29 }
 0x13b PF: > { %s13_s16 = sadd.s32 1, %s1082_s16   ;;  %s1235_s12 = smov %s1070_s13 }
 0x13c   : > { %p10_p12 = scmp.ge.s32.totalorder %s13_s16, 18   ;;  %s1236_s13 = smov %s1140_s20 }
 0x13d   : > { %s1237_s14 = smov %s1078_s15  ;;  %s1238_s15 = smov %s1240_s17 }
 0x13e   :  { %12 = sbr.rel (!%p10_p12) target bundleno = 3 (0x3), region = 104 }

// kernel: _lambda_.20
= control target key start
LH: loop header
LB: loop body
LE: loop exit
PB: predicated region body
PF: predicated region fallthrough
CT: control target
= control target key end

     0   :  { %s434_s1 = inlined_call_operand.vmem [shape: bf16[128,128], index: 1, kind: input, shape index: {}]   ;;  %s435_s0 = inlined_call_operand.vmem [shape: bf16[64,128], index: 0, kind: input, shape index: {}]   ;;  %s436_s2 = inlined_call_operand.vmem [shape: f32[1,128], index: 2, kind: input, shape index: {}]   ;;  %s437_s3 = inlined_call_operand.vmem [shape: f32[64,128], index: 3, kind: output, shape index: {}]  }
   0x1   :  { %v339_v0 = vld [vmem:[%s434_s1] sm:$0xff]   ;;  %v340_v1 = vld [vmem:[%s434_s1 + $0x8] sm:$0xff]   ;;  %v341_v2 = vld [vmem:[%s434_s1 + $0x10] sm:$0xff]  }
   0x2   :  { %299 = vmatprep.subr.bf16.mxu0 %v339_v0  ;;  %323 = vmatprep.subr.bf16.mxu1 %v339_v0  ;;  %v342_v3 = vld [vmem:[%s434_s1 + $0x18] sm:$0xff]   ;;  %v347_v4 = vld [vmem:[%s435_s0] sm:$0xff]   ;;  %v348_v5 = vld [vmem:[%s435_s0 + $0x10] sm:$0xff]  }
   0x3   :  { %300 = vmatpush3.bf16.msra.mxu0 %v339_v0  ;;  %331 = vmatpush3.bf16.msra.mxu1 %v339_v0  ;;  %v343_v6 = vld [vmem:[%s434_s1 + $0x20] sm:$0xff]   ;;  %v344_v7 = vld [vmem:[%s434_s1 + $0x28] sm:$0xff]   ;;  %v345_v8 = vld [vmem:[%s434_s1 + $0x30] sm:$0xff]  }
   0x4   :  { %301 = vmatprep.subr.bf16.mxu0 %v340_v1  ;;  %324 = vmatprep.subr.bf16.mxu1 %v340_v1  ;;  %v346_v9 = vld [vmem:[%s434_s1 + $0x38] sm:$0xff]   ;;  %v349_v10 = vld [vmem:[%s435_s0 + $0x8] sm:$0xff]   ;;  %v286_v12 = vld [vmem:[%s436_s2] ss:$0 sm:$0xff] }
   0x5   :  { %315 = vmatprep.mubr.bf16.mxu0 %v347_v4  ;;  %319 = vmatprep.mubr.bf16.mxu1 %v348_v5  ;;  %v350_v11 = vld [vmem:[%s435_s0 + $0x18] sm:$0xff]  }
   0x7   :  { %302 = vmatpush3.bf16.msra.mxu0 %v340_v1  ;;  %332 = vmatpush3.bf16.msra.mxu1 %v340_v1 }
   0x8   :  { %303 = vmatprep.subr.bf16.mxu0 %v341_v2  ;;  %325 = vmatprep.subr.bf16.mxu1 %v341_v2 }
   0xb   :  { %304 = vmatpush3.bf16.msra.mxu0 %v341_v2  ;;  %333 = vmatpush3.bf16.msra.mxu1 %v341_v2 }
   0xc   :  { %305 = vmatprep.subr.bf16.mxu0 %v342_v3  ;;  %326 = vmatprep.subr.bf16.mxu1 %v342_v3 }
   0xf   :  { %306 = vmatpush3.bf16.msra.mxu0 %v342_v3  ;;  %334 = vmatpush3.bf16.msra.mxu1 %v342_v3 }
  0x10   :  { %307 = vmatprep.subr.bf16.mxu0 %v343_v6  ;;  %327 = vmatprep.subr.bf16.mxu1 %v343_v6 }
  0x13   :  { %308 = vmatpush3.bf16.msra.mxu0 %v343_v6  ;;  %335 = vmatpush3.bf16.msra.mxu1 %v343_v6 }
  0x14   :  { %309 = vmatprep.subr.bf16.mxu0 %v344_v7  ;;  %328 = vmatprep.subr.bf16.mxu1 %v344_v7 }
  0x17   :  { %310 = vmatpush3.bf16.msra.mxu0 %v344_v7  ;;  %336 = vmatpush3.bf16.msra.mxu1 %v344_v7 }
  0x18   :  { %311 = vmatprep.subr.bf16.mxu0 %v345_v8  ;;  %329 = vmatprep.subr.bf16.mxu1 %v345_v8 }
  0x1b   :  { %312 = vmatpush3.bf16.msra.mxu0 %v345_v8  ;;  %337 = vmatpush3.bf16.msra.mxu1 %v345_v8 }
  0x1c   :  { %313 = vmatprep.subr.bf16.mxu0 %v346_v9  ;;  %330 = vmatprep.subr.bf16.mxu1 %v346_v9 }
  0x1f   :  { %314 = vmatpush3.bf16.msra.mxu0 %v346_v9  ;;  %338 = vmatpush3.bf16.msra.mxu1 %v346_v9 }
  0x22   :  { %316 = vmatmul.mubr.bf16.vlgmr.msra.gmra.mrb[0].mxu0 %v349_v10  ;;  %320 = vmatmul.mubr.bf16.vlgmr.msra.gmra.mrb[0].mxu1 %v350_v11 }
  0xf5   :  { %v317_v13 = vpop.f32.mrb[0].mxu0  ;;  %v321_v14 = vpop.f32.mrb[0].mxu1 }
  0xf6   :  { %v232_v15 = vadd.f32 %v317_v13, %v286_v12  ;;  %v236_v16 = vadd.f32 %v321_v14, %v286_v12  ;;  %v165_v17 = vpop.f32.mrb[1].mxu0  ;;  %v181_v18 = vpop.f32.mrb[1].mxu1 }
  0xf7   :  { %v230_v19 = vadd.f32 %v286_v12, %v165_v17  ;;  %v234_v20 = vadd.f32 %v286_v12, %v181_v18  ;;  %v318_v21 = vpop.f32.mrb[2].mxu0  ;;  %v322_v22 = vpop.f32.mrb[2].mxu1 }
  0xf8   :  { %vm240_vm0 = vcmp.ge.f32.partialorder %v232_v15, 0.0  ;;  %v248_v23 = vmul.f32 0.2, %v232_v15  ;;  %vm244_vm1 = vcmp.ge.f32.partialorder %v236_v16, 0.0  ;;  %v252_v24 = vmul.f32 0.2, %v236_v16 }
  0xf9   :  { %vm238_vm2 = vcmp.ge.f32.partialorder %v230_v19, 0.0  ;;  %v246_v25 = vmul.f32 0.2, %v230_v19  ;;  %vm242_vm3 = vcmp.ge.f32.partialorder %v234_v20, 0.0  ;;  %v250_v26 = vmul.f32 0.2, %v234_v20 }
  0xfa   :  { %v256_v27 = vsel %vm240_vm0, %v232_v15, %v248_v23  ;;  %v260_v28 = vsel %vm244_vm1, %v236_v16, %v252_v24  ;;  %v233_v29 = vadd.f32 %v318_v21, %v286_v12  ;;  %v237_v30 = vadd.f32 %v322_v22, %v286_v12  ;;  %v168_v31 = vpop.f32.mrb[3].mxu0  ;;  %v184_v32 = vpop.f32.mrb[3].mxu1 }
  0xfb   :  { %264 = vst [vmem:[%s437_s3 + $0x10] sm:$0xff] %v256_v27  ;;  %268 = vst [vmem:[%s437_s3 + $0x30] sm:$0xff] %v260_v28  ;;  %v254_v33 = vsel %vm238_vm2, %v230_v19, %v246_v25  ;;  %v258_v34 = vsel %vm242_vm3, %v234_v20, %v250_v26  ;;  %v231_v35 = vadd.f32 %v286_v12, %v168_v31 }
  0xfc   :  { %v235_v36 = vadd.f32 %v286_v12, %v184_v32  ;;  %262 = vst [vmem:[%s437_s3] sm:$0xff] %v254_v33  ;;  %266 = vst [vmem:[%s437_s3 + $0x20] sm:$0xff] %v258_v34  ;;  %vm241_vm4 = vcmp.ge.f32.partialorder %v233_v29, 0.0  ;;  %v249_v37 = vmul.f32 0.2, %v233_v29  ;;  %vm245_vm5 = vcmp.ge.f32.partialorder %v237_v30, 0.0 }
  0xfd   :  { %v253_v38 = vmul.f32 0.2, %v237_v30  ;;  %vm239_vm6 = vcmp.ge.f32.partialorder %v231_v35, 0.0  ;;  %v247_v39 = vmul.f32 0.2, %v231_v35 }
  0xfe   :  { %vm243_vm7 = vcmp.ge.f32.partialorder %v235_v36, 0.0  ;;  %v251_v40 = vmul.f32 0.2, %v235_v36  ;;  %v257_v41 = vsel %vm241_vm4, %v233_v29, %v249_v37 }
  0xff   :  { %v261_v42 = vsel %vm245_vm5, %v237_v30, %v253_v38  ;;  %265 = vst [vmem:[%s437_s3 + $0x18] sm:$0xff] %v257_v41  ;;  %v255_v43 = vsel %vm239_vm6, %v231_v35, %v247_v39 }
 0x100   :  { %269 = vst [vmem:[%s437_s3 + $0x38] sm:$0xff] %v261_v42  ;;  %v259_v44 = vsel %vm243_vm7, %v235_v36, %v251_v40  ;;  %263 = vst [vmem:[%s437_s3 + $0x8] sm:$0xff] %v255_v43 }
 0x101   :  { %267 = vst [vmem:[%s437_s3 + $0x28] sm:$0xff] %v259_v44 }

// kernel: _lambda_.21
= control target key start
LH: loop header
LB: loop body
LE: loop exit
PB: predicated region body
PF: predicated region fallthrough
CT: control target
= control target key end

     0   :  { %s1117_s12 = smov 0   ;;  %s1119_s13 = smov 0   ;;  %s1243_s0 = inlined_call_operand.vmem [shape: bf16[32,1024], index: 0, kind: input, shape index: {}]   ;;  %s1244_s1 = inlined_call_operand.vmem [shape: bf16[1024,128], index: 1, kind: input, shape index: {}]   ;;  %s1245_s2 = inlined_call_operand.vmem [shape: f32[1,128], index: 2, kind: input, shape index: {}]   ;;  %s1246_s3 = inlined_call_operand.vmem [shape: f32[32,128], index: 3, kind: output, shape index: {}]  }
   0x1   :  { %s1121_s14 = smov 0   ;;  %s1123_s15 = smov 0  }
   0x2   :  { %s1125_s16 = smov 0  }
   0x3 LB: > { %s25_s17 = sadd.s32 1, %s1090_s15  ;;  %p48_p1 = scmp.ne.s32.totalorder %s1082_s13, %s1078_s12  ;;  %s1094_s16 = sphi %s1125_s16, %s13_s16   ;;  %s1090_s15 = sphi %s1123_s15, %s1250_s15   ;;  %s1086_s14 = sphi %s1121_s14, %s1249_s14   ;;  %s1082_s13 = sphi %s1119_s13, %s1248_s13   ;;  %s1078_s12 = sphi %s1117_s12, %s1247_s12  }
   0x4   : > { %p26_p0 = scmp.ge.s32.totalorder %s25_s17, 2  ;;  %p49_p2 = scmp.eq.s32.totalorder %s1094_s16, 0 }
   0x5   : > { %s41_s19 = sadd.s32 1, %s1082_s13  ;;  %p859_p5 = scmp.ge.s32.totalorder %s1094_s16, 2 }
   0x6   : > { %s1252_s17 = smov (%p26_p0, %s25_s17), 0  ;;  %p50_p3 = por %p49_p2, %p48_p1 }
   0x7   : > { %s37_s18 = ssub.s32 %s1090_s15, %s1252_s17  ;;  %162 = sbr.rel (%p859_p5) target bundleno = 22 (0x16), region = 20 }
   0x8   : > { %p39_p4 = scmp.eq.s32.totalorder %s37_s18, 0 }
   0xa   : > { %s1152_s20 = scalar_select %p39_p4, %s1082_s13, %s41_s19  }
   0xe   : > { %165 = sbr.rel (!%p50_p3) target bundleno = 22 (0x16), region = 24  ;;  %s167_s21 = sand.u32 (%p50_p3), 1, %s1082_s13  }
   0xf   : > { %s914_s22 = sshll.u32 (%p50_p3), %s1090_s15, 4  ;;  %s860_s23 = sshll.u32 (%p50_p3), %s167_s21, 6 }
  0x10   : > { %s175_s26 = scalar_lea.vmem (%p50_p3), %s1243_s0, %s914_s22  ;;  %s169_s27 = scalar_lea.vmem (%p50_p3), [#allocation3], %s860_s23 }
  0x11   : > { %v188_v0 = vld [vmem:[%s175_s26] sm:$0xff] (%p50_p3)  ;;  %v190_v1 = vld [vmem:[%s175_s26 + $0x8] sm:$0xff] (%p50_p3) }
  0x12   : > { %v192_v2 = vld [vmem:[%s175_s26 + $0x20] sm:$0xff] (%p50_p3)  ;;  %189 = vst [vmem:[%s169_s27] sm:$0xff] (%p50_p3), %v188_v0  ;;  %191 = vst [vmem:[%s169_s27 + $0x8] sm:$0xff] (%p50_p3), %v190_v1  ;;  %v194_v3 = vld [vmem:[%s175_s26 + $0x28] sm:$0xff] (%p50_p3) }
  0x13   : > { %193 = vst [vmem:[%s169_s27 + $0x10] sm:$0xff] (%p50_p3), %v192_v2  ;;  %v196_v4 = vld [vmem:[%s175_s26 + $0x40] sm:$0xff] (%p50_p3)  ;;  %v198_v5 = vld [vmem:[%s175_s26 + $0x48] sm:$0xff] (%p50_p3)  ;;  %195 = vst [vmem:[%s169_s27 + $0x18] sm:$0xff] (%p50_p3), %v194_v3 }
  0x14   : > { %197 = vst [vmem:[%s169_s27 + $0x20] sm:$0xff] (%p50_p3), %v196_v4  ;;  %199 = vst [vmem:[%s169_s27 + $0x28] sm:$0xff] (%p50_p3), %v198_v5  ;;  %v200_v6 = vld [vmem:[%s175_s26 + $0x60] sm:$0xff] (%p50_p3)  ;;  %v202_v7 = vld [vmem:[%s175_s26 + $0x68] sm:$0xff] (%p50_p3) }
  0x15   : > { %201 = vst [vmem:[%s169_s27 + $0x30] sm:$0xff] %v200_v6  ;;  %203 = vst [vmem:[%s169_s27 + $0x38] sm:$0xff] %v202_v7 }
  0x16 PF: > { %p863_p6 = scmp.ge.s32.totalorder %s1094_s16, 1  ;;  %p220_p7 = scmp.lt.s32.totalorder %s1094_s16, 3 }
  0x18   : > { %p221_p8 = pnand %p863_p6, %p220_p7 }
  0x19   : > { %s227_s28 = sand.u32 (!%p221_p8), 1, %s1078_s12   ;;  %s865_s29 = sshll.u32 (!%p221_p8), %s1086_s14, 6 }
  0x1a   : > { %224 = sbr.rel (%p221_p8) target bundleno = 318 (0x13e), region = 51  ;;  %s864_s30 = sshll.u32 (!%p221_p8), %s227_s28, 6 }
  0x1b   : > { %p267_p9 = scmp.lt.s32.totalorder (!%p221_p8), %s865_s29, 127  ;;  %s1169_s8 = scalar_lea.vmem (!%p221_p8), [#allocation3], %s864_s30 }
  0x1c   : > { %p867_p10 = scmp.ne.s32.totalorder (!%p221_p8), %s1086_s14, 0 }
  0x21   : > { %s1254_s29 = smov (!%p267_p9, %s865_s29), 127  ;;  %291 = sbr.rel (%p867_p10) target bundleno = 40 (0x28), region = 59 }
  0x22   : > { %s866_s4 = sshll.u32 %s1254_s29, 2  ;;  %v1096_v8 = vmov (!%p867_p10), 0.0  }
  0x23   : > { %s1167_s7 = scalar_lea.vmem %s1244_s1, %s866_s4  ;;  %292 = vst [vmem:[#allocation2] sm:$0xff] (!%p867_p10), %v1096_v8  ;;  %293 = vst [vmem:[#allocation2 + $0x8] sm:$0xff] (!%p867_p10), %v1096_v8 }
  0x24   : > { %294 = vst [vmem:[#allocation2 + $0x10] sm:$0xff] (!%p867_p10), %v1096_v8  ;;  %295 = vst [vmem:[#allocation2 + $0x18] sm:$0xff] (!%p867_p10), %v1096_v8 }
  0x28 PF: > { %v1012_v9 = vld [vmem:[%s1167_s7 + $0x40] sm:$0xff]   ;;  %v1016_v13 = vld [vmem:[%s1167_s7 + $0x48] sm:$0xff]   ;;  %v1020_v17 = vld [vmem:[%s1167_s7 + $0x50] sm:$0xff]   ;;  %p908_p11 = scmp.ne.s32.totalorder %s1086_s14, 1 }
  0x29   : > { %v1013_v10 = vld [vmem:[%s1167_s7 + $0xc0] sm:$0xff]   ;;  %915 = vmatprep.subr.bf16.mxu0 %v1012_v9  ;;  %v1017_v14 = vld [vmem:[%s1167_s7 + $0xc8] sm:$0xff]   ;;  %v1021_v18 = vld [vmem:[%s1167_s7 + $0xd0] sm:$0xff]  }
  0x2a   : > { %v1014_v11 = vld [vmem:[%s1167_s7] sm:$0xff]   ;;  %943 = vmatprep.subr.bf16.mxu1 %v1013_v10  ;;  %v1018_v15 = vld [vmem:[%s1167_s7 + $0x8] sm:$0xff]   ;;  %v1022_v19 = vld [vmem:[%s1167_s7 + $0x10] sm:$0xff]  }
  0x2b   : > { %v1015_v12 = vld [vmem:[%s1167_s7 + $0x80] sm:$0xff]   ;;  %916 = vmatpush3.bf16.msra.mxu0 %v1014_v11  ;;  %v1019_v16 = vld [vmem:[%s1167_s7 + $0x88] sm:$0xff]   ;;  %v1023_v20 = vld [vmem:[%s1167_s7 + $0x90] sm:$0xff]  }
  0x2c   : > { %944 = vmatpush3.bf16.msra.mxu1 %v1015_v12  ;;  %917 = vmatprep.subr.bf16.mxu0 %v1016_v13  ;;  %v1024_v21 = vld [vmem:[%s1167_s7 + $0x58] sm:$0xff]   ;;  %v1028_v25 = vld [vmem:[%s1167_s7 + $0x60] sm:$0xff]   ;;  %v1032_v29 = vld [vmem:[%s1167_s7 + $0x68] sm:$0xff]  }
  0x2d   : > { %945 = vmatprep.subr.bf16.mxu1 %v1017_v14  ;;  %v1025_v22 = vld [vmem:[%s1167_s7 + $0xd8] sm:$0xff]   ;;  %v1029_v26 = vld [vmem:[%s1167_s7 + $0xe0] sm:$0xff]   ;;  %v1033_v30 = vld [vmem:[%s1167_s7 + $0xe8] sm:$0xff]  }
  0x2e   : > { %v1026_v23 = vld [vmem:[%s1167_s7 + $0x18] sm:$0xff]   ;;  %v1030_v27 = vld [vmem:[%s1167_s7 + $0x20] sm:$0xff]   ;;  %v1034_v31 = vld [vmem:[%s1167_s7 + $0x28] sm:$0xff]  }
  0x2f   : > { %918 = vmatpush3.bf16.msra.mxu0 %v1018_v15  ;;  %v1027_v24 = vld [vmem:[%s1167_s7 + $0x98] sm:$0xff]   ;;  %v1031_v28 = vld [vmem:[%s1167_s7 + $0xa0] sm:$0xff]   ;;  %v1035_v32 = vld [vmem:[%s1167_s7 + $0xa8] sm:$0xff]  }
  0x30   : > { %946 = vmatpush3.bf16.msra.mxu1 %v1019_v16  ;;  %919 = vmatprep.subr.bf16.mxu0 %v1020_v17  ;;  %v1036_v33 = vld [vmem:[%s1167_s7 + $0x70] sm:$0xff]   ;;  %v1040_v37 = vld [vmem:[%s1167_s7 + $0x78] sm:$0xff]   ;;  %v296_v58 = vld [vmem:[#allocation2] sm:$0xff] }
  0x31   : > { %947 = vmatprep.subr.bf16.mxu1 %v1021_v18  ;;  %v1037_v34 = vld [vmem:[%s1167_s7 + $0xf0] sm:$0xff]   ;;  %v1041_v38 = vld [vmem:[%s1167_s7 + $0xf8] sm:$0xff]   ;;  %v297_v63 = vld [vmem:[#allocation2 + $0x8] sm:$0xff] }
  0x32   : > { %v1038_v35 = vld [vmem:[%s1167_s7 + $0x30] sm:$0xff]   ;;  %v1042_v39 = vld [vmem:[%s1167_s7 + $0x38] sm:$0xff]  }
  0x33   : > { %920 = vmatpush3.bf16.msra.mxu0 %v1022_v19  ;;  %v1039_v36 = vld [vmem:[%s1167_s7 + $0xb0] sm:$0xff]   ;;  %v1043_v40 = vld [vmem:[%s1167_s7 + $0xb8] sm:$0xff]  }
  0x34   : > { %948 = vmatpush3.bf16.msra.mxu1 %v1023_v20  ;;  %921 = vmatprep.subr.bf16.mxu0 %v1024_v21  ;;  %v1044_v41 = vld [vmem:[%s1169_s8] ss:$16 sps:$4 sm:$0xff]   ;;  %v1046_v42 = vld [vmem:[%s1169_s8 + $0x4] ss:$16 sps:$4 sm:$0xff]   ;;  %v1047_v43 = vld [vmem:[%s1169_s8 + $0x8] ss:$16 sps:$4 sm:$0xff]  }
  0x35   : > { %949 = vmatprep.subr.bf16.mxu1 %v1025_v22  ;;  %v1049_v44 = vld [vmem:[%s1169_s8 + $0xc] ss:$16 sps:$4 sm:$0xff]   ;;  %636 = vmatprep.mubr.bf16.mxu0 %v1046_v42  ;;  %v1050_v45 = vld [vmem:[%s1169_s8 + $0x24] ss:$16 sps:$4 sm:$0xff]   ;;  %v1054_v47 = vld [vmem:[%s1169_s8 + $0x20] ss:$16 sps:$4 sm:$0xff]  }
  0x36   : > { %685 = vmatprep.mubr.bf16.mxu1 %v1049_v44  ;;  %v1052_v46 = vld [vmem:[%s1169_s8 + $0x2c] ss:$16 sps:$4 sm:$0xff]   ;;  %v1055_v48 = vld [vmem:[%s1169_s8 + $0x28] ss:$16 sps:$4 sm:$0xff]   ;;  %v298_v12 = vld [vmem:[#allocation2 + $0x10] sm:$0xff] }
  0x37   : > { %922 = vmatpush3.bf16.msra.mxu0 %v1026_v23  ;;  %v299_v17 = vld [vmem:[#allocation2 + $0x18] sm:$0xff]  ;;  %v909_v22 = vld [vmem:[%s1245_s2] ss:$0 sm:$0xff] (!%p908_p11) }
  0x38   : > { %950 = vmatpush3.bf16.msra.mxu1 %v1027_v24  ;;  %923 = vmatprep.subr.bf16.mxu0 %v1028_v25 }
  0x39   : > { %951 = vmatprep.subr.bf16.mxu1 %v1029_v26 }
  0x3b   : > { %924 = vmatpush3.bf16.msra.mxu0 %v1030_v27 }
  0x3c   : > { %952 = vmatpush3.bf16.msra.mxu1 %v1031_v28  ;;  %925 = vmatprep.subr.bf16.mxu0 %v1032_v29 }
  0x3d   : > { %953 = vmatprep.subr.bf16.mxu1 %v1033_v30 }
  0x3f   : > { %926 = vmatpush3.bf16.msra.mxu0 %v1034_v31 }
  0x40   : > { %954 = vmatpush3.bf16.msra.mxu1 %v1035_v32  ;;  %927 = vmatprep.subr.bf16.mxu0 %v1036_v33 }
  0x41   : > { %955 = vmatprep.subr.bf16.mxu1 %v1037_v34 }
  0x43   : > { %928 = vmatpush3.bf16.msra.mxu0 %v1038_v35 }
  0x44   : > { %956 = vmatpush3.bf16.msra.mxu1 %v1039_v36  ;;  %929 = vmatprep.subr.bf16.mxu0 %v1040_v37 }
  0x45   : > { %957 = vmatprep.subr.bf16.mxu1 %v1041_v38 }
  0x47   : > { %930 = vmatpush3.bf16.msra.mxu0 %v1042_v39 }
  0x48   : > { %958 = vmatpush3.bf16.msra.mxu1 %v1043_v40 }
  0x4a   : > { %637 = vmatmul.mubr.bf16.vlgmr.msra.gmra.mrb[0].mxu0 %v1044_v41 }
  0x4b   : > { %686 = vmatmul.mubr.bf16.vlgmr.msra.gmra.mrb[0].mxu1 %v1047_v43  ;;  %644 = vmatprep.mubr.bf16.mxu0 %v1050_v45 }
  0x4c   : > { %693 = vmatprep.mubr.bf16.mxu1 %v1052_v46 }
  0x52   : > { %645 = vmatmul.mubr.bf16.gmra.mrb[4].mxu0 %v1054_v47 }
  0x53   : > { %694 = vmatmul.mubr.bf16.gmra.mrb[4].mxu1 %v1055_v48 }
 0x11d   : > { %v931_v49 = vpop.f32.mrb[0].mxu0 }
 0x11e   : > { %v959_v50 = vpop.f32.mrb[0].mxu1  ;;  %v932_v51 = vpop.f32.mrb[1].mxu0 }
 0x11f   : > { %v933_v52 = vadd.f32 %v932_v51, %v931_v49  ;;  %v960_v53 = vpop.f32.mrb[1].mxu1  ;;  %v934_v54 = vpop.f32.mrb[2].mxu0 }
 0x120   : > { %v961_v55 = vadd.f32 %v960_v53, %v959_v50  ;;  %v962_v56 = vpop.f32.mrb[2].mxu1  ;;  %v935_v57 = vpop.f32.mrb[3].mxu0 }
 0x121   : > { %v936_v59 = vadd.f32 %v935_v57, %v934_v54  ;;  %v963_v60 = vpop.f32.mrb[3].mxu1 }
 0x122   : > { %v688_v61 = vadd.f32 %v961_v55, %v933_v52  ;;  %v964_v62 = vadd.f32 %v963_v60, %v962_v56 }
 0x124   : > { %v702_v0 = vadd.f32 %v688_v61, %v296_v58  ;;  %v691_v1 = vadd.f32 %v964_v62, %v936_v59 }
 0x125   : > { %v937_v2 = vpop.f32.mrb[4].mxu0 }
 0x126   : > { %706 = vst [vmem:[#allocation2] sm:$0xff] %v702_v0  ;;  %v703_v3 = vadd.f32 %v691_v1, %v297_v63  ;;  %v965_v4 = vpop.f32.mrb[4].mxu1  ;;  %v938_v5 = vpop.f32.mrb[5].mxu0 }
 0x127   : > { %v939_v6 = vadd.f32 %v938_v5, %v937_v2  ;;  %v966_v7 = vpop.f32.mrb[5].mxu1  ;;  %v940_v8 = vpop.f32.mrb[6].mxu0 }
 0x128   : > { %707 = vst [vmem:[#allocation2 + $0x8] sm:$0xff] %v703_v3  ;;  %v967_v9 = vadd.f32 %v966_v7, %v965_v4  ;;  %v968_v10 = vpop.f32.mrb[6].mxu1  ;;  %v941_v11 = vpop.f32.mrb[7].mxu0 }
 0x129   : > { %v942_v13 = vadd.f32 %v941_v11, %v940_v8  ;;  %v969_v14 = vpop.f32.mrb[7].mxu1 }
 0x12a   : > { %v696_v15 = vadd.f32 %v967_v9, %v939_v6  ;;  %v970_v16 = vadd.f32 %v969_v14, %v968_v10  ;;  %713 = sbr.rel (%p908_p11) target bundleno = 318 (0x13e), region = 63 }
 0x12c   : > { %v704_v18 = vadd.f32 %v696_v15, %v298_v12  ;;  %v699_v19 = vadd.f32 %v970_v16, %v942_v13 }
 0x12d   : > { %v714_v21 = vld [vmem:[#allocation2] sm:$0xff] (!%p908_p11) }
 0x12e   : > { %708 = vst [vmem:[#allocation2 + $0x10] sm:$0xff] %v704_v18  ;;  %v705_v20 = vadd.f32 %v699_v19, %v299_v17  ;;  %v725_v24 = vadd.f32 (!%p908_p11), %v909_v22, %v714_v21 }
 0x12f   : > { %v715_v23 = vld [vmem:[#allocation2 + $0x8] sm:$0xff] (!%p908_p11) }
 0x130   : > { %709 = vst [vmem:[#allocation2 + $0x18] sm:$0xff] %v705_v20  ;;  %v726_v25 = vadd.f32 (!%p908_p11), %v909_v22, %v715_v23  ;;  %vm729_vm0 = vcmp.ge.f32.partialorder (!%p908_p11), %v725_v24, 0.0  ;;  %v733_v30 = vmul.f32 (!%p908_p11), 0.2, %v725_v24 }
 0x132   : > { %vm730_vm1 = vcmp.ge.f32.partialorder %v726_v25, 0.0  ;;  %v734_v31 = vmul.f32 0.2, %v726_v25  ;;  %v737_v34 = vsel %vm729_vm0, %v725_v24, %v733_v30 }
 0x133   : > { %741 = vst [vmem:[%s1246_s3] sm:$0xff] %v737_v34 }
 0x134   : > { %v738_v35 = vsel %vm730_vm1, %v726_v25, %v734_v31 }
 0x135   : > { %v716_v26 = vld [vmem:[#allocation2 + $0x10] sm:$0xff]  ;;  %742 = vst [vmem:[%s1246_s3 + $0x8] sm:$0xff] %v738_v35 }
 0x136   : > { %v727_v28 = vadd.f32 %v909_v22, %v716_v26 }
 0x137   : > { %v717_v27 = vld [vmem:[#allocation2 + $0x18] sm:$0xff] }
 0x138   : > { %v728_v29 = vadd.f32 %v909_v22, %v717_v27  ;;  %vm731_vm2 = vcmp.ge.f32.partialorder %v727_v28, 0.0  ;;  %v735_v32 = vmul.f32 0.2, %v727_v28 }
 0x13a   : > { %vm732_vm3 = vcmp.ge.f32.partialorder %v728_v29, 0.0  ;;  %v736_v33 = vmul.f32 0.2, %v728_v29  ;;  %v739_v36 = vsel %vm731_vm2, %v727_v28, %v735_v32 }
 0x13b   : > { %743 = vst [vmem:[%s1246_s3 + $0x10] sm:$0xff] %v739_v36 }
 0x13c   : > { %v740_v37 = vsel %vm732_vm3, %v728_v29, %v736_v33 }
 0x13d   : > { %744 = vst [vmem:[%s1246_s3 + $0x18] sm:$0xff] %v740_v37 }
 0x13e PF: > { %s13_s16 = sadd.s32 1, %s1094_s16   ;;  %s1247_s12 = smov %s1082_s13 }
 0x13f   : > { %p10_p12 = scmp.ge.s32.totalorder %s13_s16, 4   ;;  %s1248_s13 = smov %s1152_s20 }
 0x140   : > { %s1249_s14 = smov %s1090_s15  ;;  %s1250_s15 = smov %s1252_s17 }
 0x141   :  { %12 = sbr.rel (!%p10_p12) target bundleno = 3 (0x3), region = 104 }

// kernel: _lambda_.15
= control target key start
LH: loop header
LB: loop body
LE: loop exit
PB: predicated region body
PF: predicated region fallthrough
CT: control target
= control target key end

     0   :  { %v662_v0 = vmov 0.0   ;;  %vm663_vm0 = vmmov 0   ;;  %s872_s1 = inlined_call_operand.vmem [shape: bf16[128,128], index: 1, kind: input, shape index: {}]   ;;  %s873_s0 = inlined_call_operand.vmem [shape: bf16[176,128], index: 0, kind: input, shape index: {}]   ;;  %s874_s2 = inlined_call_operand.vmem [shape: f32[1,128], index: 2, kind: input, shape index: {}]   ;;  %s875_s3 = inlined_call_operand.vmem [shape: f32[176,128], index: 3, kind: output, shape index: {}]  }
   0x1   :  { %565 = vmatprep.subr.bf16.mxu0 %v662_v0  ;;  %v643_v1 = vld [vmem:[%s872_s1] sm:$0xff]   ;;  %625 = vmatprep.subr.bf16.mxu1 %v662_v0  ;;  %v644_v2 = vld [vmem:[%s872_s1 + $0x8] sm:$0xff]   ;;  %v645_v3 = vld [vmem:[%s872_s1 + $0x10] sm:$0xff]  }
   0x2   :  { %581 = vmatprep.mubr.msk.bf16.mxu0 %vm663_vm0, %v662_v0  ;;  %605 = vmatprep.mubr.msk.bf16.mxu1 %vm663_vm0, %v662_v0  ;;  %v646_v4 = vld [vmem:[%s872_s1 + $0x18] sm:$0xff]   ;;  %v647_v5 = vld [vmem:[%s872_s1 + $0x20] sm:$0xff]   ;;  %v648_v6 = vld [vmem:[%s872_s1 + $0x28] sm:$0xff]  }
   0x3   :  { %566 = vmatpush3.bf16.msra.mxu0 %v643_v1  ;;  %633 = vmatpush3.bf16.msra.mxu1 %v643_v1  ;;  %v649_v7 = vld [vmem:[%s872_s1 + $0x30] sm:$0xff]   ;;  %v650_v8 = vld [vmem:[%s872_s1 + $0x38] sm:$0xff]   ;;  %v651_v9 = vld [vmem:[%s873_s0] sm:$0xff]  }
   0x4   :  { %567 = vmatprep.subr.bf16.mxu0 %v662_v0  ;;  %626 = vmatprep.subr.bf16.mxu1 %v662_v0  ;;  %v652_v10 = vld [vmem:[%s873_s0 + $0x30] sm:$0xff]   ;;  %v653_v11 = vld [vmem:[%s873_s0 + $0x8] sm:$0xff]   ;;  %v654_v12 = vld [vmem:[%s873_s0 + $0x38] sm:$0xff]  }
   0x5   :  { %v655_v13 = vld [vmem:[%s873_s0 + $0x10] sm:$0xff]   ;;  %v656_v14 = vld [vmem:[%s873_s0 + $0x40] sm:$0xff]   ;;  %v657_v15 = vld [vmem:[%s873_s0 + $0x18] sm:$0xff]  }
   0x6   :  { %v658_v16 = vld [vmem:[%s873_s0 + $0x48] sm:$0xff]   ;;  %v659_v17 = vld [vmem:[%s873_s0 + $0x20] sm:$0xff]   ;;  %v660_v18 = vld [vmem:[%s873_s0 + $0x50] sm:$0xff]  }
   0x7   :  { %568 = vmatpush3.bf16.msra.mxu0 %v644_v2  ;;  %634 = vmatpush3.bf16.msra.mxu1 %v644_v2  ;;  %v661_v19 = vld [vmem:[%s873_s0 + $0x28] sm:$0xff]   ;;  %v782_v20 = vld [vmem:[%s874_s2] ss:$0 sm:$0xff] }
   0x8   :  { %569 = vmatprep.subr.bf16.mxu0 %v662_v0  ;;  %627 = vmatprep.subr.bf16.mxu1 %v662_v0 }
   0xb   :  { %570 = vmatpush3.bf16.msra.mxu0 %v645_v3  ;;  %635 = vmatpush3.bf16.msra.mxu1 %v645_v3 }
   0xc   :  { %571 = vmatprep.subr.bf16.mxu0 %v662_v0  ;;  %628 = vmatprep.subr.bf16.mxu1 %v662_v0 }
   0xf   :  { %572 = vmatpush3.bf16.msra.mxu0 %v646_v4  ;;  %636 = vmatpush3.bf16.msra.mxu1 %v646_v4 }
  0x10   :  { %573 = vmatprep.subr.bf16.mxu0 %v662_v0  ;;  %629 = vmatprep.subr.bf16.mxu1 %v662_v0 }
  0x13   :  { %574 = vmatpush3.bf16.msra.mxu0 %v647_v5  ;;  %637 = vmatpush3.bf16.msra.mxu1 %v647_v5 }
  0x14   :  { %575 = vmatprep.subr.bf16.mxu0 %v662_v0  ;;  %630 = vmatprep.subr.bf16.mxu1 %v662_v0 }
  0x17   :  { %576 = vmatpush3.bf16.msra.mxu0 %v648_v6  ;;  %638 = vmatpush3.bf16.msra.mxu1 %v648_v6 }
  0x18   :  { %577 = vmatprep.subr.bf16.mxu0 %v662_v0  ;;  %631 = vmatprep.subr.bf16.mxu1 %v662_v0 }
  0x1b   :  { %578 = vmatpush3.bf16.msra.mxu0 %v649_v7  ;;  %639 = vmatpush3.bf16.msra.mxu1 %v649_v7 }
  0x1c   :  { %579 = vmatprep.subr.bf16.mxu0 %v662_v0  ;;  %632 = vmatprep.subr.bf16.mxu1 %v662_v0 }
  0x1f   :  { %580 = vmatpush3.bf16.msra.mxu0 %v650_v8  ;;  %640 = vmatpush3.bf16.msra.mxu1 %v650_v8 }
  0x22   :  { %582 = vmatmul.mubr.bf16.vlgmr.msra.gmra.mrb[0].mxu0 %v651_v9  ;;  %606 = vmatmul.mubr.bf16.vlgmr.msra.gmra.mrb[0].mxu1 %v652_v10 }
  0x23   :  { %585 = vmatprep.mubr.msk.bf16.mxu0 %vm663_vm0, %v662_v0  ;;  %609 = vmatprep.mubr.msk.bf16.mxu1 %vm663_vm0, %v662_v0 }
  0x2a   :  { %586 = vmatmul.mubr.bf16.gmra.mrb[4].mxu0 %v653_v11  ;;  %610 = vmatmul.mubr.bf16.gmra.mrb[4].mxu1 %v654_v12 }
  0x2b   :  { %589 = vmatprep.mubr.msk.bf16.mxu0 %vm663_vm0, %v662_v0  ;;  %613 = vmatprep.mubr.msk.bf16.mxu1 %vm663_vm0, %v662_v0 }
  0x32   :  { %590 = vmatmul.mubr.bf16.gmra.mrb[8].mxu0 %v655_v13  ;;  %614 = vmatmul.mubr.bf16.gmra.mrb[8].mxu1 %v656_v14 }
  0x33   :  { %593 = vmatprep.mubr.msk.bf16.mxu0 %vm663_vm0, %v662_v0  ;;  %617 = vmatprep.mubr.msk.bf16.mxu1 %vm663_vm0, %v662_v0 }
  0x3a   :  { %594 = vmatmul.mubr.bf16.gmra.mrb[12].mxu0 %v657_v15  ;;  %618 = vmatmul.mubr.bf16.gmra.mrb[12].mxu1 %v658_v16 }
  0x3b   :  { %597 = vmatprep.mubr.msk.bf16.mxu0 %vm663_vm0, %v662_v0  ;;  %621 = vmatprep.mubr.msk.bf16.mxu1 %vm663_vm0, %v662_v0 }
  0x42   :  { %598 = vmatmul.mubr.bf16.gmra.mrb[16].mxu0 %v659_v17  ;;  %622 = vmatmul.mubr.bf16.gmra.mrb[16].mxu1 %v660_v18 }
  0x43   :  { %601 = vmatprep.mubr.msk.bf16.mxu0 %vm663_vm0, %v662_v0 }
  0x4a   :  { %602 = vmatmul.mubr.bf16.gmra.mrb[20].mxu0 %v661_v19 }
  0xf5   :  { %v249_v21 = vpop.f32.mrb[0].mxu0  ;;  %v297_v22 = vpop.f32.mrb[0].mxu1 }
  0xf6   :  { %v412_v23 = vadd.f32 %v782_v20, %v249_v21  ;;  %v583_v24 = vpop.f32.mrb[1].mxu0  ;;  %v424_v25 = vadd.f32 %v782_v20, %v297_v22  ;;  %v607_v26 = vpop.f32.mrb[1].mxu1 }
  0xf7   :  { %v252_v27 = vpop.f32.mrb[2].mxu0  ;;  %v300_v28 = vpop.f32.mrb[2].mxu1 }
  0xf8   :  { %vm434_vm1 = vcmp.ge.f32.partialorder %v412_v23, 0.0  ;;  %v456_v29 = vmul.f32 0.2, %v412_v23  ;;  %v413_v30 = vadd.f32 %v782_v20, %v252_v27  ;;  %v584_v31 = vpop.f32.mrb[3].mxu0  ;;  %vm446_vm2 = vcmp.ge.f32.partialorder %v424_v25, 0.0  ;;  %v608_v32 = vpop.f32.mrb[3].mxu1 }
  0xf9   :  { %v468_v33 = vmul.f32 0.2, %v424_v25  ;;  %v425_v34 = vadd.f32 %v782_v20, %v300_v28 }
  0xfa   :  { %v478_v35 = vsel %vm434_vm1, %v412_v23, %v456_v29  ;;  %vm435_vm3 = vcmp.ge.f32.partialorder %v413_v30, 0.0  ;;  %v457_v36 = vmul.f32 0.2, %v413_v30 }
  0xfb   :  { %500 = vst [vmem:[%s875_s3] sm:$0xff] %v478_v35  ;;  %v490_v37 = vsel %vm446_vm2, %v424_v25, %v468_v33  ;;  %vm447_vm4 = vcmp.ge.f32.partialorder %v425_v34, 0.0  ;;  %v469_v38 = vmul.f32 0.2, %v425_v34 }
  0xfc   :  { %v479_v39 = vsel %vm435_vm3, %v413_v30, %v457_v36  ;;  %512 = vst [vmem:[%s875_s3 + $0x60] sm:$0xff] %v490_v37 }
  0xfd   :  { %501 = vst [vmem:[%s875_s3 + $0x8] sm:$0xff] %v479_v39  ;;  %v491_v40 = vsel %vm447_vm4, %v425_v34, %v469_v38  ;;  %v257_v41 = vpop.f32.mrb[4].mxu0  ;;  %v305_v42 = vpop.f32.mrb[4].mxu1 }
  0xfe   :  { %513 = vst [vmem:[%s875_s3 + $0x68] sm:$0xff] %v491_v40  ;;  %v414_v43 = vadd.f32 %v782_v20, %v257_v41  ;;  %v587_v44 = vpop.f32.mrb[5].mxu0  ;;  %v426_v45 = vadd.f32 %v782_v20, %v305_v42  ;;  %v611_v46 = vpop.f32.mrb[5].mxu1 }
  0xff   :  { %v260_v47 = vpop.f32.mrb[6].mxu0  ;;  %v308_v48 = vpop.f32.mrb[6].mxu1 }
 0x100   :  { %vm436_vm5 = vcmp.ge.f32.partialorder %v414_v43, 0.0  ;;  %v458_v49 = vmul.f32 0.2, %v414_v43  ;;  %v415_v50 = vadd.f32 %v782_v20, %v260_v47  ;;  %v588_v51 = vpop.f32.mrb[7].mxu0  ;;  %vm448_vm6 = vcmp.ge.f32.partialorder %v426_v45, 0.0  ;;  %v612_v52 = vpop.f32.mrb[7].mxu1 }
 0x101   :  { %v470_v53 = vmul.f32 0.2, %v426_v45  ;;  %v427_v54 = vadd.f32 %v782_v20, %v308_v48 }
 0x102   :  { %v480_v55 = vsel %vm436_vm5, %v414_v43, %v458_v49  ;;  %vm437_vm7 = vcmp.ge.f32.partialorder %v415_v50, 0.0  ;;  %v459_v56 = vmul.f32 0.2, %v415_v50 }
 0x103   :  { %502 = vst [vmem:[%s875_s3 + $0x10] sm:$0xff] %v480_v55  ;;  %v492_v57 = vsel %vm448_vm6, %v426_v45, %v470_v53  ;;  %vm449_vm8 = vcmp.ge.f32.partialorder %v427_v54, 0.0  ;;  %v471_v58 = vmul.f32 0.2, %v427_v54 }
 0x104   :  { %v481_v59 = vsel %vm437_vm7, %v415_v50, %v459_v56  ;;  %514 = vst [vmem:[%s875_s3 + $0x70] sm:$0xff] %v492_v57 }
 0x105   :  { %503 = vst [vmem:[%s875_s3 + $0x18] sm:$0xff] %v481_v59  ;;  %v493_v60 = vsel %vm449_vm8, %v427_v54, %v471_v58  ;;  %v265_v61 = vpop.f32.mrb[8].mxu0  ;;  %v313_v62 = vpop.f32.mrb[8].mxu1 }
 0x106   :  { %515 = vst [vmem:[%s875_s3 + $0x78] sm:$0xff] %v493_v60  ;;  %v416_v63 = vadd.f32 %v782_v20, %v265_v61  ;;  %v591_v0 = vpop.f32.mrb[9].mxu0  ;;  %v428_v1 = vadd.f32 %v782_v20, %v313_v62  ;;  %v615_v2 = vpop.f32.mrb[9].mxu1 }
 0x107   :  { %v268_v3 = vpop.f32.mrb[10].mxu0  ;;  %v316_v4 = vpop.f32.mrb[10].mxu1 }
 0x108   :  { %vm438_vm9 = vcmp.ge.f32.partialorder %v416_v63, 0.0  ;;  %v460_v5 = vmul.f32 0.2, %v416_v63  ;;  %v417_v6 = vadd.f32 %v782_v20, %v268_v3  ;;  %v592_v7 = vpop.f32.mrb[11].mxu0  ;;  %vm450_vm10 = vcmp.ge.f32.partialorder %v428_v1, 0.0  ;;  %v616_v8 = vpop.f32.mrb[11].mxu1 }
 0x109   :  { %v472_v9 = vmul.f32 0.2, %v428_v1  ;;  %v429_v10 = vadd.f32 %v782_v20, %v316_v4 }
 0x10a   :  { %v482_v11 = vsel %vm438_vm9, %v416_v63, %v460_v5  ;;  %vm439_vm11 = vcmp.ge.f32.partialorder %v417_v6, 0.0  ;;  %v461_v12 = vmul.f32 0.2, %v417_v6 }
 0x10b   :  { %504 = vst [vmem:[%s875_s3 + $0x20] sm:$0xff] %v482_v11  ;;  %v494_v13 = vsel %vm450_vm10, %v428_v1, %v472_v9  ;;  %vm451_vm12 = vcmp.ge.f32.partialorder %v429_v10, 0.0  ;;  %v473_v14 = vmul.f32 0.2, %v429_v10 }
 0x10c   :  { %v483_v15 = vsel %vm439_vm11, %v417_v6, %v461_v12  ;;  %516 = vst [vmem:[%s875_s3 + $0x80] sm:$0xff] %v494_v13 }
 0x10d   :  { %505 = vst [vmem:[%s875_s3 + $0x28] sm:$0xff] %v483_v15  ;;  %v495_v16 = vsel %vm451_vm12, %v429_v10, %v473_v14  ;;  %v273_v17 = vpop.f32.mrb[12].mxu0  ;;  %v321_v18 = vpop.f32.mrb[12].mxu1 }
 0x10e   :  { %517 = vst [vmem:[%s875_s3 + $0x88] sm:$0xff] %v495_v16  ;;  %v418_v19 = vadd.f32 %v782_v20, %v273_v17  ;;  %v595_v21 = vpop.f32.mrb[13].mxu0  ;;  %v430_v22 = vadd.f32 %v782_v20, %v321_v18  ;;  %v619_v23 = vpop.f32.mrb[13].mxu1 }
 0x10f   :  { %v276_v24 = vpop.f32.mrb[14].mxu0  ;;  %v324_v25 = vpop.f32.mrb[14].mxu1 }
 0x110   :  { %vm440_vm13 = vcmp.ge.f32.partialorder %v418_v19, 0.0  ;;  %v462_v26 = vmul.f32 0.2, %v418_v19  ;;  %v419_v27 = vadd.f32 %v782_v20, %v276_v24  ;;  %v596_v28 = vpop.f32.mrb[15].mxu0  ;;  %vm452_vm14 = vcmp.ge.f32.partialorder %v430_v22, 0.0  ;;  %v620_v29 = vpop.f32.mrb[15].mxu1 }
 0x111   :  { %v474_v30 = vmul.f32 0.2, %v430_v22  ;;  %v431_v31 = vadd.f32 %v782_v20, %v324_v25 }
 0x112   :  { %v484_v32 = vsel %vm440_vm13, %v418_v19, %v462_v26  ;;  %vm441_vm15 = vcmp.ge.f32.partialorder %v419_v27, 0.0  ;;  %v463_v33 = vmul.f32 0.2, %v419_v27 }
 0x113   :  { %506 = vst [vmem:[%s875_s3 + $0x30] sm:$0xff] %v484_v32  ;;  %v496_v34 = vsel %vm452_vm14, %v430_v22, %v474_v30  ;;  %vm453_vm0 = vcmp.ge.f32.partialorder %v431_v31, 0.0  ;;  %v475_v35 = vmul.f32 0.2, %v431_v31 }
 0x114   :  { %v485_v36 = vsel %vm441_vm15, %v419_v27, %v463_v33  ;;  %518 = vst [vmem:[%s875_s3 + $0x90] sm:$0xff] %v496_v34 }
 0x115   :  { %507 = vst [vmem:[%s875_s3 + $0x38] sm:$0xff] %v485_v36  ;;  %v497_v37 = vsel %vm453_vm0, %v431_v31, %v475_v35  ;;  %v281_v38 = vpop.f32.mrb[16].mxu0  ;;  %v329_v39 = vpop.f32.mrb[16].mxu1 }
 0x116   :  { %519 = vst [vmem:[%s875_s3 + $0x98] sm:$0xff] %v497_v37  ;;  %v420_v40 = vadd.f32 %v782_v20, %v281_v38  ;;  %v599_v41 = vpop.f32.mrb[17].mxu0  ;;  %v432_v42 = vadd.f32 %v782_v20, %v329_v39  ;;  %v623_v43 = vpop.f32.mrb[17].mxu1 }
 0x117   :  { %v284_v44 = vpop.f32.mrb[18].mxu0  ;;  %v332_v45 = vpop.f32.mrb[18].mxu1 }
 0x118   :  { %vm442_vm1 = vcmp.ge.f32.partialorder %v420_v40, 0.0  ;;  %v464_v46 = vmul.f32 0.2, %v420_v40  ;;  %v421_v47 = vadd.f32 %v782_v20, %v284_v44  ;;  %v600_v48 = vpop.f32.mrb[19].mxu0  ;;  %vm454_vm2 = vcmp.ge.f32.partialorder %v432_v42, 0.0  ;;  %v624_v49 = vpop.f32.mrb[19].mxu1 }
 0x119   :  { %v476_v50 = vmul.f32 0.2, %v432_v42  ;;  %v433_v51 = vadd.f32 %v782_v20, %v332_v45 }
 0x11a   :  { %v486_v52 = vsel %vm442_vm1, %v420_v40, %v464_v46  ;;  %vm443_vm3 = vcmp.ge.f32.partialorder %v421_v47, 0.0  ;;  %v465_v53 = vmul.f32 0.2, %v421_v47 }
 0x11b   :  { %508 = vst [vmem:[%s875_s3 + $0x40] sm:$0xff] %v486_v52  ;;  %v498_v54 = vsel %vm454_vm2, %v432_v42, %v476_v50  ;;  %vm455_vm4 = vcmp.ge.f32.partialorder %v433_v51, 0.0  ;;  %v477_v55 = vmul.f32 0.2, %v433_v51 }
 0x11c   :  { %v487_v56 = vsel %vm443_vm3, %v421_v47, %v465_v53  ;;  %520 = vst [vmem:[%s875_s3 + $0xa0] sm:$0xff] %v498_v54 }
 0x11d   :  { %509 = vst [vmem:[%s875_s3 + $0x48] sm:$0xff] %v487_v56  ;;  %v499_v57 = vsel %vm455_vm4, %v433_v51, %v477_v55  ;;  %v289_v58 = vpop.f32.mrb[20].mxu0 }
 0x11e   :  { %521 = vst [vmem:[%s875_s3 + $0xa8] sm:$0xff] %v499_v57  ;;  %v422_v59 = vadd.f32 %v782_v20, %v289_v58  ;;  %v603_v60 = vpop.f32.mrb[21].mxu0 }
 0x11f   :  { %v292_v61 = vpop.f32.mrb[22].mxu0 }
 0x120   :  { %vm444_vm5 = vcmp.ge.f32.partialorder %v422_v59, 0.0  ;;  %v466_v62 = vmul.f32 0.2, %v422_v59  ;;  %v423_v63 = vadd.f32 %v782_v20, %v292_v61  ;;  %v604_v0 = vpop.f32.mrb[23].mxu0 }
 0x122   :  { %v488_v1 = vsel %vm444_vm5, %v422_v59, %v466_v62  ;;  %vm445_vm6 = vcmp.ge.f32.partialorder %v423_v63, 0.0  ;;  %v467_v2 = vmul.f32 0.2, %v423_v63 }
 0x123   :  { %510 = vst [vmem:[%s875_s3 + $0x50] sm:$0xff] %v488_v1 }
 0x124   :  { %v489_v3 = vsel %vm445_vm6, %v423_v63, %v467_v2 }
 0x125   :  { %511 = vst [vmem:[%s875_s3 + $0x58] sm:$0xff] %v489_v3 }

// kernel: _lambda_.16
= control target key start
LH: loop header
LB: loop body
LE: loop exit
PB: predicated region body
PF: predicated region fallthrough
CT: control target
= control target key end

     0   :  { %s1297_s12 = smov 0   ;;  %s1299_s13 = smov 0   ;;  %s1461_s0 = inlined_call_operand.vmem [shape: bf16[64,1024], index: 0, kind: input, shape index: {}]   ;;  %s1462_s1 = inlined_call_operand.vmem [shape: bf16[1024,128], index: 1, kind: input, shape index: {}]   ;;  %s1463_s2 = inlined_call_operand.vmem [shape: f32[1,128], index: 2, kind: input, shape index: {}]   ;;  %s1464_s3 = inlined_call_operand.vmem [shape: f32[64,128], index: 3, kind: output, shape index: {}]  }
   0x1   :  { %s1301_s14 = smov 0   ;;  %s1303_s15 = smov 0  }
   0x2   :  { %s1305_s16 = smov 0  }
   0x3 LB: > { %s25_s17 = sadd.s32 1, %s1270_s15  ;;  %p48_p1 = scmp.ne.s32.totalorder %s1262_s13, %s1258_s12  ;;  %s1274_s16 = sphi %s1305_s16, %s13_s16   ;;  %s1270_s15 = sphi %s1303_s15, %s1468_s15   ;;  %s1266_s14 = sphi %s1301_s14, %s1467_s14   ;;  %s1262_s13 = sphi %s1299_s13, %s1466_s13   ;;  %s1258_s12 = sphi %s1297_s12, %s1465_s12  }
   0x4   : > { %p26_p0 = scmp.ge.s32.totalorder %s25_s17, 2  ;;  %p49_p2 = scmp.eq.s32.totalorder %s1274_s16, 0 }
   0x5   : > { %s41_s19 = sadd.s32 1, %s1262_s13  ;;  %p995_p5 = scmp.ge.s32.totalorder %s1274_s16, 2 }
   0x6   : > { %s1470_s17 = smov (%p26_p0, %s25_s17), 0  ;;  %p50_p3 = por %p49_p2, %p48_p1 }
   0x7   : > { %s37_s18 = ssub.s32 %s1270_s15, %s1470_s17  ;;  %162 = sbr.rel (%p995_p5) target bundleno = 26 (0x1a), region = 20 }
   0x8   : > { %p39_p4 = scmp.eq.s32.totalorder %s37_s18, 0 }
   0xa   : > { %s1332_s20 = scalar_select %p39_p4, %s1262_s13, %s41_s19  }
   0xe   : > { %165 = sbr.rel (!%p50_p3) target bundleno = 26 (0x1a), region = 24  ;;  %s167_s21 = sand.u32 (%p50_p3), 1, %s1262_s13  }
   0xf   : > { %s1058_s22 = sshll.u32 (%p50_p3), %s1270_s15, 4  ;;  %s996_s23 = sshll.u32 (%p50_p3), %s167_s21, 7 }
  0x10   : > { %s1340_s26 = scalar_lea.vmem (%p50_p3), %s1461_s0, %s1058_s22  ;;  %s169_s27 = scalar_lea.vmem (%p50_p3), [#allocation3], %s996_s23 }
  0x11   : > { %v188_v0 = vld [vmem:[%s1340_s26] sm:$0xff] (%p50_p3)  ;;  %v190_v1 = vld [vmem:[%s1340_s26 + $0x8] sm:$0xff] (%p50_p3) }
  0x12   : > { %v192_v2 = vld [vmem:[%s1340_s26 + $0x20] sm:$0xff] (%p50_p3)  ;;  %189 = vst [vmem:[%s169_s27] sm:$0xff] (%p50_p3), %v188_v0  ;;  %191 = vst [vmem:[%s169_s27 + $0x8] sm:$0xff] (%p50_p3), %v190_v1  ;;  %v194_v3 = vld [vmem:[%s1340_s26 + $0x28] sm:$0xff] (%p50_p3) }
  0x13   : > { %193 = vst [vmem:[%s169_s27 + $0x10] sm:$0xff] (%p50_p3), %v192_v2  ;;  %v196_v4 = vld [vmem:[%s1340_s26 + $0x40] sm:$0xff] (%p50_p3)  ;;  %v198_v5 = vld [vmem:[%s1340_s26 + $0x48] sm:$0xff] (%p50_p3)  ;;  %195 = vst [vmem:[%s169_s27 + $0x18] sm:$0xff] (%p50_p3), %v194_v3 }
  0x14   : > { %197 = vst [vmem:[%s169_s27 + $0x20] sm:$0xff] (%p50_p3), %v196_v4  ;;  %199 = vst [vmem:[%s169_s27 + $0x28] sm:$0xff] (%p50_p3), %v198_v5  ;;  %v200_v6 = vld [vmem:[%s1340_s26 + $0x60] sm:$0xff] (%p50_p3)  ;;  %v202_v7 = vld [vmem:[%s1340_s26 + $0x68] sm:$0xff] (%p50_p3) }
  0x15   : > { %v204_v8 = vld [vmem:[%s1340_s26 + $0x80] sm:$0xff]  ;;  %201 = vst [vmem:[%s169_s27 + $0x30] sm:$0xff] %v200_v6  ;;  %203 = vst [vmem:[%s169_s27 + $0x38] sm:$0xff] %v202_v7  ;;  %v206_v9 = vld [vmem:[%s1340_s26 + $0x88] sm:$0xff] }
  0x16   : > { %205 = vst [vmem:[%s169_s27 + $0x40] sm:$0xff] %v204_v8  ;;  %v208_v10 = vld [vmem:[%s1340_s26 + $0xa0] sm:$0xff]  ;;  %v210_v11 = vld [vmem:[%s1340_s26 + $0xa8] sm:$0xff]  ;;  %207 = vst [vmem:[%s169_s27 + $0x48] sm:$0xff] %v206_v9 }
  0x17   : > { %209 = vst [vmem:[%s169_s27 + $0x50] sm:$0xff] %v208_v10  ;;  %211 = vst [vmem:[%s169_s27 + $0x58] sm:$0xff] %v210_v11  ;;  %v212_v12 = vld [vmem:[%s1340_s26 + $0xc0] sm:$0xff]  ;;  %v214_v13 = vld [vmem:[%s1340_s26 + $0xc8] sm:$0xff] }
  0x18   : > { %v216_v14 = vld [vmem:[%s1340_s26 + $0xe0] sm:$0xff]  ;;  %213 = vst [vmem:[%s169_s27 + $0x60] sm:$0xff] %v212_v12  ;;  %215 = vst [vmem:[%s169_s27 + $0x68] sm:$0xff] %v214_v13  ;;  %v218_v15 = vld [vmem:[%s1340_s26 + $0xe8] sm:$0xff] }
  0x19   : > { %217 = vst [vmem:[%s169_s27 + $0x70] sm:$0xff] %v216_v14  ;;  %219 = vst [vmem:[%s169_s27 + $0x78] sm:$0xff] %v218_v15 }
  0x1a PF: > { %p999_p6 = scmp.ge.s32.totalorder %s1274_s16, 1  ;;  %p236_p7 = scmp.lt.s32.totalorder %s1274_s16, 3 }
  0x1c   : > { %p237_p8 = pnand %p999_p6, %p236_p7 }
  0x1d   : > { %s243_s28 = sand.u32 (!%p237_p8), 1, %s1258_s12   ;;  %s1001_s29 = sshll.u32 (!%p237_p8), %s1266_s14, 6 }
  0x1e   : > { %240 = sbr.rel (%p237_p8) target bundleno = 338 (0x152), region = 51  ;;  %s1000_s30 = sshll.u32 (!%p237_p8), %s243_s28, 7 }
  0x1f   : > { %p283_p9 = scmp.lt.s32.totalorder (!%p237_p8), %s1001_s29, 127  ;;  %s1367_s8 = scalar_lea.vmem (!%p237_p8), [#allocation3], %s1000_s30 }
  0x20   : > { %p1003_p10 = scmp.ne.s32.totalorder (!%p237_p8), %s1266_s14, 0 }
  0x25   : > { %s1472_s29 = smov (!%p283_p9, %s1001_s29), 127  ;;  %307 = sbr.rel (%p1003_p10) target bundleno = 44 (0x2c), region = 59 }
  0x26   : > { %s1002_s4 = sshll.u32 %s1472_s29, 2  ;;  %v1276_v16 = vmov (!%p1003_p10), 0.0  }
  0x27   : > { %s1365_s7 = scalar_lea.vmem %s1462_s1, %s1002_s4  ;;  %308 = vst [vmem:[#allocation2] sm:$0xff] (!%p1003_p10), %v1276_v16  ;;  %309 = vst [vmem:[#allocation2 + $0x8] sm:$0xff] (!%p1003_p10), %v1276_v16 }
  0x28   : > { %310 = vst [vmem:[#allocation2 + $0x10] sm:$0xff] (!%p1003_p10), %v1276_v16  ;;  %311 = vst [vmem:[#allocation2 + $0x18] sm:$0xff] (!%p1003_p10), %v1276_v16 }
  0x29   : > { %312 = vst [vmem:[#allocation2 + $0x20] sm:$0xff] (!%p1003_p10), %v1276_v16  ;;  %313 = vst [vmem:[#allocation2 + $0x28] sm:$0xff] (!%p1003_p10), %v1276_v16 }
  0x2a   : > { %314 = vst [vmem:[#allocation2 + $0x30] sm:$0xff] (!%p1003_p10), %v1276_v16  ;;  %315 = vst [vmem:[#allocation2 + $0x38] sm:$0xff] (!%p1003_p10), %v1276_v16 }
  0x2c PF: > { %v1180_v17 = vld [vmem:[%s1365_s7 + $0x40] sm:$0xff]   ;;  %v1184_v21 = vld [vmem:[%s1365_s7 + $0x48] sm:$0xff]   ;;  %v1188_v25 = vld [vmem:[%s1365_s7 + $0x50] sm:$0xff]   ;;  %p1052_p11 = scmp.ne.s32.totalorder %s1266_s14, 1 }
  0x2d   : > { %v1181_v18 = vld [vmem:[%s1365_s7 + $0xc0] sm:$0xff]   ;;  %1059 = vmatprep.subr.bf16.mxu0 %v1180_v17  ;;  %v1185_v22 = vld [vmem:[%s1365_s7 + $0xc8] sm:$0xff]   ;;  %v1189_v26 = vld [vmem:[%s1365_s7 + $0xd0] sm:$0xff]  }
  0x2e   : > { %v1182_v19 = vld [vmem:[%s1365_s7] sm:$0xff]   ;;  %1099 = vmatprep.subr.bf16.mxu1 %v1181_v18  ;;  %v1186_v23 = vld [vmem:[%s1365_s7 + $0x8] sm:$0xff]   ;;  %v1190_v27 = vld [vmem:[%s1365_s7 + $0x10] sm:$0xff]  }
  0x2f   : > { %v1183_v20 = vld [vmem:[%s1365_s7 + $0x80] sm:$0xff]   ;;  %1060 = vmatpush3.bf16.msra.mxu0 %v1182_v19  ;;  %v1187_v24 = vld [vmem:[%s1365_s7 + $0x88] sm:$0xff]   ;;  %v1191_v28 = vld [vmem:[%s1365_s7 + $0x90] sm:$0xff]  }
  0x30   : > { %1100 = vmatpush3.bf16.msra.mxu1 %v1183_v20  ;;  %1061 = vmatprep.subr.bf16.mxu0 %v1184_v21  ;;  %v1192_v29 = vld [vmem:[%s1365_s7 + $0x58] sm:$0xff]   ;;  %v1196_v33 = vld [vmem:[%s1365_s7 + $0x60] sm:$0xff]   ;;  %v1200_v37 = vld [vmem:[%s1365_s7 + $0x68] sm:$0xff]  }
  0x31   : > { %1101 = vmatprep.subr.bf16.mxu1 %v1185_v22  ;;  %v1193_v30 = vld [vmem:[%s1365_s7 + $0xd8] sm:$0xff]   ;;  %v1197_v34 = vld [vmem:[%s1365_s7 + $0xe0] sm:$0xff]   ;;  %v1201_v38 = vld [vmem:[%s1365_s7 + $0xe8] sm:$0xff]  }
  0x32   : > { %v1194_v31 = vld [vmem:[%s1365_s7 + $0x18] sm:$0xff]   ;;  %v1198_v35 = vld [vmem:[%s1365_s7 + $0x20] sm:$0xff]   ;;  %v1202_v39 = vld [vmem:[%s1365_s7 + $0x28] sm:$0xff]  }
  0x33   : > { %1062 = vmatpush3.bf16.msra.mxu0 %v1186_v23  ;;  %v1195_v32 = vld [vmem:[%s1365_s7 + $0x98] sm:$0xff]   ;;  %v1199_v36 = vld [vmem:[%s1365_s7 + $0xa0] sm:$0xff]   ;;  %v1203_v40 = vld [vmem:[%s1365_s7 + $0xa8] sm:$0xff]  }
  0x34   : > { %1102 = vmatpush3.bf16.msra.mxu1 %v1187_v24  ;;  %1063 = vmatprep.subr.bf16.mxu0 %v1188_v25  ;;  %v1204_v41 = vld [vmem:[%s1365_s7 + $0x70] sm:$0xff]   ;;  %v1208_v45 = vld [vmem:[%s1365_s7 + $0x78] sm:$0xff]   ;;  %v316_v10 = vld [vmem:[#allocation2] sm:$0xff] }
  0x35   : > { %1103 = vmatprep.subr.bf16.mxu1 %v1189_v26  ;;  %v1205_v42 = vld [vmem:[%s1365_s7 + $0xf0] sm:$0xff]   ;;  %v1209_v46 = vld [vmem:[%s1365_s7 + $0xf8] sm:$0xff]   ;;  %v317_v15 = vld [vmem:[#allocation2 + $0x8] sm:$0xff] }
  0x36   : > { %v1206_v43 = vld [vmem:[%s1365_s7 + $0x30] sm:$0xff]   ;;  %v1210_v47 = vld [vmem:[%s1365_s7 + $0x38] sm:$0xff]  }
  0x37   : > { %1064 = vmatpush3.bf16.msra.mxu0 %v1190_v27  ;;  %v1207_v44 = vld [vmem:[%s1365_s7 + $0xb0] sm:$0xff]   ;;  %v1211_v48 = vld [vmem:[%s1365_s7 + $0xb8] sm:$0xff]  }
  0x38   : > { %1104 = vmatpush3.bf16.msra.mxu1 %v1191_v28  ;;  %1065 = vmatprep.subr.bf16.mxu0 %v1192_v29  ;;  %v1212_v49 = vld [vmem:[%s1367_s8] ss:$16 sps:$4 sm:$0xff]   ;;  %v1214_v50 = vld [vmem:[%s1367_s8 + $0x4] ss:$16 sps:$4 sm:$0xff]   ;;  %v1215_v51 = vld [vmem:[%s1367_s8 + $0x8] ss:$16 sps:$4 sm:$0xff]  }
  0x39   : > { %1105 = vmatprep.subr.bf16.mxu1 %v1193_v30  ;;  %v1217_v52 = vld [vmem:[%s1367_s8 + $0xc] ss:$16 sps:$4 sm:$0xff]   ;;  %708 = vmatprep.mubr.bf16.mxu0 %v1214_v50  ;;  %v1218_v53 = vld [vmem:[%s1367_s8 + $0x24] ss:$16 sps:$4 sm:$0xff]   ;;  %v1222_v55 = vld [vmem:[%s1367_s8 + $0x20] ss:$16 sps:$4 sm:$0xff]  }
  0x3a   : > { %773 = vmatprep.mubr.bf16.mxu1 %v1217_v52  ;;  %v1220_v54 = vld [vmem:[%s1367_s8 + $0x2c] ss:$16 sps:$4 sm:$0xff]   ;;  %v1223_v56 = vld [vmem:[%s1367_s8 + $0x28] ss:$16 sps:$4 sm:$0xff]   ;;  %v1224_v57 = vld [vmem:[%s1367_s8 + $0x44] ss:$16 sps:$4 sm:$0xff]  }
  0x3b   : > { %1066 = vmatpush3.bf16.msra.mxu0 %v1194_v31  ;;  %v1226_v58 = vld [vmem:[%s1367_s8 + $0x4c] ss:$16 sps:$4 sm:$0xff]   ;;  %v1228_v59 = vld [vmem:[%s1367_s8 + $0x40] ss:$16 sps:$4 sm:$0xff]   ;;  %v1229_v60 = vld [vmem:[%s1367_s8 + $0x48] ss:$16 sps:$4 sm:$0xff]  }
  0x3c   : > { %1106 = vmatpush3.bf16.msra.mxu1 %v1195_v32  ;;  %1067 = vmatprep.subr.bf16.mxu0 %v1196_v33  ;;  %v1230_v61 = vld [vmem:[%s1367_s8 + $0x64] ss:$16 sps:$4 sm:$0xff]   ;;  %v1232_v62 = vld [vmem:[%s1367_s8 + $0x6c] ss:$16 sps:$4 sm:$0xff]   ;;  %v1234_v63 = vld [vmem:[%s1367_s8 + $0x60] ss:$16 sps:$4 sm:$0xff]  }
  0x3d   : > { %1107 = vmatprep.subr.bf16.mxu1 %v1197_v34  ;;  %v1235_v0 = vld [vmem:[%s1367_s8 + $0x68] ss:$16 sps:$4 sm:$0xff]   ;;  %v318_v28 = vld [vmem:[#allocation2 + $0x10] sm:$0xff] }
  0x3e   : > { %v319_v33 = vld [vmem:[#allocation2 + $0x18] sm:$0xff] }
  0x3f   : > { %1068 = vmatpush3.bf16.msra.mxu0 %v1198_v35 }
  0x40   : > { %1108 = vmatpush3.bf16.msra.mxu1 %v1199_v36  ;;  %1069 = vmatprep.subr.bf16.mxu0 %v1200_v37 }
  0x41   : > { %1109 = vmatprep.subr.bf16.mxu1 %v1201_v38 }
  0x43   : > { %1070 = vmatpush3.bf16.msra.mxu0 %v1202_v39 }
  0x44   : > { %1110 = vmatpush3.bf16.msra.mxu1 %v1203_v40  ;;  %1071 = vmatprep.subr.bf16.mxu0 %v1204_v41 }
  0x45   : > { %1111 = vmatprep.subr.bf16.mxu1 %v1205_v42 }
  0x47   : > { %1072 = vmatpush3.bf16.msra.mxu0 %v1206_v43 }
  0x48   : > { %1112 = vmatpush3.bf16.msra.mxu1 %v1207_v44  ;;  %1073 = vmatprep.subr.bf16.mxu0 %v1208_v45 }
  0x49   : > { %1113 = vmatprep.subr.bf16.mxu1 %v1209_v46  ;;  %v320_v46 = vld [vmem:[#allocation2 + $0x20] sm:$0xff] }
  0x4b   : > { %1074 = vmatpush3.bf16.msra.mxu0 %v1210_v47 }
  0x4c   : > { %1114 = vmatpush3.bf16.msra.mxu1 %v1211_v48 }
  0x4e   : > { %709 = vmatmul.mubr.bf16.vlgmr.msra.gmra.mrb[0].mxu0 %v1212_v49 }
  0x4f   : > { %774 = vmatmul.mubr.bf16.vlgmr.msra.gmra.mrb[0].mxu1 %v1215_v51  ;;  %716 = vmatprep.mubr.bf16.mxu0 %v1218_v53  ;;  %v321_v51 = vld [vmem:[#allocation2 + $0x28] sm:$0xff] }
  0x50   : > { %781 = vmatprep.mubr.bf16.mxu1 %v1220_v54 }
  0x56   : > { %717 = vmatmul.mubr.bf16.gmra.mrb[4].mxu0 %v1222_v55 }
  0x57   : > { %782 = vmatmul.mubr.bf16.gmra.mrb[4].mxu1 %v1223_v56  ;;  %724 = vmatprep.mubr.bf16.mxu0 %v1224_v57 }
  0x58   : > { %789 = vmatprep.mubr.bf16.mxu1 %v1226_v58 }
  0x5e   : > { %725 = vmatmul.mubr.bf16.gmra.mrb[8].mxu0 %v1228_v59 }
  0x5f   : > { %790 = vmatmul.mubr.bf16.gmra.mrb[8].mxu1 %v1229_v60  ;;  %732 = vmatprep.mubr.bf16.mxu0 %v1230_v61 }
  0x60   : > { %797 = vmatprep.mubr.bf16.mxu1 %v1232_v62 }
  0x66   : > { %733 = vmatmul.mubr.bf16.gmra.mrb[12].mxu0 %v1234_v63 }
  0x67   : > { %798 = vmatmul.mubr.bf16.gmra.mrb[12].mxu1 %v1235_v0  ;;  %v322_v0 = vld [vmem:[#allocation2 + $0x30] sm:$0xff] }
 0x121   : > { %v1075_v1 = vpop.f32.mrb[0].mxu0 }
 0x122   : > { %v1115_v2 = vpop.f32.mrb[0].mxu1  ;;  %v1076_v3 = vpop.f32.mrb[1].mxu0 }
 0x123   : > { %v1077_v4 = vadd.f32 %v1076_v3, %v1075_v1  ;;  %v1116_v5 = vpop.f32.mrb[1].mxu1  ;;  %v1078_v6 = vpop.f32.mrb[2].mxu0 }
 0x124   : > { %v1117_v7 = vadd.f32 %v1116_v5, %v1115_v2  ;;  %v1118_v8 = vpop.f32.mrb[2].mxu1  ;;  %v1079_v9 = vpop.f32.mrb[3].mxu0  ;;  %v323_v5 = vld [vmem:[#allocation2 + $0x38] sm:$0xff] }
 0x125   : > { %v1080_v11 = vadd.f32 %v1079_v9, %v1078_v6  ;;  %v1119_v12 = vpop.f32.mrb[3].mxu1 }
 0x126   : > { %v776_v13 = vadd.f32 %v1117_v7, %v1077_v4  ;;  %v1120_v14 = vadd.f32 %v1119_v12, %v1118_v8 }
 0x128   : > { %v806_v16 = vadd.f32 %v776_v13, %v316_v10  ;;  %v779_v17 = vadd.f32 %v1120_v14, %v1080_v11  ;;  %v1053_v10 = vld [vmem:[%s1463_s2] ss:$0 sm:$0xff] (!%p1052_p11) }
 0x129   : > { %v1081_v18 = vpop.f32.mrb[4].mxu0 }
 0x12a   : > { %814 = vst [vmem:[#allocation2] sm:$0xff] %v806_v16  ;;  %v807_v19 = vadd.f32 %v779_v17, %v317_v15  ;;  %v1121_v20 = vpop.f32.mrb[4].mxu1  ;;  %v1082_v21 = vpop.f32.mrb[5].mxu0 }
 0x12b   : > { %v1083_v22 = vadd.f32 %v1082_v21, %v1081_v18  ;;  %v1122_v23 = vpop.f32.mrb[5].mxu1  ;;  %v1084_v24 = vpop.f32.mrb[6].mxu0 }
 0x12c   : > { %815 = vst [vmem:[#allocation2 + $0x8] sm:$0xff] %v807_v19  ;;  %v1123_v25 = vadd.f32 %v1122_v23, %v1121_v20  ;;  %v1124_v26 = vpop.f32.mrb[6].mxu1  ;;  %v1085_v27 = vpop.f32.mrb[7].mxu0 }
 0x12d   : > { %v1086_v29 = vadd.f32 %v1085_v27, %v1084_v24  ;;  %v1125_v30 = vpop.f32.mrb[7].mxu1 }
 0x12e   : > { %v784_v31 = vadd.f32 %v1123_v25, %v1083_v22  ;;  %v1126_v32 = vadd.f32 %v1125_v30, %v1124_v26 }
 0x130   : > { %v808_v34 = vadd.f32 %v784_v31, %v318_v28  ;;  %v787_v35 = vadd.f32 %v1126_v32, %v1086_v29 }
 0x131   : > { %v1087_v36 = vpop.f32.mrb[8].mxu0  ;;  %v826_v9 = vld [vmem:[#allocation2] sm:$0xff] (!%p1052_p11) }
 0x132   : > { %816 = vst [vmem:[#allocation2 + $0x10] sm:$0xff] %v808_v34  ;;  %v809_v37 = vadd.f32 %v787_v35, %v319_v33  ;;  %v1127_v38 = vpop.f32.mrb[8].mxu1  ;;  %v1088_v39 = vpop.f32.mrb[9].mxu0  ;;  %v841_v12 = vadd.f32 (!%p1052_p11), %v1053_v10, %v826_v9 }
 0x133   : > { %v1089_v40 = vadd.f32 %v1088_v39, %v1087_v36  ;;  %v1128_v41 = vpop.f32.mrb[9].mxu1  ;;  %v1090_v42 = vpop.f32.mrb[10].mxu0  ;;  %v827_v11 = vld [vmem:[#allocation2 + $0x8] sm:$0xff] (!%p1052_p11) }
 0x134   : > { %817 = vst [vmem:[#allocation2 + $0x18] sm:$0xff] %v809_v37  ;;  %v1129_v43 = vadd.f32 %v1128_v41, %v1127_v38  ;;  %v1130_v44 = vpop.f32.mrb[10].mxu1  ;;  %v1091_v45 = vpop.f32.mrb[11].mxu0  ;;  %v842_v13 = vadd.f32 (!%p1052_p11), %v1053_v10, %v827_v11  ;;  %vm849_vm0 = vcmp.ge.f32.partialorder (!%p1052_p11), %v841_v12, 0.0  ;;  %v857_v23 = vmul.f32 (!%p1052_p11), 0.2, %v841_v12 }
 0x135   : > { %v1092_v47 = vadd.f32 %v1091_v45, %v1090_v42  ;;  %v1131_v48 = vpop.f32.mrb[11].mxu1 }
 0x136   : > { %v792_v49 = vadd.f32 %v1129_v43, %v1089_v40  ;;  %v1132_v50 = vadd.f32 %v1131_v48, %v1130_v44  ;;  %vm850_vm1 = vcmp.ge.f32.partialorder (!%p1052_p11), %v842_v13, 0.0  ;;  %v858_v24 = vmul.f32 (!%p1052_p11), 0.2, %v842_v13 }
 0x137   : > { %v865_v27 = vsel (!%p1052_p11), %vm849_vm0, %v841_v12, %v857_v23 }
 0x138   : > { %v810_v52 = vadd.f32 %v792_v49, %v320_v46  ;;  %v795_v53 = vadd.f32 %v1132_v50, %v1092_v47  ;;  %v866_v28 = vsel (!%p1052_p11), %vm850_vm1, %v842_v13, %v858_v24  ;;  %873 = vst [vmem:[%s1464_s3] sm:$0xff] (!%p1052_p11), %v865_v27 }
 0x139   : > { %v1093_v54 = vpop.f32.mrb[12].mxu0  ;;  %v828_v14 = vld [vmem:[#allocation2 + $0x10] sm:$0xff] (!%p1052_p11)  ;;  %874 = vst [vmem:[%s1464_s3 + $0x8] sm:$0xff] (!%p1052_p11), %v866_v28 }
 0x13a   : > { %818 = vst [vmem:[#allocation2 + $0x20] sm:$0xff] %v810_v52  ;;  %v811_v55 = vadd.f32 %v795_v53, %v321_v51  ;;  %v1133_v56 = vpop.f32.mrb[12].mxu1  ;;  %v1094_v57 = vpop.f32.mrb[13].mxu0  ;;  %v843_v17 = vadd.f32 (!%p1052_p11), %v1053_v10, %v828_v14 }
 0x13b   : > { %v1095_v58 = vadd.f32 %v1094_v57, %v1093_v54  ;;  %v1134_v59 = vpop.f32.mrb[13].mxu1  ;;  %v1096_v60 = vpop.f32.mrb[14].mxu0  ;;  %v829_v15 = vld [vmem:[#allocation2 + $0x18] sm:$0xff] (!%p1052_p11) }
 0x13c   : > { %819 = vst [vmem:[#allocation2 + $0x28] sm:$0xff] %v811_v55  ;;  %v1135_v61 = vadd.f32 %v1134_v59, %v1133_v56  ;;  %v1136_v62 = vpop.f32.mrb[14].mxu1  ;;  %v1097_v63 = vpop.f32.mrb[15].mxu0  ;;  %v844_v18 = vadd.f32 (!%p1052_p11), %v1053_v10, %v829_v15  ;;  %vm851_vm2 = vcmp.ge.f32.partialorder (!%p1052_p11), %v843_v17, 0.0  ;;  %v859_v25 = vmul.f32 (!%p1052_p11), 0.2, %v843_v17 }
 0x13d   : > { %v1098_v1 = vadd.f32 %v1097_v63, %v1096_v60  ;;  %v1137_v2 = vpop.f32.mrb[15].mxu1 }
 0x13e   : > { %v800_v3 = vadd.f32 %v1135_v61, %v1095_v58  ;;  %v1138_v4 = vadd.f32 %v1137_v2, %v1136_v62  ;;  %825 = sbr.rel (%p1052_p11) target bundleno = 338 (0x152), region = 63  ;;  %vm852_vm3 = vcmp.ge.f32.partialorder (!%p1052_p11), %v844_v18, 0.0  ;;  %v860_v26 = vmul.f32 (!%p1052_p11), 0.2, %v844_v18 }
 0x13f   : > { %v867_v30 = vsel (!%p1052_p11), %vm851_vm2, %v843_v17, %v859_v25 }
 0x140   : > { %v812_v6 = vadd.f32 %v800_v3, %v322_v0  ;;  %v803_v7 = vadd.f32 %v1138_v4, %v1098_v1  ;;  %v868_v31 = vsel (!%p1052_p11), %vm852_vm3, %v844_v18, %v860_v26  ;;  %875 = vst [vmem:[%s1464_s3 + $0x10] sm:$0xff] (!%p1052_p11), %v867_v30 }
 0x141   : > { %v830_v16 = vld [vmem:[#allocation2 + $0x20] sm:$0xff] (!%p1052_p11)  ;;  %876 = vst [vmem:[%s1464_s3 + $0x18] sm:$0xff] (!%p1052_p11), %v868_v31 }
 0x142   : > { %820 = vst [vmem:[#allocation2 + $0x30] sm:$0xff] %v812_v6  ;;  %v813_v8 = vadd.f32 %v803_v7, %v323_v5  ;;  %v845_v19 = vadd.f32 (!%p1052_p11), %v1053_v10, %v830_v16 }
 0x143   : > { %v831_v20 = vld [vmem:[#allocation2 + $0x28] sm:$0xff] (!%p1052_p11) }
 0x144   : > { %821 = vst [vmem:[#allocation2 + $0x38] sm:$0xff] %v813_v8  ;;  %vm853_vm4 = vcmp.ge.f32.partialorder (!%p1052_p11), %v845_v19, 0.0  ;;  %v861_v29 = vmul.f32 (!%p1052_p11), 0.2, %v845_v19  ;;  %v846_v32 = vadd.f32 (!%p1052_p11), %v1053_v10, %v831_v20 }
 0x146   : > { %v869_v34 = vsel %vm853_vm4, %v845_v19, %v861_v29  ;;  %vm854_vm5 = vcmp.ge.f32.partialorder %v846_v32, 0.0  ;;  %v862_v36 = vmul.f32 0.2, %v846_v32 }
 0x147   : > { %877 = vst [vmem:[%s1464_s3 + $0x20] sm:$0xff] %v869_v34 }
 0x148   : > { %v870_v39 = vsel %vm854_vm5, %v846_v32, %v862_v36 }
 0x149   : > { %v832_v21 = vld [vmem:[#allocation2 + $0x30] sm:$0xff]  ;;  %878 = vst [vmem:[%s1464_s3 + $0x28] sm:$0xff] %v870_v39 }
 0x14a   : > { %v847_v33 = vadd.f32 %v1053_v10, %v832_v21 }
 0x14b   : > { %v833_v22 = vld [vmem:[#allocation2 + $0x38] sm:$0xff] }
 0x14c   : > { %v848_v35 = vadd.f32 %v1053_v10, %v833_v22  ;;  %vm855_vm6 = vcmp.ge.f32.partialorder %v847_v33, 0.0  ;;  %v863_v37 = vmul.f32 0.2, %v847_v33 }
 0x14e   : > { %vm856_vm7 = vcmp.ge.f32.partialorder %v848_v35, 0.0  ;;  %v864_v38 = vmul.f32 0.2, %v848_v35  ;;  %v871_v40 = vsel %vm855_vm6, %v847_v33, %v863_v37 }
 0x14f   : > { %879 = vst [vmem:[%s1464_s3 + $0x30] sm:$0xff] %v871_v40 }
 0x150   : > { %v872_v41 = vsel %vm856_vm7, %v848_v35, %v864_v38 }
 0x151   : > { %880 = vst [vmem:[%s1464_s3 + $0x38] sm:$0xff] %v872_v41 }
 0x152 PF: > { %s13_s16 = sadd.s32 1, %s1274_s16   ;;  %s1465_s12 = smov %s1262_s13 }
 0x153   : > { %p10_p12 = scmp.ge.s32.totalorder %s13_s16, 4   ;;  %s1466_s13 = smov %s1332_s20 }
 0x154   : > { %s1467_s14 = smov %s1270_s15  ;;  %s1468_s15 = smov %s1470_s17 }
 0x155   :  { %12 = sbr.rel (!%p10_p12) target bundleno = 3 (0x3), region = 104 }

// kernel: _lambda_.17
= control target key start
LH: loop header
LB: loop body
LE: loop exit
PB: predicated region body
PF: predicated region fallthrough
CT: control target
= control target key end

     0   :  { %s1376_s12 = smov 0   ;;  %s1378_s13 = smov 0   ;;  %s1546_s0 = inlined_call_operand.vmem [shape: bf16[32,2048], index: 0, kind: input, shape index: {}]   ;;  %s1547_s1 = inlined_call_operand.vmem [shape: bf16[2048,256], index: 1, kind: input, shape index: {}]   ;;  %s1548_s2 = inlined_call_operand.vmem [shape: f32[1,256], index: 2, kind: input, shape index: {}]   ;;  %s1549_s3 = inlined_call_operand.vmem [shape: f32[32,256], index: 3, kind: output, shape index: {}]  }
   0x1   :  { %s1380_s14 = smov 0   ;;  %s1382_s15 = smov 0  }
   0x2   :  { %s1384_s16 = smov 0  }
   0x3 LB: > { %s25_s17 = sadd.s32 1, %s1349_s15  ;;  %p48_p1 = scmp.ne.s32.totalorder %s1341_s13, %s1337_s12  ;;  %s1353_s16 = sphi %s1384_s16, %s13_s16   ;;  %s1349_s15 = sphi %s1382_s15, %s1553_s15   ;;  %s1345_s14 = sphi %s1380_s14, %s1552_s14   ;;  %s1341_s13 = sphi %s1378_s13, %s1551_s13   ;;  %s1337_s12 = sphi %s1376_s12, %s1550_s12  }
   0x4   : > { %p26_p0 = scmp.ge.s32.totalorder %s25_s17, 4  ;;  %p49_p2 = scmp.eq.s32.totalorder %s1353_s16, 0 }
   0x5   : > { %s41_s19 = sadd.s32 1, %s1341_s13  ;;  %p1069_p5 = scmp.ge.s32.totalorder %s1353_s16, 4 }
   0x6   : > { %s1555_s17 = smov (%p26_p0, %s25_s17), 0  ;;  %p50_p3 = por %p49_p2, %p48_p1 }
   0x7   : > { %s37_s18 = ssub.s32 %s1349_s15, %s1555_s17  ;;  %164 = sbr.rel (%p1069_p5) target bundleno = 22 (0x16), region = 20 }
   0x8   : > { %p39_p4 = scmp.eq.s32.totalorder %s37_s18, 0 }
   0xa   : > { %s1411_s20 = scalar_select %p39_p4, %s1341_s13, %s41_s19  }
   0xe   : > { %167 = sbr.rel (!%p50_p3) target bundleno = 22 (0x16), region = 24  ;;  %s169_s21 = sand.u32 (%p50_p3), 1, %s1341_s13  }
   0xf   : > { %s1156_s22 = sshll.u32 (%p50_p3), %s1349_s15, 4  ;;  %s1070_s23 = sshll.u32 (%p50_p3), %s169_s21, 6 }
  0x10   : > { %s177_s26 = scalar_lea.vmem (%p50_p3), %s1546_s0, %s1156_s22  ;;  %s171_s27 = scalar_lea.vmem (%p50_p3), [#allocation3], %s1070_s23 }
  0x11   : > { %v190_v0 = vld [vmem:[%s177_s26] sm:$0xff] (%p50_p3)  ;;  %v192_v1 = vld [vmem:[%s177_s26 + $0x8] sm:$0xff] (%p50_p3) }
  0x12   : > { %v194_v2 = vld [vmem:[%s177_s26 + $0x40] sm:$0xff] (%p50_p3)  ;;  %191 = vst [vmem:[%s171_s27] sm:$0xff] (%p50_p3), %v190_v0  ;;  %193 = vst [vmem:[%s171_s27 + $0x8] sm:$0xff] (%p50_p3), %v192_v1  ;;  %v196_v3 = vld [vmem:[%s177_s26 + $0x48] sm:$0xff] (%p50_p3) }
  0x13   : > { %195 = vst [vmem:[%s171_s27 + $0x10] sm:$0xff] (%p50_p3), %v194_v2  ;;  %v198_v4 = vld [vmem:[%s177_s26 + $0x80] sm:$0xff] (%p50_p3)  ;;  %v200_v5 = vld [vmem:[%s177_s26 + $0x88] sm:$0xff] (%p50_p3)  ;;  %197 = vst [vmem:[%s171_s27 + $0x18] sm:$0xff] (%p50_p3), %v196_v3 }
  0x14   : > { %199 = vst [vmem:[%s171_s27 + $0x20] sm:$0xff] (%p50_p3), %v198_v4  ;;  %201 = vst [vmem:[%s171_s27 + $0x28] sm:$0xff] (%p50_p3), %v200_v5  ;;  %v202_v6 = vld [vmem:[%s177_s26 + $0xc0] sm:$0xff] (%p50_p3)  ;;  %v204_v7 = vld [vmem:[%s177_s26 + $0xc8] sm:$0xff] (%p50_p3) }
  0x15   : > { %203 = vst [vmem:[%s171_s27 + $0x30] sm:$0xff] %v202_v6  ;;  %205 = vst [vmem:[%s171_s27 + $0x38] sm:$0xff] %v204_v7 }
  0x16 PF: > { %p1073_p6 = scmp.ge.s32.totalorder %s1353_s16, 1  ;;  %p225_p7 = scmp.lt.s32.totalorder %s1353_s16, 5 }
  0x18   : > { %p226_p8 = pnand %p1073_p6, %p225_p7 }
  0x19   : > { %s232_s28 = sand.u32 (!%p226_p8), 1, %s1337_s12   ;;  %s1075_s29 = sshll.u32 (!%p226_p8), %s1345_s14, 6 }
  0x1a   : > { %229 = sbr.rel (%p226_p8) target bundleno = 347 (0x15b), region = 51  ;;  %s1074_s30 = sshll.u32 (!%p226_p8), %s232_s28, 6 }
  0x1b   : > { %p278_p9 = scmp.lt.s32.totalorder (!%p226_p8), %s1075_s29, 255  ;;  %s1428_s8 = scalar_lea.vmem (!%p226_p8), [#allocation3], %s1074_s30 }
  0x1c   : > { %p1078_p10 = scmp.ne.s32.totalorder (!%p226_p8), %s1345_s14, 0 }
  0x21   : > { %s1557_s29 = smov (!%p278_p9, %s1075_s29), 255  ;;  %308 = sbr.rel (%p1078_p10) target bundleno = 40 (0x28), region = 59 }
  0x22   : > { %s1157_s4 = sshll.u32 %s1557_s29, 3  ;;  %v1355_v8 = vmov (!%p1078_p10), 0.0  }
  0x23   : > { %s1426_s7 = scalar_lea.vmem %s1547_s1, %s1157_s4  ;;  %309 = vst [vmem:[#allocation2] sm:$0xff] (!%p1078_p10), %v1355_v8  ;;  %310 = vst [vmem:[#allocation2 + $0x8] sm:$0xff] (!%p1078_p10), %v1355_v8 }
  0x24   : > { %311 = vst [vmem:[#allocation2 + $0x10] sm:$0xff] (!%p1078_p10), %v1355_v8  ;;  %312 = vst [vmem:[#allocation2 + $0x18] sm:$0xff] (!%p1078_p10), %v1355_v8 }
  0x25   : > { %313 = vst [vmem:[#allocation2 + $0x20] sm:$0xff] (!%p1078_p10), %v1355_v8  ;;  %314 = vst [vmem:[#allocation2 + $0x28] sm:$0xff] (!%p1078_p10), %v1355_v8 }
  0x26   : > { %315 = vst [vmem:[#allocation2 + $0x30] sm:$0xff] (!%p1078_p10), %v1355_v8  ;;  %316 = vst [vmem:[#allocation2 + $0x38] sm:$0xff] (!%p1078_p10), %v1355_v8 }
  0x28 PF: > { %v1207_v9 = vld [vmem:[%s1426_s7 + $0x4] ss:$8 sps:$4 sm:$0xff]   ;;  %v1211_v11 = vld [vmem:[%s1426_s7] ss:$8 sps:$4 sm:$0xff]   ;;  %v1213_v13 = vld [vmem:[%s1426_s7 + $0x14] ss:$8 sps:$4 sm:$0xff]  }
  0x29   : > { %v1209_v10 = vld [vmem:[%s1426_s7 + $0x104] ss:$8 sps:$4 sm:$0xff]   ;;  %757 = vmatprep.subr.bf16.mxu1 %v1207_v9  ;;  %v1212_v12 = vld [vmem:[%s1426_s7 + $0x100] ss:$8 sps:$4 sm:$0xff]   ;;  %v1215_v14 = vld [vmem:[%s1426_s7 + $0x114] ss:$8 sps:$4 sm:$0xff]  }
  0x2a   : > { %810 = vmatprep.subr.bf16.mxu0 %v1209_v10  ;;  %758 = vmatpush1.bf16.msra.mxu1 %v1211_v11  ;;  %v1217_v15 = vld [vmem:[%s1426_s7 + $0x10] ss:$8 sps:$4 sm:$0xff]   ;;  %v1219_v17 = vld [vmem:[%s1426_s7 + $0x24] ss:$8 sps:$4 sm:$0xff]   ;;  %v1223_v19 = vld [vmem:[%s1426_s7 + $0x20] ss:$8 sps:$4 sm:$0xff]  }
  0x2b   : > { %811 = vmatpush1.bf16.msra.mxu0 %v1212_v12  ;;  %759 = vmatprep.subr.bf16.mxu1 %v1213_v13  ;;  %v1218_v16 = vld [vmem:[%s1426_s7 + $0x110] ss:$8 sps:$4 sm:$0xff]   ;;  %v1221_v18 = vld [vmem:[%s1426_s7 + $0x124] ss:$8 sps:$4 sm:$0xff]   ;;  %v1224_v20 = vld [vmem:[%s1426_s7 + $0x120] ss:$8 sps:$4 sm:$0xff]  }
  0x2c   : > { %812 = vmatprep.subr.bf16.mxu0 %v1215_v14  ;;  %v1225_v21 = vld [vmem:[%s1426_s7 + $0x34] ss:$8 sps:$4 sm:$0xff]   ;;  %v1229_v23 = vld [vmem:[%s1426_s7 + $0x30] ss:$8 sps:$4 sm:$0xff]   ;;  %v1231_v25 = vld [vmem:[%s1426_s7 + $0x44] ss:$8 sps:$4 sm:$0xff]  }
  0x2d   : > { %v1227_v22 = vld [vmem:[%s1426_s7 + $0x134] ss:$8 sps:$4 sm:$0xff]   ;;  %v1230_v24 = vld [vmem:[%s1426_s7 + $0x130] ss:$8 sps:$4 sm:$0xff]   ;;  %v1233_v26 = vld [vmem:[%s1426_s7 + $0x144] ss:$8 sps:$4 sm:$0xff]  }
  0x2e   : > { %760 = vmatpush1.bf16.msra.mxu1 %v1217_v15  ;;  %v1235_v27 = vld [vmem:[%s1426_s7 + $0x40] ss:$8 sps:$4 sm:$0xff]   ;;  %v1237_v29 = vld [vmem:[%s1426_s7 + $0x54] ss:$8 sps:$4 sm:$0xff]   ;;  %v1241_v31 = vld [vmem:[%s1426_s7 + $0x50] ss:$8 sps:$4 sm:$0xff]  }
  0x2f   : > { %813 = vmatpush1.bf16.msra.mxu0 %v1218_v16  ;;  %761 = vmatprep.subr.bf16.mxu1 %v1219_v17  ;;  %v1236_v28 = vld [vmem:[%s1426_s7 + $0x140] ss:$8 sps:$4 sm:$0xff]   ;;  %v1239_v30 = vld [vmem:[%s1426_s7 + $0x154] ss:$8 sps:$4 sm:$0xff]   ;;  %v1242_v32 = vld [vmem:[%s1426_s7 + $0x150] ss:$8 sps:$4 sm:$0xff]  }
  0x30   : > { %814 = vmatprep.subr.bf16.mxu0 %v1221_v18  ;;  %v1243_v33 = vld [vmem:[%s1426_s7 + $0x64] ss:$8 sps:$4 sm:$0xff]   ;;  %v1247_v35 = vld [vmem:[%s1426_s7 + $0x60] ss:$8 sps:$4 sm:$0xff]   ;;  %v1249_v37 = vld [vmem:[%s1426_s7 + $0x74] ss:$8 sps:$4 sm:$0xff]  }
  0x31   : > { %v1245_v34 = vld [vmem:[%s1426_s7 + $0x164] ss:$8 sps:$4 sm:$0xff]   ;;  %v1248_v36 = vld [vmem:[%s1426_s7 + $0x160] ss:$8 sps:$4 sm:$0xff]   ;;  %v1251_v38 = vld [vmem:[%s1426_s7 + $0x174] ss:$8 sps:$4 sm:$0xff]  }
  0x32   : > { %762 = vmatpush1.bf16.msra.mxu1 %v1223_v19  ;;  %v1253_v39 = vld [vmem:[%s1426_s7 + $0x70] ss:$8 sps:$4 sm:$0xff]   ;;  %v1255_v41 = vld [vmem:[%s1426_s7 + $0x84] ss:$8 sps:$4 sm:$0xff]   ;;  %v1259_v43 = vld [vmem:[%s1426_s7 + $0x80] ss:$8 sps:$4 sm:$0xff]  }
  0x33   : > { %815 = vmatpush1.bf16.msra.mxu0 %v1224_v20  ;;  %763 = vmatprep.subr.bf16.mxu1 %v1225_v21  ;;  %v1254_v40 = vld [vmem:[%s1426_s7 + $0x170] ss:$8 sps:$4 sm:$0xff]   ;;  %v1257_v42 = vld [vmem:[%s1426_s7 + $0x184] ss:$8 sps:$4 sm:$0xff]   ;;  %v1260_v44 = vld [vmem:[%s1426_s7 + $0x180] ss:$8 sps:$4 sm:$0xff]  }
  0x34   : > { %816 = vmatprep.subr.bf16.mxu0 %v1227_v22  ;;  %v1261_v45 = vld [vmem:[%s1426_s7 + $0x94] ss:$8 sps:$4 sm:$0xff]   ;;  %v1265_v47 = vld [vmem:[%s1426_s7 + $0x90] ss:$8 sps:$4 sm:$0xff]   ;;  %v1267_v49 = vld [vmem:[%s1426_s7 + $0xa4] ss:$8 sps:$4 sm:$0xff]  }
  0x35   : > { %v1263_v46 = vld [vmem:[%s1426_s7 + $0x194] ss:$8 sps:$4 sm:$0xff]   ;;  %v1266_v48 = vld [vmem:[%s1426_s7 + $0x190] ss:$8 sps:$4 sm:$0xff]   ;;  %v1269_v50 = vld [vmem:[%s1426_s7 + $0x1a4] ss:$8 sps:$4 sm:$0xff]  }
  0x36   : > { %764 = vmatpush1.bf16.msra.mxu1 %v1229_v23  ;;  %v1271_v51 = vld [vmem:[%s1426_s7 + $0xa0] ss:$8 sps:$4 sm:$0xff]   ;;  %v1273_v53 = vld [vmem:[%s1426_s7 + $0xb4] ss:$8 sps:$4 sm:$0xff]   ;;  %v1277_v55 = vld [vmem:[%s1426_s7 + $0xb0] ss:$8 sps:$4 sm:$0xff]  }
  0x37   : > { %817 = vmatpush1.bf16.msra.mxu0 %v1230_v24  ;;  %765 = vmatprep.subr.bf16.mxu1 %v1231_v25  ;;  %v1272_v52 = vld [vmem:[%s1426_s7 + $0x1a0] ss:$8 sps:$4 sm:$0xff]   ;;  %v1275_v54 = vld [vmem:[%s1426_s7 + $0x1b4] ss:$8 sps:$4 sm:$0xff]   ;;  %v1278_v56 = vld [vmem:[%s1426_s7 + $0x1b0] ss:$8 sps:$4 sm:$0xff]  }
  0x38   : > { %818 = vmatprep.subr.bf16.mxu0 %v1233_v26  ;;  %v1279_v57 = vld [vmem:[%s1426_s7 + $0xc4] ss:$8 sps:$4 sm:$0xff]   ;;  %v1283_v61 = vld [vmem:[%s1426_s7 + $0xc0] ss:$8 sps:$4 sm:$0xff]   ;;  %v1285_v63 = vld [vmem:[%s1426_s7 + $0xd4] ss:$8 sps:$4 sm:$0xff]  }
  0x39   : > { %v1305_v58 = vld [vmem:[%s1428_s8 + $0x4] ss:$16 sps:$4 sm:$0xff]   ;;  %v1308_v60 = vld [vmem:[%s1428_s8 + $0xc] ss:$16 sps:$4 sm:$0xff]   ;;  %v1284_v62 = vld [vmem:[%s1426_s7 + $0x1c0] ss:$8 sps:$4 sm:$0xff]  }
  0x3a   : > { %766 = vmatpush1.bf16.msra.mxu1 %v1235_v27  ;;  %v1281_v59 = vld [vmem:[%s1426_s7 + $0x1c4] ss:$8 sps:$4 sm:$0xff]   ;;  %789 = vmatprep.mubr.bf16.mxu1 %v1305_v58  ;;  %v1287_v0 = vld [vmem:[%s1426_s7 + $0x1d4] ss:$8 sps:$4 sm:$0xff]   ;;  %v1289_v1 = vld [vmem:[%s1426_s7 + $0xd0] ss:$8 sps:$4 sm:$0xff]  }
  0x3b   : > { %819 = vmatpush1.bf16.msra.mxu0 %v1236_v28  ;;  %767 = vmatprep.subr.bf16.mxu1 %v1237_v29  ;;  %v1290_v2 = vld [vmem:[%s1426_s7 + $0x1d0] ss:$8 sps:$4 sm:$0xff]   ;;  %v1291_v3 = vld [vmem:[%s1426_s7 + $0xe4] ss:$8 sps:$4 sm:$0xff]   ;;  %v1295_v5 = vld [vmem:[%s1426_s7 + $0xe0] ss:$8 sps:$4 sm:$0xff]  }
  0x3c   : > { %820 = vmatprep.subr.bf16.mxu0 %v1239_v30  ;;  %842 = vmatprep.mubr.bf16.mxu0 %v1308_v60  ;;  %v1293_v4 = vld [vmem:[%s1426_s7 + $0x1e4] ss:$8 sps:$4 sm:$0xff]   ;;  %v1296_v6 = vld [vmem:[%s1426_s7 + $0x1e0] ss:$8 sps:$4 sm:$0xff]   ;;  %v1297_v7 = vld [vmem:[%s1426_s7 + $0xf4] ss:$8 sps:$4 sm:$0xff]  }
  0x3d   : > { %v1299_v8 = vld [vmem:[%s1426_s7 + $0x1f4] ss:$8 sps:$4 sm:$0xff]   ;;  %v1301_v9 = vld [vmem:[%s1426_s7 + $0xf0] ss:$8 sps:$4 sm:$0xff]   ;;  %v317_v18 = vld [vmem:[#allocation2] sm:$0xff]  ;;  %p1151_p11 = scmp.ne.s32.totalorder %s1345_s14, 3 }
  0x3e   : > { %768 = vmatpush1.bf16.msra.mxu1 %v1241_v31  ;;  %v1302_v10 = vld [vmem:[%s1426_s7 + $0x1f0] ss:$8 sps:$4 sm:$0xff]   ;;  %v1309_v13 = vld [vmem:[%s1428_s8 + $0x24] ss:$16 sps:$4 sm:$0xff]   ;;  %v1311_v14 = vld [vmem:[%s1428_s8 + $0x2c] ss:$16 sps:$4 sm:$0xff]  }
  0x3f   : > { %821 = vmatpush1.bf16.msra.mxu0 %v1242_v32  ;;  %769 = vmatprep.subr.bf16.mxu1 %v1243_v33  ;;  %v1303_v11 = vld [vmem:[%s1428_s8] ss:$16 sps:$4 sm:$0xff]   ;;  %v1306_v12 = vld [vmem:[%s1428_s8 + $0x8] ss:$16 sps:$4 sm:$0xff]  }
  0x40   : > { %822 = vmatprep.subr.bf16.mxu0 %v1245_v34  ;;  %v1313_v15 = vld [vmem:[%s1428_s8 + $0x20] ss:$16 sps:$4 sm:$0xff]   ;;  %v1314_v16 = vld [vmem:[%s1428_s8 + $0x28] ss:$16 sps:$4 sm:$0xff]  }
  0x41   : > { %v318_v22 = vld [vmem:[#allocation2 + $0x8] sm:$0xff]  ;;  %v319_v26 = vld [vmem:[#allocation2 + $0x10] sm:$0xff]  ;;  %v320_v31 = vld [vmem:[#allocation2 + $0x18] sm:$0xff] }
  0x42   : > { %770 = vmatpush1.bf16.msra.mxu1 %v1247_v35 }
  0x43   : > { %823 = vmatpush1.bf16.msra.mxu0 %v1248_v36  ;;  %771 = vmatprep.subr.bf16.mxu1 %v1249_v37 }
  0x44   : > { %824 = vmatprep.subr.bf16.mxu0 %v1251_v38  ;;  %v321_v38 = vld [vmem:[#allocation2 + $0x20] sm:$0xff] }
  0x46   : > { %772 = vmatpush1.bf16.msra.mxu1 %v1253_v39 }
  0x47   : > { %825 = vmatpush1.bf16.msra.mxu0 %v1254_v40  ;;  %773 = vmatprep.subr.bf16.mxu1 %v1255_v41 }
  0x48   : > { %826 = vmatprep.subr.bf16.mxu0 %v1257_v42  ;;  %v322_v42 = vld [vmem:[#allocation2 + $0x28] sm:$0xff] }
  0x4a   : > { %774 = vmatpush1.bf16.msra.mxu1 %v1259_v43 }
  0x4b   : > { %827 = vmatpush1.bf16.msra.mxu0 %v1260_v44  ;;  %775 = vmatprep.subr.bf16.mxu1 %v1261_v45 }
  0x4c   : > { %828 = vmatprep.subr.bf16.mxu0 %v1263_v46  ;;  %v323_v46 = vld [vmem:[#allocation2 + $0x30] sm:$0xff] }
  0x4e   : > { %776 = vmatpush1.bf16.msra.mxu1 %v1265_v47 }
  0x4f   : > { %829 = vmatpush1.bf16.msra.mxu0 %v1266_v48  ;;  %777 = vmatprep.subr.bf16.mxu1 %v1267_v49 }
  0x50   : > { %830 = vmatprep.subr.bf16.mxu0 %v1269_v50 }
  0x52   : > { %778 = vmatpush1.bf16.msra.mxu1 %v1271_v51  ;;  %v324_v51 = vld [vmem:[#allocation2 + $0x38] sm:$0xff] }
  0x53   : > { %831 = vmatpush1.bf16.msra.mxu0 %v1272_v52  ;;  %779 = vmatprep.subr.bf16.mxu1 %v1273_v53 }
  0x54   : > { %832 = vmatprep.subr.bf16.mxu0 %v1275_v54 }
  0x56   : > { %780 = vmatpush1.bf16.msra.mxu1 %v1277_v55 }
  0x57   : > { %833 = vmatpush1.bf16.msra.mxu0 %v1278_v56  ;;  %781 = vmatprep.subr.bf16.mxu1 %v1279_v57  ;;  %v893_v57 = vlaneseq (!%p1151_p11) }
  0x58   : > { %834 = vmatprep.subr.bf16.mxu0 %v1281_v59  ;;  %v891_v59 = vld [vmem:[%s1548_s2] sm:$0x3] (!%p1151_p11) }
  0x59   : > { %v894_v58 = vshrl.u32 (!%p1151_p11), %v893_v57, 7 }
  0x5a   : > { %782 = vmatpush1.bf16.msra.mxu1 %v1283_v61 }
  0x5b   : > { %835 = vmatpush1.bf16.msra.mxu0 %v1284_v62  ;;  %783 = vmatprep.subr.bf16.mxu1 %v1285_v63  ;;  %v895_v61 = vsub.s32 (!%p1151_p11), 0, %v894_v58  ;;  %v899_v63 = vsub.s32 (!%p1151_p11), 1, %v894_v58 }
  0x5c   : > { %836 = vmatprep.subr.bf16.mxu0 %v1287_v0 }
  0x5e   : > { %784 = vmatpush1.bf16.msra.mxu1 %v1289_v1 }
  0x5f   : > { %837 = vmatpush1.bf16.msra.mxu0 %v1290_v2  ;;  %785 = vmatprep.subr.bf16.mxu1 %v1291_v3  ;;  %v896_v3 = vrot.slane (!%p1151_p11), %v891_v59, %v895_v61 }
  0x60   : > { %838 = vmatprep.subr.bf16.mxu0 %v1293_v4  ;;  %v900_v4 = vrot.slane (!%p1151_p11), %v891_v59, %v899_v63 }
  0x62   : > { %786 = vmatpush1.bf16.msra.mxu1 %v1295_v5 }
  0x63   : > { %839 = vmatpush1.bf16.msra.mxu0 %v1296_v6  ;;  %787 = vmatprep.subr.bf16.mxu1 %v1297_v7 }
  0x64   : > { %840 = vmatprep.subr.bf16.mxu0 %v1299_v8 }
  0x66   : > { %788 = vmatpush1.bf16.msra.mxu1 %v1301_v9 }
  0x67   : > { %841 = vmatpush1.bf16.msra.mxu0 %v1302_v10 }
  0x69   : > { %790 = vmatmul.mubr.bf16.vlgmr.msra.gmra.mrb[0].mxu1 %v1303_v11 }
  0x6a   : > { %843 = vmatmul.mubr.bf16.vlgmr.msra.gmra.mrb[0].mxu0 %v1306_v12  ;;  %799 = vmatprep.mubr.bf16.mxu1 %v1309_v13 }
  0x6b   : > { %852 = vmatprep.mubr.bf16.mxu0 %v1311_v14 }
  0x71   : > { %800 = vmatmul.mubr.bf16.gmra.mrb[4].mxu1 %v1313_v15 }
  0x72   : > { %853 = vmatmul.mubr.bf16.gmra.mrb[4].mxu0 %v1314_v16 }
 0x13c   : > { %v791_v17 = vpop.f32.mrb[0].mxu1 }
 0x13d   : > { %v844_v19 = vpop.f32.mrb[0].mxu0  ;;  %v793_v21 = vpop.f32.mrb[1].mxu1 }
 0x13e   : > { %v845_v20 = vadd.f32 %v844_v19, %v791_v17  ;;  %v846_v23 = vpop.f32.mrb[1].mxu0  ;;  %v795_v25 = vpop.f32.mrb[2].mxu1 }
 0x13f   : > { %v847_v24 = vadd.f32 %v846_v23, %v793_v21  ;;  %v848_v27 = vpop.f32.mrb[2].mxu0  ;;  %v797_v30 = vpop.f32.mrb[3].mxu1 }
 0x140   : > { %v863_v28 = vadd.f32 %v845_v20, %v317_v18  ;;  %v849_v29 = vadd.f32 %v848_v27, %v795_v25  ;;  %v850_v32 = vpop.f32.mrb[3].mxu0 }
 0x141   : > { %v864_v33 = vadd.f32 %v847_v24, %v318_v22  ;;  %v851_v34 = vadd.f32 %v850_v32, %v797_v30 }
 0x142   : > { %871 = vst [vmem:[#allocation2] sm:$0xff] %v863_v28  ;;  %v865_v35 = vadd.f32 %v849_v29, %v319_v26 }
 0x143   : > { %872 = vst [vmem:[#allocation2 + $0x8] sm:$0xff] %v864_v33  ;;  %v866_v36 = vadd.f32 %v851_v34, %v320_v31 }
 0x144   : > { %873 = vst [vmem:[#allocation2 + $0x10] sm:$0xff] %v865_v35  ;;  %v801_v37 = vpop.f32.mrb[4].mxu1 }
 0x145   : > { %874 = vst [vmem:[#allocation2 + $0x18] sm:$0xff] %v866_v36  ;;  %v854_v39 = vpop.f32.mrb[4].mxu0  ;;  %v803_v41 = vpop.f32.mrb[5].mxu1 }
 0x146   : > { %v855_v40 = vadd.f32 %v854_v39, %v801_v37  ;;  %v856_v43 = vpop.f32.mrb[5].mxu0  ;;  %v805_v45 = vpop.f32.mrb[6].mxu1 }
 0x147   : > { %v857_v44 = vadd.f32 %v856_v43, %v803_v41  ;;  %v858_v47 = vpop.f32.mrb[6].mxu0  ;;  %v807_v50 = vpop.f32.mrb[7].mxu1  ;;  %882 = sbr.rel (%p1151_p11) target bundleno = 347 (0x15b), region = 63 }
 0x148   : > { %v867_v48 = vadd.f32 %v855_v40, %v321_v38  ;;  %v859_v49 = vadd.f32 %v858_v47, %v805_v45  ;;  %v860_v52 = vpop.f32.mrb[7].mxu0 }
 0x149   : > { %v868_v53 = vadd.f32 %v857_v44, %v322_v42  ;;  %v861_v54 = vadd.f32 %v860_v52, %v807_v50  ;;  %v883_v60 = vld [vmem:[#allocation2] sm:$0xff] (!%p1151_p11) }
 0x14a   : > { %875 = vst [vmem:[#allocation2 + $0x20] sm:$0xff] %v867_v48  ;;  %v869_v55 = vadd.f32 %v859_v49, %v323_v46  ;;  %v884_v62 = vld [vmem:[#allocation2 + $0x8] sm:$0xff] (!%p1151_p11)  ;;  %v903_v8 = vadd.f32 (!%p1151_p11), %v896_v3, %v883_v60 }
 0x14b   : > { %876 = vst [vmem:[#allocation2 + $0x28] sm:$0xff] %v868_v53  ;;  %v870_v56 = vadd.f32 %v861_v54, %v324_v51  ;;  %v885_v0 = vld [vmem:[#allocation2 + $0x10] sm:$0xff] (!%p1151_p11)  ;;  %v904_v9 = vadd.f32 (!%p1151_p11), %v900_v4, %v884_v62 }
 0x14c   : > { %877 = vst [vmem:[#allocation2 + $0x30] sm:$0xff] %v869_v55  ;;  %v886_v1 = vld [vmem:[#allocation2 + $0x18] sm:$0xff] (!%p1151_p11)  ;;  %v905_v10 = vadd.f32 (!%p1151_p11), %v896_v3, %v885_v0  ;;  %vm911_vm0 = vcmp.ge.f32.partialorder (!%p1151_p11), %v903_v8, 0.0  ;;  %v919_v16 = vmul.f32 (!%p1151_p11), 0.2, %v903_v8 }
 0x14d   : > { %878 = vst [vmem:[#allocation2 + $0x38] sm:$0xff] %v870_v56  ;;  %v906_v11 = vadd.f32 (!%p1151_p11), %v900_v4, %v886_v1  ;;  %vm912_vm1 = vcmp.ge.f32.partialorder (!%p1151_p11), %v904_v9, 0.0  ;;  %v920_v17 = vmul.f32 (!%p1151_p11), 0.2, %v904_v9 }
 0x14e   : > { %vm913_vm2 = vcmp.ge.f32.partialorder %v905_v10, 0.0  ;;  %v921_v18 = vmul.f32 0.2, %v905_v10  ;;  %v927_v20 = vsel %vm911_vm0, %v903_v8, %v919_v16 }
 0x14f   : > { %vm914_vm3 = vcmp.ge.f32.partialorder %v906_v11, 0.0  ;;  %v922_v19 = vmul.f32 0.2, %v906_v11  ;;  %v928_v21 = vsel %vm912_vm1, %v904_v9, %v920_v17  ;;  %935 = vst [vmem:[%s1549_s3] sm:$0xff] %v927_v20 }
 0x150   : > { %936 = vst [vmem:[%s1549_s3 + $0x8] sm:$0xff] %v928_v21  ;;  %v929_v23 = vsel %vm913_vm2, %v905_v10, %v921_v18 }
 0x151   : > { %v887_v2 = vld [vmem:[#allocation2 + $0x20] sm:$0xff]  ;;  %v930_v24 = vsel %vm914_vm3, %v906_v11, %v922_v19  ;;  %937 = vst [vmem:[%s1549_s3 + $0x10] sm:$0xff] %v929_v23 }
 0x152   : > { %v888_v5 = vld [vmem:[#allocation2 + $0x28] sm:$0xff]  ;;  %v907_v12 = vadd.f32 %v896_v3, %v887_v2  ;;  %938 = vst [vmem:[%s1549_s3 + $0x18] sm:$0xff] %v930_v24 }
 0x153   : > { %v889_v6 = vld [vmem:[#allocation2 + $0x30] sm:$0xff]  ;;  %v908_v13 = vadd.f32 %v900_v4, %v888_v5 }
 0x154   : > { %v890_v7 = vld [vmem:[#allocation2 + $0x38] sm:$0xff]  ;;  %v909_v14 = vadd.f32 %v896_v3, %v889_v6  ;;  %vm915_vm4 = vcmp.ge.f32.partialorder %v907_v12, 0.0  ;;  %v923_v22 = vmul.f32 0.2, %v907_v12 }
 0x155   : > { %v910_v15 = vadd.f32 %v900_v4, %v890_v7  ;;  %vm916_vm5 = vcmp.ge.f32.partialorder %v908_v13, 0.0  ;;  %v924_v25 = vmul.f32 0.2, %v908_v13 }
 0x156   : > { %v931_v26 = vsel %vm915_vm4, %v907_v12, %v923_v22  ;;  %vm917_vm6 = vcmp.ge.f32.partialorder %v909_v14, 0.0  ;;  %v925_v27 = vmul.f32 0.2, %v909_v14 }
 0x157   : > { %vm918_vm7 = vcmp.ge.f32.partialorder %v910_v15, 0.0  ;;  %939 = vst [vmem:[%s1549_s3 + $0x20] sm:$0xff] %v931_v26  ;;  %v932_v28 = vsel %vm916_vm5, %v908_v13, %v924_v25  ;;  %v926_v29 = vmul.f32 0.2, %v910_v15 }
 0x158   : > { %940 = vst [vmem:[%s1549_s3 + $0x28] sm:$0xff] %v932_v28  ;;  %v933_v30 = vsel %vm917_vm6, %v909_v14, %v925_v27 }
 0x159   : > { %941 = vst [vmem:[%s1549_s3 + $0x30] sm:$0xff] %v933_v30  ;;  %v934_v31 = vsel %vm918_vm7, %v910_v15, %v926_v29 }
 0x15a   : > { %942 = vst [vmem:[%s1549_s3 + $0x38] sm:$0xff] %v934_v31 }
 0x15b PF: > { %s13_s16 = sadd.s32 1, %s1353_s16   ;;  %s1550_s12 = smov %s1341_s13 }
 0x15c   : > { %p10_p12 = scmp.ge.s32.totalorder %s13_s16, 6   ;;  %s1551_s13 = smov %s1411_s20 }
 0x15d   : > { %s1552_s14 = smov %s1349_s15  ;;  %s1553_s15 = smov %s1555_s17 }
 0x15e   :  { %12 = sbr.rel (!%p10_p12) target bundleno = 3 (0x3), region = 104 }

// kernel: _lambda_.19
= control target key start
LH: loop header
LB: loop body
LE: loop exit
PB: predicated region body
PF: predicated region fallthrough
CT: control target
= control target key end

     0   :  { %s1273_s12 = smov 0   ;;  %s1275_s13 = smov 0   ;;  %s1437_s0 = inlined_call_operand.vmem [shape: bf16[64,8192], index: 0, kind: input, shape index: {}]   ;;  %s1438_s1 = inlined_call_operand.vmem [shape: bf16[8192,128], index: 1, kind: input, shape index: {}]   ;;  %s1439_s2 = inlined_call_operand.vmem [shape: f32[1,128], index: 2, kind: input, shape index: {}]   ;;  %s1440_s3 = inlined_call_operand.vmem [shape: f32[64,128], index: 3, kind: output, shape index: {}]  }
   0x1   :  { %s1277_s14 = smov 0   ;;  %s1279_s15 = smov 0  }
   0x2   :  { %s1281_s16 = smov 0  }
   0x3 LB: > { %s25_s17 = sadd.s32 1, %s1246_s15  ;;  %p48_p1 = scmp.ne.s32.totalorder %s1238_s13, %s1234_s12  ;;  %s1250_s16 = sphi %s1281_s16, %s13_s16   ;;  %s1246_s15 = sphi %s1279_s15, %s1444_s15   ;;  %s1242_s14 = sphi %s1277_s14, %s1443_s14   ;;  %s1238_s13 = sphi %s1275_s13, %s1442_s13   ;;  %s1234_s12 = sphi %s1273_s12, %s1441_s12  }
   0x4   : > { %p26_p0 = scmp.ge.s32.totalorder %s25_s17, 16  ;;  %p49_p2 = scmp.eq.s32.totalorder %s1250_s16, 0 }
   0x5   : > { %s41_s19 = sadd.s32 1, %s1238_s13  ;;  %p971_p5 = scmp.ge.s32.totalorder %s1250_s16, 16 }
   0x6   : > { %s1446_s17 = smov (%p26_p0, %s25_s17), 0  ;;  %p50_p3 = por %p49_p2, %p48_p1 }
   0x7   : > { %s37_s18 = ssub.s32 %s1246_s15, %s1446_s17  ;;  %162 = sbr.rel (%p971_p5) target bundleno = 26 (0x1a), region = 20 }
   0x8   : > { %p39_p4 = scmp.eq.s32.totalorder %s37_s18, 0 }
   0xa   : > { %s1308_s20 = scalar_select %p39_p4, %s1238_s13, %s41_s19  }
   0xe   : > { %165 = sbr.rel (!%p50_p3) target bundleno = 26 (0x1a), region = 24  ;;  %s167_s21 = sand.u32 (%p50_p3), 1, %s1238_s13  }
   0xf   : > { %s1034_s22 = sshll.u32 (%p50_p3), %s1246_s15, 4  ;;  %s972_s23 = sshll.u32 (%p50_p3), %s167_s21, 7 }
  0x10   : > { %s1316_s26 = scalar_lea.vmem (%p50_p3), %s1437_s0, %s1034_s22  ;;  %s169_s27 = scalar_lea.vmem (%p50_p3), [#allocation3], %s972_s23 }
  0x11   : > { %v188_v0 = vld [vmem:[%s1316_s26] sm:$0xff] (%p50_p3)  ;;  %v190_v1 = vld [vmem:[%s1316_s26 + $0x8] sm:$0xff] (%p50_p3) }
  0x12   : > { %v192_v2 = vld [vmem:[%s1316_s26 + $0x100] sm:$0xff] (%p50_p3)  ;;  %189 = vst [vmem:[%s169_s27] sm:$0xff] (%p50_p3), %v188_v0  ;;  %191 = vst [vmem:[%s169_s27 + $0x8] sm:$0xff] (%p50_p3), %v190_v1  ;;  %v194_v3 = vld [vmem:[%s1316_s26 + $0x108] sm:$0xff] (%p50_p3) }
  0x13   : > { %193 = vst [vmem:[%s169_s27 + $0x10] sm:$0xff] (%p50_p3), %v192_v2  ;;  %v196_v4 = vld [vmem:[%s1316_s26 + $0x200] sm:$0xff] (%p50_p3)  ;;  %v198_v5 = vld [vmem:[%s1316_s26 + $0x208] sm:$0xff] (%p50_p3)  ;;  %195 = vst [vmem:[%s169_s27 + $0x18] sm:$0xff] (%p50_p3), %v194_v3 }
  0x14   : > { %197 = vst [vmem:[%s169_s27 + $0x20] sm:$0xff] (%p50_p3), %v196_v4  ;;  %199 = vst [vmem:[%s169_s27 + $0x28] sm:$0xff] (%p50_p3), %v198_v5  ;;  %v200_v6 = vld [vmem:[%s1316_s26 + $0x300] sm:$0xff] (%p50_p3)  ;;  %v202_v7 = vld [vmem:[%s1316_s26 + $0x308] sm:$0xff] (%p50_p3) }
  0x15   : > { %v204_v8 = vld [vmem:[%s1316_s26 + $0x400] sm:$0xff]  ;;  %201 = vst [vmem:[%s169_s27 + $0x30] sm:$0xff] %v200_v6  ;;  %203 = vst [vmem:[%s169_s27 + $0x38] sm:$0xff] %v202_v7  ;;  %v206_v9 = vld [vmem:[%s1316_s26 + $0x408] sm:$0xff] }
  0x16   : > { %205 = vst [vmem:[%s169_s27 + $0x40] sm:$0xff] %v204_v8  ;;  %v208_v10 = vld [vmem:[%s1316_s26 + $0x500] sm:$0xff]  ;;  %v210_v11 = vld [vmem:[%s1316_s26 + $0x508] sm:$0xff]  ;;  %207 = vst [vmem:[%s169_s27 + $0x48] sm:$0xff] %v206_v9 }
  0x17   : > { %209 = vst [vmem:[%s169_s27 + $0x50] sm:$0xff] %v208_v10  ;;  %211 = vst [vmem:[%s169_s27 + $0x58] sm:$0xff] %v210_v11  ;;  %v212_v12 = vld [vmem:[%s1316_s26 + $0x600] sm:$0xff]  ;;  %v214_v13 = vld [vmem:[%s1316_s26 + $0x608] sm:$0xff] }
  0x18   : > { %v216_v14 = vld [vmem:[%s1316_s26 + $0x700] sm:$0xff]  ;;  %213 = vst [vmem:[%s169_s27 + $0x60] sm:$0xff] %v212_v12  ;;  %215 = vst [vmem:[%s169_s27 + $0x68] sm:$0xff] %v214_v13  ;;  %v218_v15 = vld [vmem:[%s1316_s26 + $0x708] sm:$0xff] }
  0x19   : > { %217 = vst [vmem:[%s169_s27 + $0x70] sm:$0xff] %v216_v14  ;;  %219 = vst [vmem:[%s169_s27 + $0x78] sm:$0xff] %v218_v15 }
  0x1a PF: > { %p975_p6 = scmp.ge.s32.totalorder %s1250_s16, 1  ;;  %p236_p7 = scmp.lt.s32.totalorder %s1250_s16, 17 }
  0x1c   : > { %p237_p8 = pnand %p975_p6, %p236_p7 }
  0x1d   : > { %s243_s28 = sand.u32 (!%p237_p8), 1, %s1234_s12   ;;  %s977_s29 = sshll.u32 (!%p237_p8), %s1242_s14, 6 }
  0x1e   : > { %240 = sbr.rel (%p237_p8) target bundleno = 335 (0x14f), region = 51  ;;  %s976_s30 = sshll.u32 (!%p237_p8), %s243_s28, 7 }
  0x1f   : > { %p283_p9 = scmp.lt.s32.totalorder (!%p237_p8), %s977_s29, 1023  ;;  %s1343_s8 = scalar_lea.vmem (!%p237_p8), [#allocation3], %s976_s30 }
  0x20   : > { %p979_p10 = scmp.ne.s32.totalorder (!%p237_p8), %s1242_s14, 0 }
  0x25   : > { %s1448_s29 = smov (!%p283_p9, %s977_s29), 1023  ;;  %307 = sbr.rel (%p979_p10) target bundleno = 44 (0x2c), region = 59 }
  0x26   : > { %s978_s4 = sshll.u32 %s1448_s29, 2  ;;  %v1252_v16 = vmov (!%p979_p10), 0.0  }
  0x27   : > { %s1341_s7 = scalar_lea.vmem %s1438_s1, %s978_s4  ;;  %308 = vst [vmem:[#allocation2] sm:$0xff] (!%p979_p10), %v1252_v16  ;;  %309 = vst [vmem:[#allocation2 + $0x8] sm:$0xff] (!%p979_p10), %v1252_v16 }
  0x28   : > { %310 = vst [vmem:[#allocation2 + $0x10] sm:$0xff] (!%p979_p10), %v1252_v16  ;;  %311 = vst [vmem:[#allocation2 + $0x18] sm:$0xff] (!%p979_p10), %v1252_v16 }
  0x29   : > { %312 = vst [vmem:[#allocation2 + $0x20] sm:$0xff] (!%p979_p10), %v1252_v16  ;;  %313 = vst [vmem:[#allocation2 + $0x28] sm:$0xff] (!%p979_p10), %v1252_v16 }
  0x2a   : > { %314 = vst [vmem:[#allocation2 + $0x30] sm:$0xff] (!%p979_p10), %v1252_v16  ;;  %315 = vst [vmem:[#allocation2 + $0x38] sm:$0xff] (!%p979_p10), %v1252_v16 }
  0x2c PF: > { %v1156_v17 = vld [vmem:[%s1341_s7 + $0x40] sm:$0xff]   ;;  %v1160_v21 = vld [vmem:[%s1341_s7 + $0x48] sm:$0xff]   ;;  %v1164_v25 = vld [vmem:[%s1341_s7 + $0x50] sm:$0xff]   ;;  %p1028_p11 = scmp.ne.s32.totalorder %s1242_s14, 15 }
  0x2d   : > { %v1157_v18 = vld [vmem:[%s1341_s7 + $0xc0] sm:$0xff]   ;;  %1035 = vmatprep.subr.bf16.mxu0 %v1156_v17  ;;  %v1161_v22 = vld [vmem:[%s1341_s7 + $0xc8] sm:$0xff]   ;;  %v1165_v26 = vld [vmem:[%s1341_s7 + $0xd0] sm:$0xff]  }
  0x2e   : > { %v1158_v19 = vld [vmem:[%s1341_s7] sm:$0xff]   ;;  %1075 = vmatprep.subr.bf16.mxu1 %v1157_v18  ;;  %v1162_v23 = vld [vmem:[%s1341_s7 + $0x8] sm:$0xff]   ;;  %v1166_v27 = vld [vmem:[%s1341_s7 + $0x10] sm:$0xff]  }
  0x2f   : > { %v1159_v20 = vld [vmem:[%s1341_s7 + $0x80] sm:$0xff]   ;;  %1036 = vmatpush3.bf16.msra.mxu0 %v1158_v19  ;;  %v1163_v24 = vld [vmem:[%s1341_s7 + $0x88] sm:$0xff]   ;;  %v1167_v28 = vld [vmem:[%s1341_s7 + $0x90] sm:$0xff]  }
  0x30   : > { %1076 = vmatpush3.bf16.msra.mxu1 %v1159_v20  ;;  %1037 = vmatprep.subr.bf16.mxu0 %v1160_v21  ;;  %v1168_v29 = vld [vmem:[%s1341_s7 + $0x58] sm:$0xff]   ;;  %v1172_v33 = vld [vmem:[%s1341_s7 + $0x60] sm:$0xff]   ;;  %v1176_v37 = vld [vmem:[%s1341_s7 + $0x68] sm:$0xff]  }
  0x31   : > { %1077 = vmatprep.subr.bf16.mxu1 %v1161_v22  ;;  %v1169_v30 = vld [vmem:[%s1341_s7 + $0xd8] sm:$0xff]   ;;  %v1173_v34 = vld [vmem:[%s1341_s7 + $0xe0] sm:$0xff]   ;;  %v1177_v38 = vld [vmem:[%s1341_s7 + $0xe8] sm:$0xff]  }
  0x32   : > { %v1170_v31 = vld [vmem:[%s1341_s7 + $0x18] sm:$0xff]   ;;  %v1174_v35 = vld [vmem:[%s1341_s7 + $0x20] sm:$0xff]   ;;  %v1178_v39 = vld [vmem:[%s1341_s7 + $0x28] sm:$0xff]  }
  0x33   : > { %1038 = vmatpush3.bf16.msra.mxu0 %v1162_v23  ;;  %v1171_v32 = vld [vmem:[%s1341_s7 + $0x98] sm:$0xff]   ;;  %v1175_v36 = vld [vmem:[%s1341_s7 + $0xa0] sm:$0xff]   ;;  %v1179_v40 = vld [vmem:[%s1341_s7 + $0xa8] sm:$0xff]  }
  0x34   : > { %1078 = vmatpush3.bf16.msra.mxu1 %v1163_v24  ;;  %1039 = vmatprep.subr.bf16.mxu0 %v1164_v25  ;;  %v1180_v41 = vld [vmem:[%s1341_s7 + $0x70] sm:$0xff]   ;;  %v1184_v45 = vld [vmem:[%s1341_s7 + $0x78] sm:$0xff]   ;;  %v316_v10 = vld [vmem:[#allocation2] sm:$0xff] }
  0x35   : > { %1079 = vmatprep.subr.bf16.mxu1 %v1165_v26  ;;  %v1181_v42 = vld [vmem:[%s1341_s7 + $0xf0] sm:$0xff]   ;;  %v1185_v46 = vld [vmem:[%s1341_s7 + $0xf8] sm:$0xff]   ;;  %v317_v15 = vld [vmem:[#allocation2 + $0x8] sm:$0xff] }
  0x36   : > { %v1182_v43 = vld [vmem:[%s1341_s7 + $0x30] sm:$0xff]   ;;  %v1186_v47 = vld [vmem:[%s1341_s7 + $0x38] sm:$0xff]  }
  0x37   : > { %1040 = vmatpush3.bf16.msra.mxu0 %v1166_v27  ;;  %v1183_v44 = vld [vmem:[%s1341_s7 + $0xb0] sm:$0xff]   ;;  %v1187_v48 = vld [vmem:[%s1341_s7 + $0xb8] sm:$0xff]  }
  0x38   : > { %1080 = vmatpush3.bf16.msra.mxu1 %v1167_v28  ;;  %1041 = vmatprep.subr.bf16.mxu0 %v1168_v29  ;;  %v1188_v49 = vld [vmem:[%s1343_s8] ss:$16 sps:$4 sm:$0xff]   ;;  %v1190_v50 = vld [vmem:[%s1343_s8 + $0x4] ss:$16 sps:$4 sm:$0xff]   ;;  %v1191_v51 = vld [vmem:[%s1343_s8 + $0x8] ss:$16 sps:$4 sm:$0xff]  }
  0x39   : > { %1081 = vmatprep.subr.bf16.mxu1 %v1169_v30  ;;  %v1193_v52 = vld [vmem:[%s1343_s8 + $0xc] ss:$16 sps:$4 sm:$0xff]   ;;  %708 = vmatprep.mubr.bf16.mxu0 %v1190_v50  ;;  %v1194_v53 = vld [vmem:[%s1343_s8 + $0x24] ss:$16 sps:$4 sm:$0xff]   ;;  %v1198_v55 = vld [vmem:[%s1343_s8 + $0x20] ss:$16 sps:$4 sm:$0xff]  }
  0x3a   : > { %773 = vmatprep.mubr.bf16.mxu1 %v1193_v52  ;;  %v1196_v54 = vld [vmem:[%s1343_s8 + $0x2c] ss:$16 sps:$4 sm:$0xff]   ;;  %v1199_v56 = vld [vmem:[%s1343_s8 + $0x28] ss:$16 sps:$4 sm:$0xff]   ;;  %v1200_v57 = vld [vmem:[%s1343_s8 + $0x44] ss:$16 sps:$4 sm:$0xff]  }
  0x3b   : > { %1042 = vmatpush3.bf16.msra.mxu0 %v1170_v31  ;;  %v1202_v58 = vld [vmem:[%s1343_s8 + $0x4c] ss:$16 sps:$4 sm:$0xff]   ;;  %v1204_v59 = vld [vmem:[%s1343_s8 + $0x40] ss:$16 sps:$4 sm:$0xff]   ;;  %v1205_v60 = vld [vmem:[%s1343_s8 + $0x48] ss:$16 sps:$4 sm:$0xff]  }
  0x3c   : > { %1082 = vmatpush3.bf16.msra.mxu1 %v1171_v32  ;;  %1043 = vmatprep.subr.bf16.mxu0 %v1172_v33  ;;  %v1206_v61 = vld [vmem:[%s1343_s8 + $0x64] ss:$16 sps:$4 sm:$0xff]   ;;  %v1208_v62 = vld [vmem:[%s1343_s8 + $0x6c] ss:$16 sps:$4 sm:$0xff]   ;;  %v1210_v63 = vld [vmem:[%s1343_s8 + $0x60] ss:$16 sps:$4 sm:$0xff]  }
  0x3d   : > { %1083 = vmatprep.subr.bf16.mxu1 %v1173_v34  ;;  %v1211_v0 = vld [vmem:[%s1343_s8 + $0x68] ss:$16 sps:$4 sm:$0xff]   ;;  %v318_v28 = vld [vmem:[#allocation2 + $0x10] sm:$0xff] }
  0x3e   : > { %v319_v33 = vld [vmem:[#allocation2 + $0x18] sm:$0xff] }
  0x3f   : > { %1044 = vmatpush3.bf16.msra.mxu0 %v1174_v35 }
  0x40   : > { %1084 = vmatpush3.bf16.msra.mxu1 %v1175_v36  ;;  %1045 = vmatprep.subr.bf16.mxu0 %v1176_v37 }
  0x41   : > { %1085 = vmatprep.subr.bf16.mxu1 %v1177_v38 }
  0x43   : > { %1046 = vmatpush3.bf16.msra.mxu0 %v1178_v39 }
  0x44   : > { %1086 = vmatpush3.bf16.msra.mxu1 %v1179_v40  ;;  %1047 = vmatprep.subr.bf16.mxu0 %v1180_v41 }
  0x45   : > { %1087 = vmatprep.subr.bf16.mxu1 %v1181_v42 }
  0x47   : > { %1048 = vmatpush3.bf16.msra.mxu0 %v1182_v43 }
  0x48   : > { %1088 = vmatpush3.bf16.msra.mxu1 %v1183_v44  ;;  %1049 = vmatprep.subr.bf16.mxu0 %v1184_v45 }
  0x49   : > { %1089 = vmatprep.subr.bf16.mxu1 %v1185_v46  ;;  %v320_v46 = vld [vmem:[#allocation2 + $0x20] sm:$0xff] }
  0x4b   : > { %1050 = vmatpush3.bf16.msra.mxu0 %v1186_v47 }
  0x4c   : > { %1090 = vmatpush3.bf16.msra.mxu1 %v1187_v48 }
  0x4e   : > { %709 = vmatmul.mubr.bf16.vlgmr.msra.gmra.mrb[0].mxu0 %v1188_v49 }
  0x4f   : > { %774 = vmatmul.mubr.bf16.vlgmr.msra.gmra.mrb[0].mxu1 %v1191_v51  ;;  %716 = vmatprep.mubr.bf16.mxu0 %v1194_v53  ;;  %v321_v51 = vld [vmem:[#allocation2 + $0x28] sm:$0xff] }
  0x50   : > { %781 = vmatprep.mubr.bf16.mxu1 %v1196_v54 }
  0x56   : > { %717 = vmatmul.mubr.bf16.gmra.mrb[4].mxu0 %v1198_v55 }
  0x57   : > { %782 = vmatmul.mubr.bf16.gmra.mrb[4].mxu1 %v1199_v56  ;;  %724 = vmatprep.mubr.bf16.mxu0 %v1200_v57 }
  0x58   : > { %789 = vmatprep.mubr.bf16.mxu1 %v1202_v58 }
  0x5e   : > { %725 = vmatmul.mubr.bf16.gmra.mrb[8].mxu0 %v1204_v59 }
  0x5f   : > { %790 = vmatmul.mubr.bf16.gmra.mrb[8].mxu1 %v1205_v60  ;;  %732 = vmatprep.mubr.bf16.mxu0 %v1206_v61 }
  0x60   : > { %797 = vmatprep.mubr.bf16.mxu1 %v1208_v62 }
  0x66   : > { %733 = vmatmul.mubr.bf16.gmra.mrb[12].mxu0 %v1210_v63 }
  0x67   : > { %798 = vmatmul.mubr.bf16.gmra.mrb[12].mxu1 %v1211_v0  ;;  %v322_v0 = vld [vmem:[#allocation2 + $0x30] sm:$0xff] }
 0x121   : > { %v1051_v1 = vpop.f32.mrb[0].mxu0 }
 0x122   : > { %v1091_v2 = vpop.f32.mrb[0].mxu1  ;;  %v1052_v3 = vpop.f32.mrb[1].mxu0 }
 0x123   : > { %v1053_v4 = vadd.f32 %v1052_v3, %v1051_v1  ;;  %v1092_v5 = vpop.f32.mrb[1].mxu1  ;;  %v1054_v6 = vpop.f32.mrb[2].mxu0 }
 0x124   : > { %v1093_v7 = vadd.f32 %v1092_v5, %v1091_v2  ;;  %v1094_v8 = vpop.f32.mrb[2].mxu1  ;;  %v1055_v9 = vpop.f32.mrb[3].mxu0  ;;  %v323_v5 = vld [vmem:[#allocation2 + $0x38] sm:$0xff] }
 0x125   : > { %v1056_v11 = vadd.f32 %v1055_v9, %v1054_v6  ;;  %v1095_v12 = vpop.f32.mrb[3].mxu1 }
 0x126   : > { %v776_v13 = vadd.f32 %v1093_v7, %v1053_v4  ;;  %v1096_v14 = vadd.f32 %v1095_v12, %v1094_v8 }
 0x128   : > { %v806_v16 = vadd.f32 %v776_v13, %v316_v10  ;;  %v779_v17 = vadd.f32 %v1096_v14, %v1056_v11  ;;  %v1029_v10 = vld [vmem:[%s1439_s2] ss:$0 sm:$0xff] (!%p1028_p11) }
 0x129   : > { %v1057_v18 = vpop.f32.mrb[4].mxu0 }
 0x12a   : > { %814 = vst [vmem:[#allocation2] sm:$0xff] %v806_v16  ;;  %v807_v19 = vadd.f32 %v779_v17, %v317_v15  ;;  %v1097_v20 = vpop.f32.mrb[4].mxu1  ;;  %v1058_v21 = vpop.f32.mrb[5].mxu0 }
 0x12b   : > { %v1059_v22 = vadd.f32 %v1058_v21, %v1057_v18  ;;  %v1098_v23 = vpop.f32.mrb[5].mxu1  ;;  %v1060_v24 = vpop.f32.mrb[6].mxu0 }
 0x12c   : > { %815 = vst [vmem:[#allocation2 + $0x8] sm:$0xff] %v807_v19  ;;  %v1099_v25 = vadd.f32 %v1098_v23, %v1097_v20  ;;  %v1100_v26 = vpop.f32.mrb[6].mxu1  ;;  %v1061_v27 = vpop.f32.mrb[7].mxu0 }
 0x12d   : > { %v1062_v29 = vadd.f32 %v1061_v27, %v1060_v24  ;;  %v1101_v30 = vpop.f32.mrb[7].mxu1 }
 0x12e   : > { %v784_v31 = vadd.f32 %v1099_v25, %v1059_v22  ;;  %v1102_v32 = vadd.f32 %v1101_v30, %v1100_v26 }
 0x130   : > { %v808_v34 = vadd.f32 %v784_v31, %v318_v28  ;;  %v787_v35 = vadd.f32 %v1102_v32, %v1062_v29 }
 0x131   : > { %v1063_v36 = vpop.f32.mrb[8].mxu0  ;;  %v826_v9 = vld [vmem:[#allocation2] sm:$0xff] (!%p1028_p11) }
 0x132   : > { %816 = vst [vmem:[#allocation2 + $0x10] sm:$0xff] %v808_v34  ;;  %v809_v37 = vadd.f32 %v787_v35, %v319_v33  ;;  %v1103_v38 = vpop.f32.mrb[8].mxu1  ;;  %v1064_v39 = vpop.f32.mrb[9].mxu0  ;;  %v841_v12 = vadd.f32 (!%p1028_p11), %v1029_v10, %v826_v9 }
 0x133   : > { %v1065_v40 = vadd.f32 %v1064_v39, %v1063_v36  ;;  %v1104_v41 = vpop.f32.mrb[9].mxu1  ;;  %v1066_v42 = vpop.f32.mrb[10].mxu0  ;;  %v827_v11 = vld [vmem:[#allocation2 + $0x8] sm:$0xff] (!%p1028_p11) }
 0x134   : > { %817 = vst [vmem:[#allocation2 + $0x18] sm:$0xff] %v809_v37  ;;  %v1105_v43 = vadd.f32 %v1104_v41, %v1103_v38  ;;  %v1106_v44 = vpop.f32.mrb[10].mxu1  ;;  %v1067_v45 = vpop.f32.mrb[11].mxu0  ;;  %v842_v13 = vadd.f32 (!%p1028_p11), %v1029_v10, %v827_v11  ;;  %849 = vst [vmem:[%s1440_s3] sm:$0xff] (!%p1028_p11), %v841_v12 }
 0x135   : > { %v1068_v47 = vadd.f32 %v1067_v45, %v1066_v42  ;;  %v1107_v48 = vpop.f32.mrb[11].mxu1 }
 0x136   : > { %v792_v49 = vadd.f32 %v1105_v43, %v1065_v40  ;;  %v1108_v50 = vadd.f32 %v1107_v48, %v1106_v44  ;;  %850 = vst [vmem:[%s1440_s3 + $0x8] sm:$0xff] (!%p1028_p11), %v842_v13 }
 0x138   : > { %v810_v52 = vadd.f32 %v792_v49, %v320_v46  ;;  %v795_v53 = vadd.f32 %v1108_v50, %v1068_v47 }
 0x139   : > { %v1069_v54 = vpop.f32.mrb[12].mxu0  ;;  %v828_v14 = vld [vmem:[#allocation2 + $0x10] sm:$0xff] (!%p1028_p11) }
 0x13a   : > { %818 = vst [vmem:[#allocation2 + $0x20] sm:$0xff] %v810_v52  ;;  %v811_v55 = vadd.f32 %v795_v53, %v321_v51  ;;  %v1109_v56 = vpop.f32.mrb[12].mxu1  ;;  %v1070_v57 = vpop.f32.mrb[13].mxu0  ;;  %v843_v17 = vadd.f32 (!%p1028_p11), %v1029_v10, %v828_v14 }
 0x13b   : > { %v1071_v58 = vadd.f32 %v1070_v57, %v1069_v54  ;;  %v1110_v59 = vpop.f32.mrb[13].mxu1  ;;  %v1072_v60 = vpop.f32.mrb[14].mxu0  ;;  %v829_v15 = vld [vmem:[#allocation2 + $0x18] sm:$0xff] (!%p1028_p11) }
 0x13c   : > { %819 = vst [vmem:[#allocation2 + $0x28] sm:$0xff] %v811_v55  ;;  %v1111_v61 = vadd.f32 %v1110_v59, %v1109_v56  ;;  %v1112_v62 = vpop.f32.mrb[14].mxu1  ;;  %v1073_v63 = vpop.f32.mrb[15].mxu0  ;;  %v844_v18 = vadd.f32 (!%p1028_p11), %v1029_v10, %v829_v15  ;;  %851 = vst [vmem:[%s1440_s3 + $0x10] sm:$0xff] (!%p1028_p11), %v843_v17 }
 0x13d   : > { %v1074_v1 = vadd.f32 %v1073_v63, %v1072_v60  ;;  %v1113_v2 = vpop.f32.mrb[15].mxu1 }
 0x13e   : > { %v800_v3 = vadd.f32 %v1111_v61, %v1071_v58  ;;  %v1114_v4 = vadd.f32 %v1113_v2, %v1112_v62  ;;  %825 = sbr.rel (%p1028_p11) target bundleno = 335 (0x14f), region = 63  ;;  %852 = vst [vmem:[%s1440_s3 + $0x18] sm:$0xff] (!%p1028_p11), %v844_v18 }
 0x140   : > { %v812_v6 = vadd.f32 %v800_v3, %v322_v0  ;;  %v803_v7 = vadd.f32 %v1114_v4, %v1074_v1 }
 0x141   : > { %v830_v16 = vld [vmem:[#allocation2 + $0x20] sm:$0xff] (!%p1028_p11) }
 0x142   : > { %820 = vst [vmem:[#allocation2 + $0x30] sm:$0xff] %v812_v6  ;;  %v813_v8 = vadd.f32 %v803_v7, %v323_v5  ;;  %v845_v19 = vadd.f32 (!%p1028_p11), %v1029_v10, %v830_v16 }
 0x143   : > { %v831_v20 = vld [vmem:[#allocation2 + $0x28] sm:$0xff] (!%p1028_p11) }
 0x144   : > { %821 = vst [vmem:[#allocation2 + $0x38] sm:$0xff] %v813_v8  ;;  %v846_v23 = vadd.f32 (!%p1028_p11), %v1029_v10, %v831_v20  ;;  %853 = vst [vmem:[%s1440_s3 + $0x20] sm:$0xff] (!%p1028_p11), %v845_v19 }
 0x146   : > { %854 = vst [vmem:[%s1440_s3 + $0x28] sm:$0xff] %v846_v23 }
 0x149   : > { %v832_v21 = vld [vmem:[#allocation2 + $0x30] sm:$0xff] }
 0x14a   : > { %v847_v24 = vadd.f32 %v1029_v10, %v832_v21 }
 0x14b   : > { %v833_v22 = vld [vmem:[#allocation2 + $0x38] sm:$0xff] }
 0x14c   : > { %v848_v25 = vadd.f32 %v1029_v10, %v833_v22  ;;  %855 = vst [vmem:[%s1440_s3 + $0x30] sm:$0xff] %v847_v24 }
 0x14e   : > { %856 = vst [vmem:[%s1440_s3 + $0x38] sm:$0xff] %v848_v25 }
 0x14f PF: > { %s13_s16 = sadd.s32 1, %s1250_s16   ;;  %s1441_s12 = smov %s1238_s13 }
 0x150   : > { %p10_p12 = scmp.ge.s32.totalorder %s13_s16, 18   ;;  %s1442_s13 = smov %s1308_s20 }
 0x151   : > { %s1443_s14 = smov %s1246_s15  ;;  %s1444_s15 = smov %s1446_s17 }
 0x152   :  { %12 = sbr.rel (!%p10_p12) target bundleno = 3 (0x3), region = 104 }

</bundles_post_ra>
